<compile_context>
chip_gen: v7x
topology: tpu7x:2x2x1
jax: 0.10.0
libtpu: 0.0.40
codegen_flags: <defaults>
</compile_context>

<pallas_src>
import jax
import jax.numpy as jnp
from jax import lax
from jax.experimental import pallas as pl
from jax.experimental.pallas import tpu as pltpu

LEAKY_SLOPE = 0.02


def _leaky(x):
    return jnp.where(x >= 0, x, LEAKY_SLOPE * x)


# ----------------------------------------------------------------------------
# Wrapper relayouts (each fuses into one tiny XLA op; these are 1x-sized
# layout changes, NOT a 9x im2col).
# ----------------------------------------------------------------------------
def phase_split2(x):
    """(N,H,W,C) -> P2 with P2[n,ph,pw,i,j,c] = pad(x,1)[n, 2i+ph, 2j+pw, c]."""
    n, h, w, c = x.shape
    assert h % 2 == 0 and w % 2 == 0, (h, w)
    xp = jnp.pad(x, ((0, 0), (1, 1), (1, 1), (0, 0)))
    xp = xp.reshape(n, (h + 2) // 2, 2, (w + 2) // 2, 2, c)
    return jnp.transpose(xp, (0, 2, 4, 1, 3, 5))        # (N, 2, 2, HP, WP, C)


def phase_split24(x):
    """(N,H,W,C) -> P with P[n,ph,m,i,b,c] = pad(x,1)[n, 2i+ph, 4b+m, c].

    Rows are padded up to an even count, columns up to a multiple of 4, so the
    kernel can take full contiguous 16-block slices along `b` for every tap.
    """
    n, h, w, c = x.shape
    hp = h + 2 + ((-(h + 2)) % 2)
    wp = w + 2 + ((-(w + 2)) % 4)
    xp = jnp.pad(x, ((0, 0), (1, hp - h - 1), (1, wp - w - 1), (0, 0)))
    xp = xp.reshape(n, hp // 2, 2, wp // 4, 4, c)
    return jnp.transpose(xp, (0, 2, 4, 1, 3, 5))        # (N, 2, 4, hp//2, wp//4, C)


# ----------------------------------------------------------------------------
# Pallas kernel 1: conv1 (Cin=1) + bias + LeakyReLU.  One grid step per image
# ("parallel" -> both v7x TensorCores get a block); 9 VPU broadcast FMAs.
# ----------------------------------------------------------------------------
def _conv1_kernel_factory(ho, wo, cout):
    def kernel(p_ref, w_ref, b_ref, o_ref):
        # p_ref: (1, 2, 2, HP, WP, 1); w_ref: (3, 3, 1, cout); b_ref: (1, cout)
        acc = jnp.zeros((ho, wo, cout), jnp.float32)
        for kh in range(3):
            for kw in range(3):
                tap = p_ref[0, kh % 2, kw % 2,
                            kh // 2:kh // 2 + ho,
                            kw // 2:kw // 2 + wo, :]               # (ho, wo, 1)
                acc = acc + tap * w_ref[kh, kw, 0][None, None, :]  # bcast FMA
        acc = acc + b_ref[0][None, None, :]
        o_ref[0] = _leaky(acc).astype(o_ref.dtype)
    return kernel


def conv1(x, w, b):
    """x: (N,H,W,1); w: (3,3,1,Cout); b: (Cout,) -> (N,H/2,W/2,Cout)."""
    phases = phase_split2(x)
    n, _, _, hp, wp, cin = phases.shape
    ho, wo = hp - 1, wp - 1
    cout = w.shape[-1]
    kernel = _conv1_kernel_factory(ho, wo, cout)
    return pl.pallas_call(
        kernel,
        out_shape=jax.ShapeDtypeStruct((n, ho, wo, cout), jnp.float32),
        grid=(n,),
        in_specs=[
            pl.BlockSpec((1, 2, 2, hp, wp, cin), lambda i: (i, 0, 0, 0, 0, 0)),
            pl.BlockSpec((3, 3, cin, cout), lambda i: (0, 0, 0, 0)),
            pl.BlockSpec((1, cout), lambda i: (0, 0)),
        ],
        out_specs=pl.BlockSpec((1, ho, wo, cout), lambda i: (i, 0, 0, 0)),
        compiler_params=pltpu.CompilerParams(dimension_semantics=("parallel",)),
    )(phases, w, b.reshape(1, cout))


# ----------------------------------------------------------------------------
# Pallas kernel 2: conv2 + LReLU + conv3 + LReLU + Flatten + Linear + Sigmoid,
# fused into a single grid-less step.  Input is the mod-(2,4) phase split of
# pad(a1), so every tap of conv2 is a contiguous static slice; conv2's output
# is produced split by output-column parity, so every tap of conv3 is also a
# contiguous static slice (the single left-pad boundary column of conv3 is
# handled by splitting its accumulator into col-0 and cols-1..15 pieces).
# ----------------------------------------------------------------------------
def fused_tail(a1, w2, b2, w3, b3, wl, bl):
    n, h1, w1, c1 = a1.shape
    assert h1 == 4 and w1 % 4 == 0, (h1, w1)     # a2: 2 rows, a3: 1 row
    c2 = w2.shape[-1]
    c3 = w3.shape[-1]
    nb = w1 // 4                                 # output cols per parity = 16
    assert wl.shape == (nb, c3), wl.shape

    P = phase_split24(a1)                        # (N, 2, 4, 3, nb+1, c1)

    def kernel(p_ref, w2_ref, b2_ref, w3_ref, b3_ref, wl_ref, bl_ref, o_ref):
        # Hoist weight tiles / biases out of the tap loops.
        w2t = [[w2_ref[kh, kw] for kw in range(3)] for kh in range(3)]
        w3t = [[w3_ref[kh, kw] for kw in range(3)] for kh in range(3)]
        b2v = b2_ref[...]                        # (1, c2)
        b3v = b3_ref[...]                        # (1, c3)

        # ---- conv2: a2_piece[r2][io2][n, b, :] = LReLU(conv2(a1))[io2, 2b+r2, :]
        a2_piece = [[None, None], [None, None]]
        for r2 in range(2):
            for io2 in range(2):
                acc = jnp.zeros((n * nb, c2), jnp.float32)
                for kh in range(3):
                    for kw in range(3):
                        t = 2 * r2 + kw          # a1pad col offset (0..4)
                        tap = p_ref[:, kh % 2, t % 4, io2 + kh // 2,
                                    t // 4:t // 4 + nb, :]          # (N, nb, c1)
                        acc = acc + jnp.dot(tap.reshape(n * nb, c1), w2t[kh][kw],
                                            preferred_element_type=jnp.float32)
                acc = _leaky(acc + b2v)
                a2_piece[r2][io2] = acc.reshape(n, nb, c2)

        # ---- conv3 (output is 1 x nb): kw=1 hits even a2 cols, kw=2 odd cols,
        #      kw=0 hits odd cols shifted by one (output col 0 sees the pad).
        acc_full = jnp.zeros((n, nb, c3), jnp.float32)        # output cols 0..nb-1
        acc_shift = jnp.zeros((n, nb - 1, c3), jnp.float32)   # output cols 1..nb-1
        for kh in (1, 2):                                     # kh=0 is the zero pad row
            for kw, r2 in ((1, 0), (2, 1)):
                src = a2_piece[r2][kh - 1]                                   # (N, nb, c2)
                contrib = jnp.dot(src.reshape(n * nb, c2), w3t[kh][kw],
                                  preferred_element_type=jnp.float32)
                acc_full = acc_full + contrib.reshape(n, nb, c3)
            src = a2_piece[1][kh - 1][:, 0:nb - 1, :]                        # (N, nb-1, c2)
            contrib = jnp.dot(src.reshape(n * (nb - 1), c2), w3t[kh][0],
                              preferred_element_type=jnp.float32)
            acc_shift = acc_shift + contrib.reshape(n, nb - 1, c3)

        h0 = _leaky(acc_full[:, 0:1, :] + b3v)                   # (N, 1,    c3)
        h1 = _leaky(acc_full[:, 1:nb, :] + acc_shift + b3v)      # (N, nb-1, c3)

        # ---- Flatten + Linear(nb*c3 -> 1) as a VPU multiply + reduction,
        #      then Sigmoid.
        z = jnp.sum(jnp.sum(h0 * wl_ref[0:1, :][None], axis=2), axis=1, keepdims=True)
        z = z + jnp.sum(jnp.sum(h1 * wl_ref[1:nb, :][None], axis=2), axis=1,
                        keepdims=True)
        z = z + bl_ref[...]                                      # (N, 1)
        o_ref[...] = (1.0 / (1.0 + jnp.exp(-z))).astype(o_ref.dtype)

    # Grid-less call: every operand fits comfortably in VMEM as one block.
    return pl.pallas_call(
        kernel,
        out_shape=jax.ShapeDtypeStruct((n, 1), jnp.float32),
    )(P, w2, b2.reshape(1, c2), w3, b3.reshape(1, c3), wl, bl.reshape(1, 1))


# ----------------------------------------------------------------------------
# Full forward
# ----------------------------------------------------------------------------
def discriminator1_forward(img_nchw, params):
    # img_nchw: (N, 1, 8, 128) float32 (PyTorch NCHW convention)
    x = jnp.transpose(img_nchw, (0, 2, 3, 1))                      # -> NHWC
    a1 = conv1(x, params["w1"], params["b1"])                      # (N, 4, 64, 32)
    return fused_tail(a1, params["w2"], params["b2"],
                      params["w3"], params["b3"],
                      params["wl"], params["bl"])                  # (N, 1)


def init_params(key):
    ks = jax.random.split(key, 8)

    def rnd(k, shape, scale):
        return (scale * jax.random.normal(k, shape)).astype(jnp.float32)

    # Conv weights stored as (kh, kw, Cin, Cout) == torch_w.transpose(2, 3, 1, 0).
    # Linear weight stored pre-permuted into NHWC flatten order (h=1 here):
    #   wl[w, c] == torch_wl[0, c*16 + w]  i.e. torch_wl.reshape(128, 16).T
    # which removes the NCHW flatten transpose from the forward pass.
    return dict(
        w1=rnd(ks[0], (3, 3, 1, 32), 0.10),    b1=rnd(ks[1], (32,), 0.10),
        w2=rnd(ks[2], (3, 3, 32, 64), 0.05),   b2=rnd(ks[3], (64,), 0.05),
        w3=rnd(ks[4], (3, 3, 64, 128), 0.05),  b3=rnd(ks[5], (128,), 0.05),
        wl=rnd(ks[6], (16, 128), 1e-3),        bl=rnd(ks[7], (1,), 1e-3),
    )


# ----------------------------------------------------------------------------
# Pure-JAX reference (for correctness check only)
# ----------------------------------------------------------------------------
def reference_forward(img_nchw, params):
    dn = ("NHWC", "HWIO", "NHWC")

    def conv(x, w, b):
        y = lax.conv_general_dilated(x, w, window_strides=(2, 2),
                                     padding=((1, 1), (1, 1)),
                                     dimension_numbers=dn,
                                     precision=lax.Precision.HIGHEST)
        y = y + b
        return jnp.where(y >= 0, y, LEAKY_SLOPE * y)

    x = jnp.transpose(img_nchw, (0, 2, 3, 1))
    x = conv(x, params["w1"], params["b1"])
    x = conv(x, params["w2"], params["b2"])
    x = conv(x, params["w3"], params["b3"])                        # (N, 1, 16, 128)
    z = jnp.einsum("nwc,wc->n", x[:, 0], params["wl"],
                   precision=lax.Precision.HIGHEST) + params["bl"][0]
    return jax.nn.sigmoid(z)[:, None]


if __name__ == "__main__":
    key = jax.random.PRNGKey(0)
    k_img, k_par = jax.random.split(key)

    # Smallest input consistent with Linear(128*1*16, 1): three s=2/p=1 convs
    # must yield 1x16 spatial, so the image is (N, 1, 8, 128) NCHW.
    img = jax.random.normal(k_img, (2, 1, 8, 128), dtype=jnp.float32)
    params = init_params(k_par)

    out = jax.jit(discriminator1_forward)(img, params)
    out = jax.block_until_ready(out)

    assert out.shape == (2, 1), out.shape
    assert bool(jnp.all(jnp.isfinite(out)))
    assert bool(jnp.all((out >= 0.0) & (out <= 1.0)))              # sigmoid range

    ref = reference_forward(img, params)
    assert bool(jnp.allclose(out, ref, atol=1e-4, rtol=1e-3)), (out, ref)

    print("KERNEL_OK")
</pallas_src>

<mosaic_0001>
module attributes {stable_mosaic.version = 11 : i64} {
  func.func @kernel(%arg0: i32, %arg1: memref<1x2x2x5x65x1xf32, #tpu.memory_space<vmem>>, %arg2: memref<3x3x1x32xf32, #tpu.memory_space<vmem>>, %arg3: memref<1x32xf32, #tpu.memory_space<vmem>>, %arg4: memref<1x4x64x32xf32, #tpu.memory_space<vmem>>) attributes {dimension_semantics = [#tpu.dimension_semantics<parallel>], iteration_bounds = array<i64: 2>, scalar_prefetch = 0 : i64, scratch_operands = 0 : i64, tpu.core_type = #tpu.core_type<tc>, window_params = [{transform_indices = @transform_0, window_bounds = array<i64: 1, 2, 2, 5, 65, 1>}, {pipeline_mode = #tpu.pipeline_mode<synchronous>, transform_indices = @transform_1, window_bounds = array<i64: 3, 3, 1, 32>}, {pipeline_mode = #tpu.pipeline_mode<synchronous>, transform_indices = @transform_2, window_bounds = array<i64: 1, 32>}, {transform_indices = @transform_3, window_bounds = array<i64: 1, 4, 64, 32>}]} {
    %cst = arith.constant 0.000000e+00 : f32
    %0 = vector.broadcast %cst : f32 to vector<4x64x32xf32>
    %c0 = arith.constant 0 : index
    %c0_0 = arith.constant 0 : index
    %c0_1 = arith.constant 0 : index
    %c0_2 = arith.constant 0 : index
    %c0_3 = arith.constant 0 : index
    %c0_4 = arith.constant 0 : index
    %1 = vector.load %arg1[%c0, %c0_0, %c0_1, %c0_2, %c0_3, %c0_4] : memref<1x2x2x5x65x1xf32, #tpu.memory_space<vmem>>, vector<1x1x1x4x64x1xf32>
    %2 = vector.shape_cast %1 : vector<1x1x1x4x64x1xf32> to vector<4x64x1xf32>
    %c0_5 = arith.constant 0 : index
    %c0_6 = arith.constant 0 : index
    %c0_7 = arith.constant 0 : index
    %c0_8 = arith.constant 0 : index
    %3 = vector.load %arg2[%c0_5, %c0_6, %c0_7, %c0_8] : memref<3x3x1x32xf32, #tpu.memory_space<vmem>>, vector<1x1x1x32xf32>
    %4 = vector.shape_cast %3 : vector<1x1x1x32xf32> to vector<32xf32>
    %5 = vector.shape_cast %4 : vector<32xf32> to vector<1x1x32xf32>
    %6 = vector.broadcast %2 : vector<4x64x1xf32> to vector<4x64x32xf32>
    %7 = vector.broadcast %5 : vector<1x1x32xf32> to vector<4x64x32xf32>
    %8 = arith.mulf %6, %7 : vector<4x64x32xf32>
    %9 = arith.addf %0, %8 : vector<4x64x32xf32>
    %c0_9 = arith.constant 0 : index
    %c0_10 = arith.constant 0 : index
    %c1 = arith.constant 1 : index
    %c0_11 = arith.constant 0 : index
    %c0_12 = arith.constant 0 : index
    %c0_13 = arith.constant 0 : index
    %10 = vector.load %arg1[%c0_9, %c0_10, %c1, %c0_11, %c0_12, %c0_13] : memref<1x2x2x5x65x1xf32, #tpu.memory_space<vmem>>, vector<1x1x1x4x64x1xf32>
    %11 = vector.shape_cast %10 : vector<1x1x1x4x64x1xf32> to vector<4x64x1xf32>
    %c0_14 = arith.constant 0 : index
    %c1_15 = arith.constant 1 : index
    %c0_16 = arith.constant 0 : index
    %c0_17 = arith.constant 0 : index
    %12 = vector.load %arg2[%c0_14, %c1_15, %c0_16, %c0_17] : memref<3x3x1x32xf32, #tpu.memory_space<vmem>>, vector<1x1x1x32xf32>
    %13 = vector.shape_cast %12 : vector<1x1x1x32xf32> to vector<32xf32>
    %14 = vector.shape_cast %13 : vector<32xf32> to vector<1x1x32xf32>
    %15 = vector.broadcast %11 : vector<4x64x1xf32> to vector<4x64x32xf32>
    %16 = vector.broadcast %14 : vector<1x1x32xf32> to vector<4x64x32xf32>
    %17 = arith.mulf %15, %16 : vector<4x64x32xf32>
    %18 = arith.addf %9, %17 : vector<4x64x32xf32>
    %c0_18 = arith.constant 0 : index
    %c0_19 = arith.constant 0 : index
    %c0_20 = arith.constant 0 : index
    %c0_21 = arith.constant 0 : index
    %c1_22 = arith.constant 1 : index
    %c0_23 = arith.constant 0 : index
    %19 = vector.load %arg1[%c0_18, %c0_19, %c0_20, %c0_21, %c1_22, %c0_23] : memref<1x2x2x5x65x1xf32, #tpu.memory_space<vmem>>, vector<1x1x1x4x64x1xf32>
    %20 = vector.shape_cast %19 : vector<1x1x1x4x64x1xf32> to vector<4x64x1xf32>
    %c0_24 = arith.constant 0 : index
    %c2 = arith.constant 2 : index
    %c0_25 = arith.constant 0 : index
    %c0_26 = arith.constant 0 : index
    %21 = vector.load %arg2[%c0_24, %c2, %c0_25, %c0_26] : memref<3x3x1x32xf32, #tpu.memory_space<vmem>>, vector<1x1x1x32xf32>
    %22 = vector.shape_cast %21 : vector<1x1x1x32xf32> to vector<32xf32>
    %23 = vector.shape_cast %22 : vector<32xf32> to vector<1x1x32xf32>
    %24 = vector.broadcast %20 : vector<4x64x1xf32> to vector<4x64x32xf32>
    %25 = vector.broadcast %23 : vector<1x1x32xf32> to vector<4x64x32xf32>
    %26 = arith.mulf %24, %25 : vector<4x64x32xf32>
    %27 = arith.addf %18, %26 : vector<4x64x32xf32>
    %c0_27 = arith.constant 0 : index
    %c1_28 = arith.constant 1 : index
    %c0_29 = arith.constant 0 : index
    %c0_30 = arith.constant 0 : index
    %c0_31 = arith.constant 0 : index
    %c0_32 = arith.constant 0 : index
    %28 = vector.load %arg1[%c0_27, %c1_28, %c0_29, %c0_30, %c0_31, %c0_32] : memref<1x2x2x5x65x1xf32, #tpu.memory_space<vmem>>, vector<1x1x1x4x64x1xf32>
    %29 = vector.shape_cast %28 : vector<1x1x1x4x64x1xf32> to vector<4x64x1xf32>
    %c1_33 = arith.constant 1 : index
    %c0_34 = arith.constant 0 : index
    %c0_35 = arith.constant 0 : index
    %c0_36 = arith.constant 0 : index
    %30 = vector.load %arg2[%c1_33, %c0_34, %c0_35, %c0_36] : memref<3x3x1x32xf32, #tpu.memory_space<vmem>>, vector<1x1x1x32xf32>
    %31 = vector.shape_cast %30 : vector<1x1x1x32xf32> to vector<32xf32>
    %32 = vector.shape_cast %31 : vector<32xf32> to vector<1x1x32xf32>
    %33 = vector.broadcast %29 : vector<4x64x1xf32> to vector<4x64x32xf32>
    %34 = vector.broadcast %32 : vector<1x1x32xf32> to vector<4x64x32xf32>
    %35 = arith.mulf %33, %34 : vector<4x64x32xf32>
    %36 = arith.addf %27, %35 : vector<4x64x32xf32>
    %c0_37 = arith.constant 0 : index
    %c1_38 = arith.constant 1 : index
    %c1_39 = arith.constant 1 : index
    %c0_40 = arith.constant 0 : index
    %c0_41 = arith.constant 0 : index
    %c0_42 = arith.constant 0 : index
    %37 = vector.load %arg1[%c0_37, %c1_38, %c1_39, %c0_40, %c0_41, %c0_42] : memref<1x2x2x5x65x1xf32, #tpu.memory_space<vmem>>, vector<1x1x1x4x64x1xf32>
    %38 = vector.shape_cast %37 : vector<1x1x1x4x64x1xf32> to vector<4x64x1xf32>
    %c1_43 = arith.constant 1 : index
    %c1_44 = arith.constant 1 : index
    %c0_45 = arith.constant 0 : index
    %c0_46 = arith.constant 0 : index
    %39 = vector.load %arg2[%c1_43, %c1_44, %c0_45, %c0_46] : memref<3x3x1x32xf32, #tpu.memory_space<vmem>>, vector<1x1x1x32xf32>
    %40 = vector.shape_cast %39 : vector<1x1x1x32xf32> to vector<32xf32>
    %41 = vector.shape_cast %40 : vector<32xf32> to vector<1x1x32xf32>
    %42 = vector.broadcast %38 : vector<4x64x1xf32> to vector<4x64x32xf32>
    %43 = vector.broadcast %41 : vector<1x1x32xf32> to vector<4x64x32xf32>
    %44 = arith.mulf %42, %43 : vector<4x64x32xf32>
    %45 = arith.addf %36, %44 : vector<4x64x32xf32>
    %c0_47 = arith.constant 0 : index
    %c1_48 = arith.constant 1 : index
    %c0_49 = arith.constant 0 : index
    %c0_50 = arith.constant 0 : index
    %c1_51 = arith.constant 1 : index
    %c0_52 = arith.constant 0 : index
    %46 = vector.load %arg1[%c0_47, %c1_48, %c0_49, %c0_50, %c1_51, %c0_52] : memref<1x2x2x5x65x1xf32, #tpu.memory_space<vmem>>, vector<1x1x1x4x64x1xf32>
    %47 = vector.shape_cast %46 : vector<1x1x1x4x64x1xf32> to vector<4x64x1xf32>
    %c1_53 = arith.constant 1 : index
    %c2_54 = arith.constant 2 : index
    %c0_55 = arith.constant 0 : index
    %c0_56 = arith.constant 0 : index
    %48 = vector.load %arg2[%c1_53, %c2_54, %c0_55, %c0_56] : memref<3x3x1x32xf32, #tpu.memory_space<vmem>>, vector<1x1x1x32xf32>
    %49 = vector.shape_cast %48 : vector<1x1x1x32xf32> to vector<32xf32>
    %50 = vector.shape_cast %49 : vector<32xf32> to vector<1x1x32xf32>
    %51 = vector.broadcast %47 : vector<4x64x1xf32> to vector<4x64x32xf32>
    %52 = vector.broadcast %50 : vector<1x1x32xf32> to vector<4x64x32xf32>
    %53 = arith.mulf %51, %52 : vector<4x64x32xf32>
    %54 = arith.addf %45, %53 : vector<4x64x32xf32>
    %c0_57 = arith.constant 0 : index
    %c0_58 = arith.constant 0 : index
    %c0_59 = arith.constant 0 : index
    %c1_60 = arith.constant 1 : index
    %c0_61 = arith.constant 0 : index
    %c0_62 = arith.constant 0 : index
    %55 = vector.load %arg1[%c0_57, %c0_58, %c0_59, %c1_60, %c0_61, %c0_62] : memref<1x2x2x5x65x1xf32, #tpu.memory_space<vmem>>, vector<1x1x1x4x64x1xf32>
    %56 = vector.shape_cast %55 : vector<1x1x1x4x64x1xf32> to vector<4x64x1xf32>
    %c2_63 = arith.constant 2 : index
    %c0_64 = arith.constant 0 : index
    %c0_65 = arith.constant 0 : index
    %c0_66 = arith.constant 0 : index
    %57 = vector.load %arg2[%c2_63, %c0_64, %c0_65, %c0_66] : memref<3x3x1x32xf32, #tpu.memory_space<vmem>>, vector<1x1x1x32xf32>
    %58 = vector.shape_cast %57 : vector<1x1x1x32xf32> to vector<32xf32>
    %59 = vector.shape_cast %58 : vector<32xf32> to vector<1x1x32xf32>
    %60 = vector.broadcast %56 : vector<4x64x1xf32> to vector<4x64x32xf32>
    %61 = vector.broadcast %59 : vector<1x1x32xf32> to vector<4x64x32xf32>
    %62 = arith.mulf %60, %61 : vector<4x64x32xf32>
    %63 = arith.addf %54, %62 : vector<4x64x32xf32>
    %c0_67 = arith.constant 0 : index
    %c0_68 = arith.constant 0 : index
    %c1_69 = arith.constant 1 : index
    %c1_70 = arith.constant 1 : index
    %c0_71 = arith.constant 0 : index
    %c0_72 = arith.constant 0 : index
    %64 = vector.load %arg1[%c0_67, %c0_68, %c1_69, %c1_70, %c0_71, %c0_72] : memref<1x2x2x5x65x1xf32, #tpu.memory_space<vmem>>, vector<1x1x1x4x64x1xf32>
    %65 = vector.shape_cast %64 : vector<1x1x1x4x64x1xf32> to vector<4x64x1xf32>
    %c2_73 = arith.constant 2 : index
    %c1_74 = arith.constant 1 : index
    %c0_75 = arith.constant 0 : index
    %c0_76 = arith.constant 0 : index
    %66 = vector.load %arg2[%c2_73, %c1_74, %c0_75, %c0_76] : memref<3x3x1x32xf32, #tpu.memory_space<vmem>>, vector<1x1x1x32xf32>
    %67 = vector.shape_cast %66 : vector<1x1x1x32xf32> to vector<32xf32>
    %68 = vector.shape_cast %67 : vector<32xf32> to vector<1x1x32xf32>
    %69 = vector.broadcast %65 : vector<4x64x1xf32> to vector<4x64x32xf32>
    %70 = vector.broadcast %68 : vector<1x1x32xf32> to vector<4x64x32xf32>
    %71 = arith.mulf %69, %70 : vector<4x64x32xf32>
    %72 = arith.addf %63, %71 : vector<4x64x32xf32>
    %c0_77 = arith.constant 0 : index
    %c0_78 = arith.constant 0 : index
    %c0_79 = arith.constant 0 : index
    %c1_80 = arith.constant 1 : index
    %c1_81 = arith.constant 1 : index
    %c0_82 = arith.constant 0 : index
    %73 = vector.load %arg1[%c0_77, %c0_78, %c0_79, %c1_80, %c1_81, %c0_82] : memref<1x2x2x5x65x1xf32, #tpu.memory_space<vmem>>, vector<1x1x1x4x64x1xf32>
    %74 = vector.shape_cast %73 : vector<1x1x1x4x64x1xf32> to vector<4x64x1xf32>
    %c2_83 = arith.constant 2 : index
    %c2_84 = arith.constant 2 : index
    %c0_85 = arith.constant 0 : index
    %c0_86 = arith.constant 0 : index
    %75 = vector.load %arg2[%c2_83, %c2_84, %c0_85, %c0_86] : memref<3x3x1x32xf32, #tpu.memory_space<vmem>>, vector<1x1x1x32xf32>
    %76 = vector.shape_cast %75 : vector<1x1x1x32xf32> to vector<32xf32>
    %77 = vector.shape_cast %76 : vector<32xf32> to vector<1x1x32xf32>
    %78 = vector.broadcast %74 : vector<4x64x1xf32> to vector<4x64x32xf32>
    %79 = vector.broadcast %77 : vector<1x1x32xf32> to vector<4x64x32xf32>
    %80 = arith.mulf %78, %79 : vector<4x64x32xf32>
    %81 = arith.addf %72, %80 : vector<4x64x32xf32>
    %c0_87 = arith.constant 0 : index
    %c0_88 = arith.constant 0 : index
    %82 = vector.load %arg3[%c0_87, %c0_88] : memref<1x32xf32, #tpu.memory_space<vmem>>, vector<1x32xf32>
    %83 = vector.shape_cast %82 : vector<1x32xf32> to vector<32xf32>
    %84 = vector.shape_cast %83 : vector<32xf32> to vector<1x1x32xf32>
    %85 = vector.broadcast %84 : vector<1x1x32xf32> to vector<4x64x32xf32>
    %86 = arith.addf %81, %85 : vector<4x64x32xf32>
    %cst_89 = arith.constant 0.000000e+00 : f32
    %87 = vector.broadcast %cst_89 : f32 to vector<4x64x32xf32>
    %88 = arith.cmpf oge, %86, %87 : vector<4x64x32xf32>
    %cst_90 = arith.constant 2.000000e-02 : f32
    %89 = vector.broadcast %cst_90 : f32 to vector<4x64x32xf32>
    %90 = arith.mulf %89, %86 : vector<4x64x32xf32>
    %91 = arith.select %88, %86, %90 : vector<4x64x32xi1>, vector<4x64x32xf32>
    %c0_91 = arith.constant 0 : index
    %c0_92 = arith.constant 0 : index
    %c0_93 = arith.constant 0 : index
    %c0_94 = arith.constant 0 : index
    %92 = vector.load %arg4[%c0_91, %c0_92, %c0_93, %c0_94] : memref<1x4x64x32xf32, #tpu.memory_space<vmem>>, vector<1x4x64x32xf32>
    %93 = vector.shape_cast %92 : vector<1x4x64x32xf32> to vector<4x64x32xf32>
    %94 = vector.shape_cast %91 : vector<4x64x32xf32> to vector<1x4x64x32xf32>
    tpu.vector_store %arg4[%c0_91, %c0_92, %c0_93, %c0_94], %94 {strides = array<i32>} : memref<1x4x64x32xf32, #tpu.memory_space<vmem>>, vector<1x4x64x32xf32>,
    return
  }
  func.func @transform_0(%arg0: i32) -> (i32, i32, i32, i32, i32, i32) {
    %c0_i32 = arith.constant 0 : i32
    %c0_i32_0 = arith.constant 0 : i32
    %c0_i32_1 = arith.constant 0 : i32
    %c0_i32_2 = arith.constant 0 : i32
    %c0_i32_3 = arith.constant 0 : i32
    %c0_i32_4 = arith.constant 0 : i32
    return %arg0, %c0_i32, %c0_i32_0, %c0_i32_1, %c0_i32_2, %c0_i32_3 : i32, i32, i32, i32, i32, i32
  }
  func.func @transform_1(%arg0: i32) -> (i32, i32, i32, i32) {
    %c0_i32 = arith.constant 0 : i32
    %c0_i32_0 = arith.constant 0 : i32
    %c0_i32_1 = arith.constant 0 : i32
    %c0_i32_2 = arith.constant 0 : i32
    %c0_i32_3 = arith.constant 0 : i32
    return %c0_i32, %c0_i32_0, %c0_i32_1, %c0_i32_2 : i32, i32, i32, i32
  }
  func.func @transform_2(%arg0: i32) -> (i32, i32) {
    %c0_i32 = arith.constant 0 : i32
    %c0_i32_0 = arith.constant 0 : i32
    %c0_i32_1 = arith.constant 0 : i32
    return %c0_i32, %c0_i32_0 : i32, i32
  }
  func.func @transform_3(%arg0: i32) -> (i32, i32, i32, i32) {
    %c0_i32 = arith.constant 0 : i32
    %c0_i32_0 = arith.constant 0 : i32
    %c0_i32_1 = arith.constant 0 : i32
    %c0_i32_2 = arith.constant 0 : i32
    return %arg0, %c0_i32, %c0_i32_0, %c0_i32_1 : i32, i32, i32, i32
  }
}

module attributes {stable_mosaic.version = 11 : i64} {
  func.func @kernel(%arg0: memref<2x2x4x3x17x32xf32, #tpu.memory_space<vmem>>, %arg1: memref<3x3x32x64xf32, #tpu.memory_space<vmem>>, %arg2: memref<1x64xf32, #tpu.memory_space<vmem>>, %arg3: memref<3x3x64x128xf32, #tpu.memory_space<vmem>>, %arg4: memref<1x128xf32, #tpu.memory_space<vmem>>, %arg5: memref<16x128xf32, #tpu.memory_space<vmem>>, %arg6: memref<1x1xf32, #tpu.memory_space<vmem>>, %arg7: memref<2x1xf32, #tpu.memory_space<vmem>>) attributes {dimension_semantics = [], scalar_prefetch = 0 : i64, scratch_operands = 0 : i64, tpu.core_type = #tpu.core_type<tc>} {
    %c0 = arith.constant 0 : index
    %c0_0 = arith.constant 0 : index
    %c0_1 = arith.constant 0 : index
    %c0_2 = arith.constant 0 : index
    %0 = vector.load %arg1[%c0, %c0_0, %c0_1, %c0_2] : memref<3x3x32x64xf32, #tpu.memory_space<vmem>>, vector<1x1x32x64xf32>
    %1 = vector.shape_cast %0 : vector<1x1x32x64xf32> to vector<32x64xf32>
    %c0_3 = arith.constant 0 : index
    %c1 = arith.constant 1 : index
    %c0_4 = arith.constant 0 : index
    %c0_5 = arith.constant 0 : index
    %2 = vector.load %arg1[%c0_3, %c1, %c0_4, %c0_5] : memref<3x3x32x64xf32, #tpu.memory_space<vmem>>, vector<1x1x32x64xf32>
    %3 = vector.shape_cast %2 : vector<1x1x32x64xf32> to vector<32x64xf32>
    %c0_6 = arith.constant 0 : index
    %c2 = arith.constant 2 : index
    %c0_7 = arith.constant 0 : index
    %c0_8 = arith.constant 0 : index
    %4 = vector.load %arg1[%c0_6, %c2, %c0_7, %c0_8] : memref<3x3x32x64xf32, #tpu.memory_space<vmem>>, vector<1x1x32x64xf32>
    %5 = vector.shape_cast %4 : vector<1x1x32x64xf32> to vector<32x64xf32>
    %c1_9 = arith.constant 1 : index
    %c0_10 = arith.constant 0 : index
    %c0_11 = arith.constant 0 : index
    %c0_12 = arith.constant 0 : index
    %6 = vector.load %arg1[%c1_9, %c0_10, %c0_11, %c0_12] : memref<3x3x32x64xf32, #tpu.memory_space<vmem>>, vector<1x1x32x64xf32>
    %7 = vector.shape_cast %6 : vector<1x1x32x64xf32> to vector<32x64xf32>
    %c1_13 = arith.constant 1 : index
    %c1_14 = arith.constant 1 : index
    %c0_15 = arith.constant 0 : index
    %c0_16 = arith.constant 0 : index
    %8 = vector.load %arg1[%c1_13, %c1_14, %c0_15, %c0_16] : memref<3x3x32x64xf32, #tpu.memory_space<vmem>>, vector<1x1x32x64xf32>
    %9 = vector.shape_cast %8 : vector<1x1x32x64xf32> to vector<32x64xf32>
    %c1_17 = arith.constant 1 : index
    %c2_18 = arith.constant 2 : index
    %c0_19 = arith.constant 0 : index
    %c0_20 = arith.constant 0 : index
    %10 = vector.load %arg1[%c1_17, %c2_18, %c0_19, %c0_20] : memref<3x3x32x64xf32, #tpu.memory_space<vmem>>, vector<1x1x32x64xf32>
    %11 = vector.shape_cast %10 : vector<1x1x32x64xf32> to vector<32x64xf32>
    %c2_21 = arith.constant 2 : index
    %c0_22 = arith.constant 0 : index
    %c0_23 = arith.constant 0 : index
    %c0_24 = arith.constant 0 : index
    %12 = vector.load %arg1[%c2_21, %c0_22, %c0_23, %c0_24] : memref<3x3x32x64xf32, #tpu.memory_space<vmem>>, vector<1x1x32x64xf32>
    %13 = vector.shape_cast %12 : vector<1x1x32x64xf32> to vector<32x64xf32>
    %c2_25 = arith.constant 2 : index
    %c1_26 = arith.constant 1 : index
    %c0_27 = arith.constant 0 : index
    %c0_28 = arith.constant 0 : index
    %14 = vector.load %arg1[%c2_25, %c1_26, %c0_27, %c0_28] : memref<3x3x32x64xf32, #tpu.memory_space<vmem>>, vector<1x1x32x64xf32>
    %15 = vector.shape_cast %14 : vector<1x1x32x64xf32> to vector<32x64xf32>
    %c2_29 = arith.constant 2 : index
    %c2_30 = arith.constant 2 : index
    %c0_31 = arith.constant 0 : index
    %c0_32 = arith.constant 0 : index
    %16 = vector.load %arg1[%c2_29, %c2_30, %c0_31, %c0_32] : memref<3x3x32x64xf32, #tpu.memory_space<vmem>>, vector<1x1x32x64xf32>
    %17 = vector.shape_cast %16 : vector<1x1x32x64xf32> to vector<32x64xf32>
    %c1_33 = arith.constant 1 : index
    %c0_34 = arith.constant 0 : index
    %c0_35 = arith.constant 0 : index
    %c0_36 = arith.constant 0 : index
    %18 = vector.load %arg3[%c1_33, %c0_34, %c0_35, %c0_36] : memref<3x3x64x128xf32, #tpu.memory_space<vmem>>, vector<1x1x64x128xf32>
    %19 = vector.shape_cast %18 : vector<1x1x64x128xf32> to vector<64x128xf32>
    %c1_37 = arith.constant 1 : index
    %c1_38 = arith.constant 1 : index
    %c0_39 = arith.constant 0 : index
    %c0_40 = arith.constant 0 : index
    %20 = vector.load %arg3[%c1_37, %c1_38, %c0_39, %c0_40] : memref<3x3x64x128xf32, #tpu.memory_space<vmem>>, vector<1x1x64x128xf32>
    %21 = vector.shape_cast %20 : vector<1x1x64x128xf32> to vector<64x128xf32>
    %c1_41 = arith.constant 1 : index
    %c2_42 = arith.constant 2 : index
    %c0_43 = arith.constant 0 : index
    %c0_44 = arith.constant 0 : index
    %22 = vector.load %arg3[%c1_41, %c2_42, %c0_43, %c0_44] : memref<3x3x64x128xf32, #tpu.memory_space<vmem>>, vector<1x1x64x128xf32>
    %23 = vector.shape_cast %22 : vector<1x1x64x128xf32> to vector<64x128xf32>
    %c2_45 = arith.constant 2 : index
    %c0_46 = arith.constant 0 : index
    %c0_47 = arith.constant 0 : index
    %c0_48 = arith.constant 0 : index
    %24 = vector.load %arg3[%c2_45, %c0_46, %c0_47, %c0_48] : memref<3x3x64x128xf32, #tpu.memory_space<vmem>>, vector<1x1x64x128xf32>
    %25 = vector.shape_cast %24 : vector<1x1x64x128xf32> to vector<64x128xf32>
    %c2_49 = arith.constant 2 : index
    %c1_50 = arith.constant 1 : index
    %c0_51 = arith.constant 0 : index
    %c0_52 = arith.constant 0 : index
    %26 = vector.load %arg3[%c2_49, %c1_50, %c0_51, %c0_52] : memref<3x3x64x128xf32, #tpu.memory_space<vmem>>, vector<1x1x64x128xf32>
    %27 = vector.shape_cast %26 : vector<1x1x64x128xf32> to vector<64x128xf32>
    %c2_53 = arith.constant 2 : index
    %c2_54 = arith.constant 2 : index
    %c0_55 = arith.constant 0 : index
    %c0_56 = arith.constant 0 : index
    %28 = vector.load %arg3[%c2_53, %c2_54, %c0_55, %c0_56] : memref<3x3x64x128xf32, #tpu.memory_space<vmem>>, vector<1x1x64x128xf32>
    %29 = vector.shape_cast %28 : vector<1x1x64x128xf32> to vector<64x128xf32>
    %c0_57 = arith.constant 0 : index
    %c0_58 = arith.constant 0 : index
    %30 = vector.load %arg2[%c0_57, %c0_58] : memref<1x64xf32, #tpu.memory_space<vmem>>, vector<1x64xf32>
    %c0_59 = arith.constant 0 : index
    %c0_60 = arith.constant 0 : index
    %31 = vector.load %arg4[%c0_59, %c0_60] : memref<1x128xf32, #tpu.memory_space<vmem>>, vector<1x128xf32>
    %cst = arith.constant 0.000000e+00 : f32
    %32 = vector.broadcast %cst : f32 to vector<32x64xf32>
    %c0_61 = arith.constant 0 : index
    %c0_62 = arith.constant 0 : index
    %c0_63 = arith.constant 0 : index
    %c0_64 = arith.constant 0 : index
    %c0_65 = arith.constant 0 : index
    %c0_66 = arith.constant 0 : index
    %33 = vector.load %arg0[%c0_61, %c0_62, %c0_63, %c0_64, %c0_65, %c0_66] : memref<2x2x4x3x17x32xf32, #tpu.memory_space<vmem>>, vector<2x1x1x1x16x32xf32>
    %34 = vector.shape_cast %33 : vector<2x1x1x1x16x32xf32> to vector<2x16x32xf32>
    %35 = vector.shape_cast %34 : vector<2x16x32xf32> to vector<32x32xf32>
    %cst_67 = arith.constant dense<0.000000e+00> : vector<32x64xf32>
    %36 = tpu.matmul %35, %1, %cst_67 {dimension_numbers = #tpu.dot_dimension_numbers<[1], [0], [0], [1], [0, 0, 1, 1], [], []>} : vector<32x32xf32>, vector<32x64xf32>, vector<32x64xf32> -> vector<32x64xf32>
    %37 = arith.addf %32, %36 : vector<32x64xf32>
    %c0_68 = arith.constant 0 : index
    %c0_69 = arith.constant 0 : index
    %c1_70 = arith.constant 1 : index
    %c0_71 = arith.constant 0 : index
    %c0_72 = arith.constant 0 : index
    %c0_73 = arith.constant 0 : index
    %38 = vector.load %arg0[%c0_68, %c0_69, %c1_70, %c0_71, %c0_72, %c0_73] : memref<2x2x4x3x17x32xf32, #tpu.memory_space<vmem>>, vector<2x1x1x1x16x32xf32>
    %39 = vector.shape_cast %38 : vector<2x1x1x1x16x32xf32> to vector<2x16x32xf32>
    %40 = vector.shape_cast %39 : vector<2x16x32xf32> to vector<32x32xf32>
    %cst_74 = arith.constant dense<0.000000e+00> : vector<32x64xf32>
    %41 = tpu.matmul %40, %3, %cst_74 {dimension_numbers = #tpu.dot_dimension_numbers<[1], [0], [0], [1], [0, 0, 1, 1], [], []>} : vector<32x32xf32>, vector<32x64xf32>, vector<32x64xf32> -> vector<32x64xf32>
    %42 = arith.addf %37, %41 : vector<32x64xf32>
    %c0_75 = arith.constant 0 : index
    %c0_76 = arith.constant 0 : index
    %c2_77 = arith.constant 2 : index
    %c0_78 = arith.constant 0 : index
    %c0_79 = arith.constant 0 : index
    %c0_80 = arith.constant 0 : index
    %43 = vector.load %arg0[%c0_75, %c0_76, %c2_77, %c0_78, %c0_79, %c0_80] : memref<2x2x4x3x17x32xf32, #tpu.memory_space<vmem>>, vector<2x1x1x1x16x32xf32>
    %44 = vector.shape_cast %43 : vector<2x1x1x1x16x32xf32> to vector<2x16x32xf32>
    %45 = vector.shape_cast %44 : vector<2x16x32xf32> to vector<32x32xf32>
    %cst_81 = arith.constant dense<0.000000e+00> : vector<32x64xf32>
    %46 = tpu.matmul %45, %5, %cst_81 {dimension_numbers = #tpu.dot_dimension_numbers<[1], [0], [0], [1], [0, 0, 1, 1], [], []>} : vector<32x32xf32>, vector<32x64xf32>, vector<32x64xf32> -> vector<32x64xf32>
    %47 = arith.addf %42, %46 : vector<32x64xf32>
    %c0_82 = arith.constant 0 : index
    %c1_83 = arith.constant 1 : index
    %c0_84 = arith.constant 0 : index
    %c0_85 = arith.constant 0 : index
    %c0_86 = arith.constant 0 : index
    %c0_87 = arith.constant 0 : index
    %48 = vector.load %arg0[%c0_82, %c1_83, %c0_84, %c0_85, %c0_86, %c0_87] : memref<2x2x4x3x17x32xf32, #tpu.memory_space<vmem>>, vector<2x1x1x1x16x32xf32>
    %49 = vector.shape_cast %48 : vector<2x1x1x1x16x32xf32> to vector<2x16x32xf32>
    %50 = vector.shape_cast %49 : vector<2x16x32xf32> to vector<32x32xf32>
    %cst_88 = arith.constant dense<0.000000e+00> : vector<32x64xf32>
    %51 = tpu.matmul %50, %7, %cst_88 {dimension_numbers = #tpu.dot_dimension_numbers<[1], [0], [0], [1], [0, 0, 1, 1], [], []>} : vector<32x32xf32>, vector<32x64xf32>, vector<32x64xf32> -> vector<32x64xf32>
    %52 = arith.addf %47, %51 : vector<32x64xf32>
    %c0_89 = arith.constant 0 : index
    %c1_90 = arith.constant 1 : index
    %c1_91 = arith.constant 1 : index
    %c0_92 = arith.constant 0 : index
    %c0_93 = arith.constant 0 : index
    %c0_94 = arith.constant 0 : index
    %53 = vector.load %arg0[%c0_89, %c1_90, %c1_91, %c0_92, %c0_93, %c0_94] : memref<2x2x4x3x17x32xf32, #tpu.memory_space<vmem>>, vector<2x1x1x1x16x32xf32>
    %54 = vector.shape_cast %53 : vector<2x1x1x1x16x32xf32> to vector<2x16x32xf32>
    %55 = vector.shape_cast %54 : vector<2x16x32xf32> to vector<32x32xf32>
    %cst_95 = arith.constant dense<0.000000e+00> : vector<32x64xf32>
    %56 = tpu.matmul %55, %9, %cst_95 {dimension_numbers = #tpu.dot_dimension_numbers<[1], [0], [0], [1], [0, 0, 1, 1], [], []>} : vector<32x32xf32>, vector<32x64xf32>, vector<32x64xf32> -> vector<32x64xf32>
    %57 = arith.addf %52, %56 : vector<32x64xf32>
    %c0_96 = arith.constant 0 : index
    %c1_97 = arith.constant 1 : index
    %c2_98 = arith.constant 2 : index
    %c0_99 = arith.constant 0 : index
    %c0_100 = arith.constant 0 : index
    %c0_101 = arith.constant 0 : index
    %58 = vector.load %arg0[%c0_96, %c1_97, %c2_98, %c0_99, %c0_100, %c0_101] : memref<2x2x4x3x17x32xf32, #tpu.memory_space<vmem>>, vector<2x1x1x1x16x32xf32>
    %59 = vector.shape_cast %58 : vector<2x1x1x1x16x32xf32> to vector<2x16x32xf32>
    %60 = vector.shape_cast %59 : vector<2x16x32xf32> to vector<32x32xf32>
    %cst_102 = arith.constant dense<0.000000e+00> : vector<32x64xf32>
    %61 = tpu.matmul %60, %11, %cst_102 {dimension_numbers = #tpu.dot_dimension_numbers<[1], [0], [0], [1], [0, 0, 1, 1], [], []>} : vector<32x32xf32>, vector<32x64xf32>, vector<32x64xf32> -> vector<32x64xf32>
    %62 = arith.addf %57, %61 : vector<32x64xf32>
    %c0_103 = arith.constant 0 : index
    %c0_104 = arith.constant 0 : index
    %c0_105 = arith.constant 0 : index
    %c1_106 = arith.constant 1 : index
    %c0_107 = arith.constant 0 : index
    %c0_108 = arith.constant 0 : index
    %63 = vector.load %arg0[%c0_103, %c0_104, %c0_105, %c1_106, %c0_107, %c0_108] : memref<2x2x4x3x17x32xf32, #tpu.memory_space<vmem>>, vector<2x1x1x1x16x32xf32>
    %64 = vector.shape_cast %63 : vector<2x1x1x1x16x32xf32> to vector<2x16x32xf32>
    %65 = vector.shape_cast %64 : vector<2x16x32xf32> to vector<32x32xf32>
    %cst_109 = arith.constant dense<0.000000e+00> : vector<32x64xf32>
    %66 = tpu.matmul %65, %13, %cst_109 {dimension_numbers = #tpu.dot_dimension_numbers<[1], [0], [0], [1], [0, 0, 1, 1], [], []>} : vector<32x32xf32>, vector<32x64xf32>, vector<32x64xf32> -> vector<32x64xf32>
    %67 = arith.addf %62, %66 : vector<32x64xf32>
    %c0_110 = arith.constant 0 : index
    %c0_111 = arith.constant 0 : index
    %c1_112 = arith.constant 1 : index
    %c1_113 = arith.constant 1 : index
    %c0_114 = arith.constant 0 : index
    %c0_115 = arith.constant 0 : index
    %68 = vector.load %arg0[%c0_110, %c0_111, %c1_112, %c1_113, %c0_114, %c0_115] : memref<2x2x4x3x17x32xf32, #tpu.memory_space<vmem>>, vector<2x1x1x1x16x32xf32>
    %69 = vector.shape_cast %68 : vector<2x1x1x1x16x32xf32> to vector<2x16x32xf32>
    %70 = vector.shape_cast %69 : vector<2x16x32xf32> to vector<32x32xf32>
    %cst_116 = arith.constant dense<0.000000e+00> : vector<32x64xf32>
    %71 = tpu.matmul %70, %15, %cst_116 {dimension_numbers = #tpu.dot_dimension_numbers<[1], [0], [0], [1], [0, 0, 1, 1], [], []>} : vector<32x32xf32>, vector<32x64xf32>, vector<32x64xf32> -> vector<32x64xf32>
    %72 = arith.addf %67, %71 : vector<32x64xf32>
    %c0_117 = arith.constant 0 : index
    %c0_118 = arith.constant 0 : index
    %c2_119 = arith.constant 2 : index
    %c1_120 = arith.constant 1 : index
    %c0_121 = arith.constant 0 : index
    %c0_122 = arith.constant 0 : index
    %73 = vector.load %arg0[%c0_117, %c0_118, %c2_119, %c1_120, %c0_121, %c0_122] : memref<2x2x4x3x17x32xf32, #tpu.memory_space<vmem>>, vector<2x1x1x1x16x32xf32>
    %74 = vector.shape_cast %73 : vector<2x1x1x1x16x32xf32> to vector<2x16x32xf32>
    %75 = vector.shape_cast %74 : vector<2x16x32xf32> to vector<32x32xf32>
    %cst_123 = arith.constant dense<0.000000e+00> : vector<32x64xf32>
    %76 = tpu.matmul %75, %17, %cst_123 {dimension_numbers = #tpu.dot_dimension_numbers<[1], [0], [0], [1], [0, 0, 1, 1], [], []>} : vector<32x32xf32>, vector<32x64xf32>, vector<32x64xf32> -> vector<32x64xf32>
    %77 = arith.addf %72, %76 : vector<32x64xf32>
    %78 = vector.broadcast %30 : vector<1x64xf32> to vector<32x64xf32>
    %79 = arith.addf %77, %78 : vector<32x64xf32>
    %cst_124 = arith.constant 0.000000e+00 : f32
    %80 = vector.broadcast %cst_124 : f32 to vector<32x64xf32>
    %81 = arith.cmpf oge, %79, %80 : vector<32x64xf32>
    %cst_125 = arith.constant 2.000000e-02 : f32
    %82 = vector.broadcast %cst_125 : f32 to vector<32x64xf32>
    %83 = arith.mulf %82, %79 : vector<32x64xf32>
    %84 = arith.select %81, %79, %83 : vector<32x64xi1>, vector<32x64xf32>
    %85 = vector.shape_cast %84 : vector<32x64xf32> to vector<2x16x64xf32>
    %cst_126 = arith.constant 0.000000e+00 : f32
    %86 = vector.broadcast %cst_126 : f32 to vector<32x64xf32>
    %c0_127 = arith.constant 0 : index
    %c0_128 = arith.constant 0 : index
    %c0_129 = arith.constant 0 : index
    %c1_130 = arith.constant 1 : index
    %c0_131 = arith.constant 0 : index
    %c0_132 = arith.constant 0 : index
    %87 = vector.load %arg0[%c0_127, %c0_128, %c0_129, %c1_130, %c0_131, %c0_132] : memref<2x2x4x3x17x32xf32, #tpu.memory_space<vmem>>, vector<2x1x1x1x16x32xf32>
    %88 = vector.shape_cast %87 : vector<2x1x1x1x16x32xf32> to vector<2x16x32xf32>
    %89 = vector.shape_cast %88 : vector<2x16x32xf32> to vector<32x32xf32>
    %cst_133 = arith.constant dense<0.000000e+00> : vector<32x64xf32>
    %90 = tpu.matmul %89, %1, %cst_133 {dimension_numbers = #tpu.dot_dimension_numbers<[1], [0], [0], [1], [0, 0, 1, 1], [], []>} : vector<32x32xf32>, vector<32x64xf32>, vector<32x64xf32> -> vector<32x64xf32>
    %91 = arith.addf %86, %90 : vector<32x64xf32>
    %c0_134 = arith.constant 0 : index
    %c0_135 = arith.constant 0 : index
    %c1_136 = arith.constant 1 : index
    %c1_137 = arith.constant 1 : index
    %c0_138 = arith.constant 0 : index
    %c0_139 = arith.constant 0 : index
    %92 = vector.load %arg0[%c0_134, %c0_135, %c1_136, %c1_137, %c0_138, %c0_139] : memref<2x2x4x3x17x32xf32, #tpu.memory_space<vmem>>, vector<2x1x1x1x16x32xf32>
    %93 = vector.shape_cast %92 : vector<2x1x1x1x16x32xf32> to vector<2x16x32xf32>
    %94 = vector.shape_cast %93 : vector<2x16x32xf32> to vector<32x32xf32>
    %cst_140 = arith.constant dense<0.000000e+00> : vector<32x64xf32>
    %95 = tpu.matmul %94, %3, %cst_140 {dimension_numbers = #tpu.dot_dimension_numbers<[1], [0], [0], [1], [0, 0, 1, 1], [], []>} : vector<32x32xf32>, vector<32x64xf32>, vector<32x64xf32> -> vector<32x64xf32>
    %96 = arith.addf %91, %95 : vector<32x64xf32>
    %c0_141 = arith.constant 0 : index
    %c0_142 = arith.constant 0 : index
    %c2_143 = arith.constant 2 : index
    %c1_144 = arith.constant 1 : index
    %c0_145 = arith.constant 0 : index
    %c0_146 = arith.constant 0 : index
    %97 = vector.load %arg0[%c0_141, %c0_142, %c2_143, %c1_144, %c0_145, %c0_146] : memref<2x2x4x3x17x32xf32, #tpu.memory_space<vmem>>, vector<2x1x1x1x16x32xf32>
    %98 = vector.shape_cast %97 : vector<2x1x1x1x16x32xf32> to vector<2x16x32xf32>
    %99 = vector.shape_cast %98 : vector<2x16x32xf32> to vector<32x32xf32>
    %cst_147 = arith.constant dense<0.000000e+00> : vector<32x64xf32>
    %100 = tpu.matmul %99, %5, %cst_147 {dimension_numbers = #tpu.dot_dimension_numbers<[1], [0], [0], [1], [0, 0, 1, 1], [], []>} : vector<32x32xf32>, vector<32x64xf32>, vector<32x64xf32> -> vector<32x64xf32>
    %101 = arith.addf %96, %100 : vector<32x64xf32>
    %c0_148 = arith.constant 0 : index
    %c1_149 = arith.constant 1 : index
    %c0_150 = arith.constant 0 : index
    %c1_151 = arith.constant 1 : index
    %c0_152 = arith.constant 0 : index
    %c0_153 = arith.constant 0 : index
    %102 = vector.load %arg0[%c0_148, %c1_149, %c0_150, %c1_151, %c0_152, %c0_153] : memref<2x2x4x3x17x32xf32, #tpu.memory_space<vmem>>, vector<2x1x1x1x16x32xf32>
    %103 = vector.shape_cast %102 : vector<2x1x1x1x16x32xf32> to vector<2x16x32xf32>
    %104 = vector.shape_cast %103 : vector<2x16x32xf32> to vector<32x32xf32>
    %cst_154 = arith.constant dense<0.000000e+00> : vector<32x64xf32>
    %105 = tpu.matmul %104, %7, %cst_154 {dimension_numbers = #tpu.dot_dimension_numbers<[1], [0], [0], [1], [0, 0, 1, 1], [], []>} : vector<32x32xf32>, vector<32x64xf32>, vector<32x64xf32> -> vector<32x64xf32>
    %106 = arith.addf %101, %105 : vector<32x64xf32>
    %c0_155 = arith.constant 0 : index
    %c1_156 = arith.constant 1 : index
    %c1_157 = arith.constant 1 : index
    %c1_158 = arith.constant 1 : index
    %c0_159 = arith.constant 0 : index
    %c0_160 = arith.constant 0 : index
    %107 = vector.load %arg0[%c0_155, %c1_156, %c1_157, %c1_158, %c0_159, %c0_160] : memref<2x2x4x3x17x32xf32, #tpu.memory_space<vmem>>, vector<2x1x1x1x16x32xf32>
    %108 = vector.shape_cast %107 : vector<2x1x1x1x16x32xf32> to vector<2x16x32xf32>
    %109 = vector.shape_cast %108 : vector<2x16x32xf32> to vector<32x32xf32>
    %cst_161 = arith.constant dense<0.000000e+00> : vector<32x64xf32>
    %110 = tpu.matmul %109, %9, %cst_161 {dimension_numbers = #tpu.dot_dimension_numbers<[1], [0], [0], [1], [0, 0, 1, 1], [], []>} : vector<32x32xf32>, vector<32x64xf32>, vector<32x64xf32> -> vector<32x64xf32>
    %111 = arith.addf %106, %110 : vector<32x64xf32>
    %c0_162 = arith.constant 0 : index
    %c1_163 = arith.constant 1 : index
    %c2_164 = arith.constant 2 : index
    %c1_165 = arith.constant 1 : index
    %c0_166 = arith.constant 0 : index
    %c0_167 = arith.constant 0 : index
    %112 = vector.load %arg0[%c0_162, %c1_163, %c2_164, %c1_165, %c0_166, %c0_167] : memref<2x2x4x3x17x32xf32, #tpu.memory_space<vmem>>, vector<2x1x1x1x16x32xf32>
    %113 = vector.shape_cast %112 : vector<2x1x1x1x16x32xf32> to vector<2x16x32xf32>
    %114 = vector.shape_cast %113 : vector<2x16x32xf32> to vector<32x32xf32>
    %cst_168 = arith.constant dense<0.000000e+00> : vector<32x64xf32>
    %115 = tpu.matmul %114, %11, %cst_168 {dimension_numbers = #tpu.dot_dimension_numbers<[1], [0], [0], [1], [0, 0, 1, 1], [], []>} : vector<32x32xf32>, vector<32x64xf32>, vector<32x64xf32> -> vector<32x64xf32>
    %116 = arith.addf %111, %115 : vector<32x64xf32>
    %c0_169 = arith.constant 0 : index
    %c0_170 = arith.constant 0 : index
    %c0_171 = arith.constant 0 : index
    %c2_172 = arith.constant 2 : index
    %c0_173 = arith.constant 0 : index
    %c0_174 = arith.constant 0 : index
    %117 = vector.load %arg0[%c0_169, %c0_170, %c0_171, %c2_172, %c0_173, %c0_174] : memref<2x2x4x3x17x32xf32, #tpu.memory_space<vmem>>, vector<2x1x1x1x16x32xf32>
    %118 = vector.shape_cast %117 : vector<2x1x1x1x16x32xf32> to vector<2x16x32xf32>
    %119 = vector.shape_cast %118 : vector<2x16x32xf32> to vector<32x32xf32>
    %cst_175 = arith.constant dense<0.000000e+00> : vector<32x64xf32>
    %120 = tpu.matmul %119, %13, %cst_175 {dimension_numbers = #tpu.dot_dimension_numbers<[1], [0], [0], [1], [0, 0, 1, 1], [], []>} : vector<32x32xf32>, vector<32x64xf32>, vector<32x64xf32> -> vector<32x64xf32>
    %121 = arith.addf %116, %120 : vector<32x64xf32>
    %c0_176 = arith.constant 0 : index
    %c0_177 = arith.constant 0 : index
    %c1_178 = arith.constant 1 : index
    %c2_179 = arith.constant 2 : index
    %c0_180 = arith.constant 0 : index
    %c0_181 = arith.constant 0 : index
    %122 = vector.load %arg0[%c0_176, %c0_177, %c1_178, %c2_179, %c0_180, %c0_181] : memref<2x2x4x3x17x32xf32, #tpu.memory_space<vmem>>, vector<2x1x1x1x16x32xf32>
    %123 = vector.shape_cast %122 : vector<2x1x1x1x16x32xf32> to vector<2x16x32xf32>
    %124 = vector.shape_cast %123 : vector<2x16x32xf32> to vector<32x32xf32>
    %cst_182 = arith.constant dense<0.000000e+00> : vector<32x64xf32>
    %125 = tpu.matmul %124, %15, %cst_182 {dimension_numbers = #tpu.dot_dimension_numbers<[1], [0], [0], [1], [0, 0, 1, 1], [], []>} : vector<32x32xf32>, vector<32x64xf32>, vector<32x64xf32> -> vector<32x64xf32>
    %126 = arith.addf %121, %125 : vector<32x64xf32>
    %c0_183 = arith.constant 0 : index
    %c0_184 = arith.constant 0 : index
    %c2_185 = arith.constant 2 : index
    %c2_186 = arith.constant 2 : index
    %c0_187 = arith.constant 0 : index
    %c0_188 = arith.constant 0 : index
    %127 = vector.load %arg0[%c0_183, %c0_184, %c2_185, %c2_186, %c0_187, %c0_188] : memref<2x2x4x3x17x32xf32, #tpu.memory_space<vmem>>, vector<2x1x1x1x16x32xf32>
    %128 = vector.shape_cast %127 : vector<2x1x1x1x16x32xf32> to vector<2x16x32xf32>
    %129 = vector.shape_cast %128 : vector<2x16x32xf32> to vector<32x32xf32>
    %cst_189 = arith.constant dense<0.000000e+00> : vector<32x64xf32>
    %130 = tpu.matmul %129, %17, %cst_189 {dimension_numbers = #tpu.dot_dimension_numbers<[1], [0], [0], [1], [0, 0, 1, 1], [], []>} : vector<32x32xf32>, vector<32x64xf32>, vector<32x64xf32> -> vector<32x64xf32>
    %131 = arith.addf %126, %130 : vector<32x64xf32>
    %132 = vector.broadcast %30 : vector<1x64xf32> to vector<32x64xf32>
    %133 = arith.addf %131, %132 : vector<32x64xf32>
    %cst_190 = arith.constant 0.000000e+00 : f32
    %134 = vector.broadcast %cst_190 : f32 to vector<32x64xf32>
    %135 = arith.cmpf oge, %133, %134 : vector<32x64xf32>
    %cst_191 = arith.constant 2.000000e-02 : f32
    %136 = vector.broadcast %cst_191 : f32 to vector<32x64xf32>
    %137 = arith.mulf %136, %133 : vector<32x64xf32>
    %138 = arith.select %135, %133, %137 : vector<32x64xi1>, vector<32x64xf32>
    %139 = vector.shape_cast %138 : vector<32x64xf32> to vector<2x16x64xf32>
    %cst_192 = arith.constant 0.000000e+00 : f32
    %140 = vector.broadcast %cst_192 : f32 to vector<32x64xf32>
    %c0_193 = arith.constant 0 : index
    %c0_194 = arith.constant 0 : index
    %c2_195 = arith.constant 2 : index
    %c0_196 = arith.constant 0 : index
    %c0_197 = arith.constant 0 : index
    %c0_198 = arith.constant 0 : index
    %141 = vector.load %arg0[%c0_193, %c0_194, %c2_195, %c0_196, %c0_197, %c0_198] : memref<2x2x4x3x17x32xf32, #tpu.memory_space<vmem>>, vector<2x1x1x1x16x32xf32>
    %142 = vector.shape_cast %141 : vector<2x1x1x1x16x32xf32> to vector<2x16x32xf32>
    %143 = vector.shape_cast %142 : vector<2x16x32xf32> to vector<32x32xf32>
    %cst_199 = arith.constant dense<0.000000e+00> : vector<32x64xf32>
    %144 = tpu.matmul %143, %1, %cst_199 {dimension_numbers = #tpu.dot_dimension_numbers<[1], [0], [0], [1], [0, 0, 1, 1], [], []>} : vector<32x32xf32>, vector<32x64xf32>, vector<32x64xf32> -> vector<32x64xf32>
    %145 = arith.addf %140, %144 : vector<32x64xf32>
    %c0_200 = arith.constant 0 : index
    %c0_201 = arith.constant 0 : index
    %c3 = arith.constant 3 : index
    %c0_202 = arith.constant 0 : index
    %c0_203 = arith.constant 0 : index
    %c0_204 = arith.constant 0 : index
    %146 = vector.load %arg0[%c0_200, %c0_201, %c3, %c0_202, %c0_203, %c0_204] : memref<2x2x4x3x17x32xf32, #tpu.memory_space<vmem>>, vector<2x1x1x1x16x32xf32>
    %147 = vector.shape_cast %146 : vector<2x1x1x1x16x32xf32> to vector<2x16x32xf32>
    %148 = vector.shape_cast %147 : vector<2x16x32xf32> to vector<32x32xf32>
    %cst_205 = arith.constant dense<0.000000e+00> : vector<32x64xf32>
    %149 = tpu.matmul %148, %3, %cst_205 {dimension_numbers = #tpu.dot_dimension_numbers<[1], [0], [0], [1], [0, 0, 1, 1], [], []>} : vector<32x32xf32>, vector<32x64xf32>, vector<32x64xf32> -> vector<32x64xf32>
    %150 = arith.addf %145, %149 : vector<32x64xf32>
    %c0_206 = arith.constant 0 : index
    %c0_207 = arith.constant 0 : index
    %c0_208 = arith.constant 0 : index
    %c0_209 = arith.constant 0 : index
    %c1_210 = arith.constant 1 : index
    %c0_211 = arith.constant 0 : index
    %151 = vector.load %arg0[%c0_206, %c0_207, %c0_208, %c0_209, %c1_210, %c0_211] : memref<2x2x4x3x17x32xf32, #tpu.memory_space<vmem>>, vector<2x1x1x1x16x32xf32>
    %152 = vector.shape_cast %151 : vector<2x1x1x1x16x32xf32> to vector<2x16x32xf32>
    %153 = vector.shape_cast %152 : vector<2x16x32xf32> to vector<32x32xf32>
    %cst_212 = arith.constant dense<0.000000e+00> : vector<32x64xf32>
    %154 = tpu.matmul %153, %5, %cst_212 {dimension_numbers = #tpu.dot_dimension_numbers<[1], [0], [0], [1], [0, 0, 1, 1], [], []>} : vector<32x32xf32>, vector<32x64xf32>, vector<32x64xf32> -> vector<32x64xf32>
    %155 = arith.addf %150, %154 : vector<32x64xf32>
    %c0_213 = arith.constant 0 : index
    %c1_214 = arith.constant 1 : index
    %c2_215 = arith.constant 2 : index
    %c0_216 = arith.constant 0 : index
    %c0_217 = arith.constant 0 : index
    %c0_218 = arith.constant 0 : index
    %156 = vector.load %arg0[%c0_213, %c1_214, %c2_215, %c0_216, %c0_217, %c0_218] : memref<2x2x4x3x17x32xf32, #tpu.memory_space<vmem>>, vector<2x1x1x1x16x32xf32>
    %157 = vector.shape_cast %156 : vector<2x1x1x1x16x32xf32> to vector<2x16x32xf32>
    %158 = vector.shape_cast %157 : vector<2x16x32xf32> to vector<32x32xf32>
    %cst_219 = arith.constant dense<0.000000e+00> : vector<32x64xf32>
    %159 = tpu.matmul %158, %7, %cst_219 {dimension_numbers = #tpu.dot_dimension_numbers<[1], [0], [0], [1], [0, 0, 1, 1], [], []>} : vector<32x32xf32>, vector<32x64xf32>, vector<32x64xf32> -> vector<32x64xf32>
    %160 = arith.addf %155, %159 : vector<32x64xf32>
    %c0_220 = arith.constant 0 : index
    %c1_221 = arith.constant 1 : index
    %c3_222 = arith.constant 3 : index
    %c0_223 = arith.constant 0 : index
    %c0_224 = arith.constant 0 : index
    %c0_225 = arith.constant 0 : index
    %161 = vector.load %arg0[%c0_220, %c1_221, %c3_222, %c0_223, %c0_224, %c0_225] : memref<2x2x4x3x17x32xf32, #tpu.memory_space<vmem>>, vector<2x1x1x1x16x32xf32>
    %162 = vector.shape_cast %161 : vector<2x1x1x1x16x32xf32> to vector<2x16x32xf32>
    %163 = vector.shape_cast %162 : vector<2x16x32xf32> to vector<32x32xf32>
    %cst_226 = arith.constant dense<0.000000e+00> : vector<32x64xf32>
    %164 = tpu.matmul %163, %9, %cst_226 {dimension_numbers = #tpu.dot_dimension_numbers<[1], [0], [0], [1], [0, 0, 1, 1], [], []>} : vector<32x32xf32>, vector<32x64xf32>, vector<32x64xf32> -> vector<32x64xf32>
    %165 = arith.addf %160, %164 : vector<32x64xf32>
    %c0_227 = arith.constant 0 : index
    %c1_228 = arith.constant 1 : index
    %c0_229 = arith.constant 0 : index
    %c0_230 = arith.constant 0 : index
    %c1_231 = arith.constant 1 : index
    %c0_232 = arith.constant 0 : index
    %166 = vector.load %arg0[%c0_227, %c1_228, %c0_229, %c0_230, %c1_231, %c0_232] : memref<2x2x4x3x17x32xf32, #tpu.memory_space<vmem>>, vector<2x1x1x1x16x32xf32>
    %167 = vector.shape_cast %166 : vector<2x1x1x1x16x32xf32> to vector<2x16x32xf32>
    %168 = vector.shape_cast %167 : vector<2x16x32xf32> to vector<32x32xf32>
    %cst_233 = arith.constant dense<0.000000e+00> : vector<32x64xf32>
    %169 = tpu.matmul %168, %11, %cst_233 {dimension_numbers = #tpu.dot_dimension_numbers<[1], [0], [0], [1], [0, 0, 1, 1], [], []>} : vector<32x32xf32>, vector<32x64xf32>, vector<32x64xf32> -> vector<32x64xf32>
    %170 = arith.addf %165, %169 : vector<32x64xf32>
    %c0_234 = arith.constant 0 : index
    %c0_235 = arith.constant 0 : index
    %c2_236 = arith.constant 2 : index
    %c1_237 = arith.constant 1 : index
    %c0_238 = arith.constant 0 : index
    %c0_239 = arith.constant 0 : index
    %171 = vector.load %arg0[%c0_234, %c0_235, %c2_236, %c1_237, %c0_238, %c0_239] : memref<2x2x4x3x17x32xf32, #tpu.memory_space<vmem>>, vector<2x1x1x1x16x32xf32>
    %172 = vector.shape_cast %171 : vector<2x1x1x1x16x32xf32> to vector<2x16x32xf32>
    %173 = vector.shape_cast %172 : vector<2x16x32xf32> to vector<32x32xf32>
    %cst_240 = arith.constant dense<0.000000e+00> : vector<32x64xf32>
    %174 = tpu.matmul %173, %13, %cst_240 {dimension_numbers = #tpu.dot_dimension_numbers<[1], [0], [0], [1], [0, 0, 1, 1], [], []>} : vector<32x32xf32>, vector<32x64xf32>, vector<32x64xf32> -> vector<32x64xf32>
    %175 = arith.addf %170, %174 : vector<32x64xf32>
    %c0_241 = arith.constant 0 : index
    %c0_242 = arith.constant 0 : index
    %c3_243 = arith.constant 3 : index
    %c1_244 = arith.constant 1 : index
    %c0_245 = arith.constant 0 : index
    %c0_246 = arith.constant 0 : index
    %176 = vector.load %arg0[%c0_241, %c0_242, %c3_243, %c1_244, %c0_245, %c0_246] : memref<2x2x4x3x17x32xf32, #tpu.memory_space<vmem>>, vector<2x1x1x1x16x32xf32>
    %177 = vector.shape_cast %176 : vector<2x1x1x1x16x32xf32> to vector<2x16x32xf32>
    %178 = vector.shape_cast %177 : vector<2x16x32xf32> to vector<32x32xf32>
    %cst_247 = arith.constant dense<0.000000e+00> : vector<32x64xf32>
    %179 = tpu.matmul %178, %15, %cst_247 {dimension_numbers = #tpu.dot_dimension_numbers<[1], [0], [0], [1], [0, 0, 1, 1], [], []>} : vector<32x32xf32>, vector<32x64xf32>, vector<32x64xf32> -> vector<32x64xf32>
    %180 = arith.addf %175, %179 : vector<32x64xf32>
    %c0_248 = arith.constant 0 : index
    %c0_249 = arith.constant 0 : index
    %c0_250 = arith.constant 0 : index
    %c1_251 = arith.constant 1 : index
    %c1_252 = arith.constant 1 : index
    %c0_253 = arith.constant 0 : index
    %181 = vector.load %arg0[%c0_248, %c0_249, %c0_250, %c1_251, %c1_252, %c0_253] : memref<2x2x4x3x17x32xf32, #tpu.memory_space<vmem>>, vector<2x1x1x1x16x32xf32>
    %182 = vector.shape_cast %181 : vector<2x1x1x1x16x32xf32> to vector<2x16x32xf32>
    %183 = vector.shape_cast %182 : vector<2x16x32xf32> to vector<32x32xf32>
    %cst_254 = arith.constant dense<0.000000e+00> : vector<32x64xf32>
    %184 = tpu.matmul %183, %17, %cst_254 {dimension_numbers = #tpu.dot_dimension_numbers<[1], [0], [0], [1], [0, 0, 1, 1], [], []>} : vector<32x32xf32>, vector<32x64xf32>, vector<32x64xf32> -> vector<32x64xf32>
    %185 = arith.addf %180, %184 : vector<32x64xf32>
    %186 = vector.broadcast %30 : vector<1x64xf32> to vector<32x64xf32>
    %187 = arith.addf %185, %186 : vector<32x64xf32>
    %cst_255 = arith.constant 0.000000e+00 : f32
    %188 = vector.broadcast %cst_255 : f32 to vector<32x64xf32>
    %189 = arith.cmpf oge, %187, %188 : vector<32x64xf32>
    %cst_256 = arith.constant 2.000000e-02 : f32
    %190 = vector.broadcast %cst_256 : f32 to vector<32x64xf32>
    %191 = arith.mulf %190, %187 : vector<32x64xf32>
    %192 = arith.select %189, %187, %191 : vector<32x64xi1>, vector<32x64xf32>
    %193 = vector.shape_cast %192 : vector<32x64xf32> to vector<2x16x64xf32>
    %cst_257 = arith.constant 0.000000e+00 : f32
    %194 = vector.broadcast %cst_257 : f32 to vector<32x64xf32>
    %c0_258 = arith.constant 0 : index
    %c0_259 = arith.constant 0 : index
    %c2_260 = arith.constant 2 : index
    %c1_261 = arith.constant 1 : index
    %c0_262 = arith.constant 0 : index
    %c0_263 = arith.constant 0 : index
    %195 = vector.load %arg0[%c0_258, %c0_259, %c2_260, %c1_261, %c0_262, %c0_263] : memref<2x2x4x3x17x32xf32, #tpu.memory_space<vmem>>, vector<2x1x1x1x16x32xf32>
    %196 = vector.shape_cast %195 : vector<2x1x1x1x16x32xf32> to vector<2x16x32xf32>
    %197 = vector.shape_cast %196 : vector<2x16x32xf32> to vector<32x32xf32>
    %cst_264 = arith.constant dense<0.000000e+00> : vector<32x64xf32>
    %198 = tpu.matmul %197, %1, %cst_264 {dimension_numbers = #tpu.dot_dimension_numbers<[1], [0], [0], [1], [0, 0, 1, 1], [], []>} : vector<32x32xf32>, vector<32x64xf32>, vector<32x64xf32> -> vector<32x64xf32>
    %199 = arith.addf %194, %198 : vector<32x64xf32>
    %c0_265 = arith.constant 0 : index
    %c0_266 = arith.constant 0 : index
    %c3_267 = arith.constant 3 : index
    %c1_268 = arith.constant 1 : index
    %c0_269 = arith.constant 0 : index
    %c0_270 = arith.constant 0 : index
    %200 = vector.load %arg0[%c0_265, %c0_266, %c3_267, %c1_268, %c0_269, %c0_270] : memref<2x2x4x3x17x32xf32, #tpu.memory_space<vmem>>, vector<2x1x1x1x16x32xf32>
    %201 = vector.shape_cast %200 : vector<2x1x1x1x16x32xf32> to vector<2x16x32xf32>
    %202 = vector.shape_cast %201 : vector<2x16x32xf32> to vector<32x32xf32>
    %cst_271 = arith.constant dense<0.000000e+00> : vector<32x64xf32>
    %203 = tpu.matmul %202, %3, %cst_271 {dimension_numbers = #tpu.dot_dimension_numbers<[1], [0], [0], [1], [0, 0, 1, 1], [], []>} : vector<32x32xf32>, vector<32x64xf32>, vector<32x64xf32> -> vector<32x64xf32>
    %204 = arith.addf %199, %203 : vector<32x64xf32>
    %c0_272 = arith.constant 0 : index
    %c0_273 = arith.constant 0 : index
    %c0_274 = arith.constant 0 : index
    %c1_275 = arith.constant 1 : index
    %c1_276 = arith.constant 1 : index
    %c0_277 = arith.constant 0 : index
    %205 = vector.load %arg0[%c0_272, %c0_273, %c0_274, %c1_275, %c1_276, %c0_277] : memref<2x2x4x3x17x32xf32, #tpu.memory_space<vmem>>, vector<2x1x1x1x16x32xf32>
    %206 = vector.shape_cast %205 : vector<2x1x1x1x16x32xf32> to vector<2x16x32xf32>
    %207 = vector.shape_cast %206 : vector<2x16x32xf32> to vector<32x32xf32>
    %cst_278 = arith.constant dense<0.000000e+00> : vector<32x64xf32>
    %208 = tpu.matmul %207, %5, %cst_278 {dimension_numbers = #tpu.dot_dimension_numbers<[1], [0], [0], [1], [0, 0, 1, 1], [], []>} : vector<32x32xf32>, vector<32x64xf32>, vector<32x64xf32> -> vector<32x64xf32>
    %209 = arith.addf %204, %208 : vector<32x64xf32>
    %c0_279 = arith.constant 0 : index
    %c1_280 = arith.constant 1 : index
    %c2_281 = arith.constant 2 : index
    %c1_282 = arith.constant 1 : index
    %c0_283 = arith.constant 0 : index
    %c0_284 = arith.constant 0 : index
    %210 = vector.load %arg0[%c0_279, %c1_280, %c2_281, %c1_282, %c0_283, %c0_284] : memref<2x2x4x3x17x32xf32, #tpu.memory_space<vmem>>, vector<2x1x1x1x16x32xf32>
    %211 = vector.shape_cast %210 : vector<2x1x1x1x16x32xf32> to vector<2x16x32xf32>
    %212 = vector.shape_cast %211 : vector<2x16x32xf32> to vector<32x32xf32>
    %cst_285 = arith.constant dense<0.000000e+00> : vector<32x64xf32>
    %213 = tpu.matmul %212, %7, %cst_285 {dimension_numbers = #tpu.dot_dimension_numbers<[1], [0], [0], [1], [0, 0, 1, 1], [], []>} : vector<32x32xf32>, vector<32x64xf32>, vector<32x64xf32> -> vector<32x64xf32>
    %214 = arith.addf %209, %213 : vector<32x64xf32>
    %c0_286 = arith.constant 0 : index
    %c1_287 = arith.constant 1 : index
    %c3_288 = arith.constant 3 : index
    %c1_289 = arith.constant 1 : index
    %c0_290 = arith.constant 0 : index
    %c0_291 = arith.constant 0 : index
    %215 = vector.load %arg0[%c0_286, %c1_287, %c3_288, %c1_289, %c0_290, %c0_291] : memref<2x2x4x3x17x32xf32, #tpu.memory_space<vmem>>, vector<2x1x1x1x16x32xf32>
    %216 = vector.shape_cast %215 : vector<2x1x1x1x16x32xf32> to vector<2x16x32xf32>
    %217 = vector.shape_cast %216 : vector<2x16x32xf32> to vector<32x32xf32>
    %cst_292 = arith.constant dense<0.000000e+00> : vector<32x64xf32>
    %218 = tpu.matmul %217, %9, %cst_292 {dimension_numbers = #tpu.dot_dimension_numbers<[1], [0], [0], [1], [0, 0, 1, 1], [], []>} : vector<32x32xf32>, vector<32x64xf32>, vector<32x64xf32> -> vector<32x64xf32>
    %219 = arith.addf %214, %218 : vector<32x64xf32>
    %c0_293 = arith.constant 0 : index
    %c1_294 = arith.constant 1 : index
    %c0_295 = arith.constant 0 : index
    %c1_296 = arith.constant 1 : index
    %c1_297 = arith.constant 1 : index
    %c0_298 = arith.constant 0 : index
    %220 = vector.load %arg0[%c0_293, %c1_294, %c0_295, %c1_296, %c1_297, %c0_298] : memref<2x2x4x3x17x32xf32, #tpu.memory_space<vmem>>, vector<2x1x1x1x16x32xf32>
    %221 = vector.shape_cast %220 : vector<2x1x1x1x16x32xf32> to vector<2x16x32xf32>
    %222 = vector.shape_cast %221 : vector<2x16x32xf32> to vector<32x32xf32>
    %cst_299 = arith.constant dense<0.000000e+00> : vector<32x64xf32>
    %223 = tpu.matmul %222, %11, %cst_299 {dimension_numbers = #tpu.dot_dimension_numbers<[1], [0], [0], [1], [0, 0, 1, 1], [], []>} : vector<32x32xf32>, vector<32x64xf32>, vector<32x64xf32> -> vector<32x64xf32>
    %224 = arith.addf %219, %223 : vector<32x64xf32>
    %c0_300 = arith.constant 0 : index
    %c0_301 = arith.constant 0 : index
    %c2_302 = arith.constant 2 : index
    %c2_303 = arith.constant 2 : index
    %c0_304 = arith.constant 0 : index
    %c0_305 = arith.constant 0 : index
    %225 = vector.load %arg0[%c0_300, %c0_301, %c2_302, %c2_303, %c0_304, %c0_305] : memref<2x2x4x3x17x32xf32, #tpu.memory_space<vmem>>, vector<2x1x1x1x16x32xf32>
    %226 = vector.shape_cast %225 : vector<2x1x1x1x16x32xf32> to vector<2x16x32xf32>
    %227 = vector.shape_cast %226 : vector<2x16x32xf32> to vector<32x32xf32>
    %cst_306 = arith.constant dense<0.000000e+00> : vector<32x64xf32>
    %228 = tpu.matmul %227, %13, %cst_306 {dimension_numbers = #tpu.dot_dimension_numbers<[1], [0], [0], [1], [0, 0, 1, 1], [], []>} : vector<32x32xf32>, vector<32x64xf32>, vector<32x64xf32> -> vector<32x64xf32>
    %229 = arith.addf %224, %228 : vector<32x64xf32>
    %c0_307 = arith.constant 0 : index
    %c0_308 = arith.constant 0 : index
    %c3_309 = arith.constant 3 : index
    %c2_310 = arith.constant 2 : index
    %c0_311 = arith.constant 0 : index
    %c0_312 = arith.constant 0 : index
    %230 = vector.load %arg0[%c0_307, %c0_308, %c3_309, %c2_310, %c0_311, %c0_312] : memref<2x2x4x3x17x32xf32, #tpu.memory_space<vmem>>, vector<2x1x1x1x16x32xf32>
    %231 = vector.shape_cast %230 : vector<2x1x1x1x16x32xf32> to vector<2x16x32xf32>
    %232 = vector.shape_cast %231 : vector<2x16x32xf32> to vector<32x32xf32>
    %cst_313 = arith.constant dense<0.000000e+00> : vector<32x64xf32>
    %233 = tpu.matmul %232, %15, %cst_313 {dimension_numbers = #tpu.dot_dimension_numbers<[1], [0], [0], [1], [0, 0, 1, 1], [], []>} : vector<32x32xf32>, vector<32x64xf32>, vector<32x64xf32> -> vector<32x64xf32>
    %234 = arith.addf %229, %233 : vector<32x64xf32>
    %c0_314 = arith.constant 0 : index
    %c0_315 = arith.constant 0 : index
    %c0_316 = arith.constant 0 : index
    %c2_317 = arith.constant 2 : index
    %c1_318 = arith.constant 1 : index
    %c0_319 = arith.constant 0 : index
    %235 = vector.load %arg0[%c0_314, %c0_315, %c0_316, %c2_317, %c1_318, %c0_319] : memref<2x2x4x3x17x32xf32, #tpu.memory_space<vmem>>, vector<2x1x1x1x16x32xf32>
    %236 = vector.shape_cast %235 : vector<2x1x1x1x16x32xf32> to vector<2x16x32xf32>
    %237 = vector.shape_cast %236 : vector<2x16x32xf32> to vector<32x32xf32>
    %cst_320 = arith.constant dense<0.000000e+00> : vector<32x64xf32>
    %238 = tpu.matmul %237, %17, %cst_320 {dimension_numbers = #tpu.dot_dimension_numbers<[1], [0], [0], [1], [0, 0, 1, 1], [], []>} : vector<32x32xf32>, vector<32x64xf32>, vector<32x64xf32> -> vector<32x64xf32>
    %239 = arith.addf %234, %238 : vector<32x64xf32>
    %240 = vector.broadcast %30 : vector<1x64xf32> to vector<32x64xf32>
    %241 = arith.addf %239, %240 : vector<32x64xf32>
    %cst_321 = arith.constant 0.000000e+00 : f32
    %242 = vector.broadcast %cst_321 : f32 to vector<32x64xf32>
    %243 = arith.cmpf oge, %241, %242 : vector<32x64xf32>
    %cst_322 = arith.constant 2.000000e-02 : f32
    %244 = vector.broadcast %cst_322 : f32 to vector<32x64xf32>
    %245 = arith.mulf %244, %241 : vector<32x64xf32>
    %246 = arith.select %243, %241, %245 : vector<32x64xi1>, vector<32x64xf32>
    %247 = vector.shape_cast %246 : vector<32x64xf32> to vector<2x16x64xf32>
    %cst_323 = arith.constant 0.000000e+00 : f32
    %248 = vector.broadcast %cst_323 : f32 to vector<2x16x128xf32>
    %cst_324 = arith.constant 0.000000e+00 : f32
    %249 = vector.broadcast %cst_324 : f32 to vector<2x15x128xf32>
    %250 = vector.shape_cast %85 : vector<2x16x64xf32> to vector<32x64xf32>
    %cst_325 = arith.constant dense<0.000000e+00> : vector<32x128xf32>
    %251 = tpu.matmul %250, %21, %cst_325 {dimension_numbers = #tpu.dot_dimension_numbers<[1], [0], [0], [1], [0, 0, 1, 1], [], []>} : vector<32x64xf32>, vector<64x128xf32>, vector<32x128xf32> -> vector<32x128xf32>
    %252 = vector.shape_cast %251 : vector<32x128xf32> to vector<2x16x128xf32>
    %253 = arith.addf %248, %252 : vector<2x16x128xf32>
    %254 = vector.shape_cast %193 : vector<2x16x64xf32> to vector<32x64xf32>
    %cst_326 = arith.constant dense<0.000000e+00> : vector<32x128xf32>
    %255 = tpu.matmul %254, %23, %cst_326 {dimension_numbers = #tpu.dot_dimension_numbers<[1], [0], [0], [1], [0, 0, 1, 1], [], []>} : vector<32x64xf32>, vector<64x128xf32>, vector<32x128xf32> -> vector<32x128xf32>
    %256 = vector.shape_cast %255 : vector<32x128xf32> to vector<2x16x128xf32>
    %257 = arith.addf %253, %256 : vector<2x16x128xf32>
    %258 = vector.extract_strided_slice %193 {offsets = [0, 0, 0], sizes = [2, 15, 64], strides = [1, 1, 1]} : vector<2x16x64xf32> to vector<2x15x64xf32>
    %259 = vector.shape_cast %258 : vector<2x15x64xf32> to vector<30x64xf32>
    %cst_327 = arith.constant dense<0.000000e+00> : vector<30x128xf32>
    %260 = tpu.matmul %259, %19, %cst_327 {dimension_numbers = #tpu.dot_dimension_numbers<[1], [0], [0], [1], [0, 0, 1, 1], [], []>} : vector<30x64xf32>, vector<64x128xf32>, vector<30x128xf32> -> vector<30x128xf32>
    %261 = vector.shape_cast %260 : vector<30x128xf32> to vector<2x15x128xf32>
    %262 = arith.addf %249, %261 : vector<2x15x128xf32>
    %263 = vector.shape_cast %139 : vector<2x16x64xf32> to vector<32x64xf32>
    %cst_328 = arith.constant dense<0.000000e+00> : vector<32x128xf32>
    %264 = tpu.matmul %263, %27, %cst_328 {dimension_numbers = #tpu.dot_dimension_numbers<[1], [0], [0], [1], [0, 0, 1, 1], [], []>} : vector<32x64xf32>, vector<64x128xf32>, vector<32x128xf32> -> vector<32x128xf32>
    %265 = vector.shape_cast %264 : vector<32x128xf32> to vector<2x16x128xf32>
    %266 = arith.addf %257, %265 : vector<2x16x128xf32>
    %267 = vector.shape_cast %247 : vector<2x16x64xf32> to vector<32x64xf32>
    %cst_329 = arith.constant dense<0.000000e+00> : vector<32x128xf32>
    %268 = tpu.matmul %267, %29, %cst_329 {dimension_numbers = #tpu.dot_dimension_numbers<[1], [0], [0], [1], [0, 0, 1, 1], [], []>} : vector<32x64xf32>, vector<64x128xf32>, vector<32x128xf32> -> vector<32x128xf32>
    %269 = vector.shape_cast %268 : vector<32x128xf32> to vector<2x16x128xf32>
    %270 = arith.addf %266, %269 : vector<2x16x128xf32>
    %271 = vector.extract_strided_slice %247 {offsets = [0, 0, 0], sizes = [2, 15, 64], strides = [1, 1, 1]} : vector<2x16x64xf32> to vector<2x15x64xf32>
    %272 = vector.shape_cast %271 : vector<2x15x64xf32> to vector<30x64xf32>
    %cst_330 = arith.constant dense<0.000000e+00> : vector<30x128xf32>
    %273 = tpu.matmul %272, %25, %cst_330 {dimension_numbers = #tpu.dot_dimension_numbers<[1], [0], [0], [1], [0, 0, 1, 1], [], []>} : vector<30x64xf32>, vector<64x128xf32>, vector<30x128xf32> -> vector<30x128xf32>
    %274 = vector.shape_cast %273 : vector<30x128xf32> to vector<2x15x128xf32>
    %275 = arith.addf %262, %274 : vector<2x15x128xf32>
    %276 = vector.extract_strided_slice %270 {offsets = [0, 0, 0], sizes = [2, 1, 128], strides = [1, 1, 1]} : vector<2x16x128xf32> to vector<2x1x128xf32>
    %277 = vector.shape_cast %31 : vector<1x128xf32> to vector<1x1x128xf32>
    %278 = vector.broadcast %277 : vector<1x1x128xf32> to vector<2x1x128xf32>
    %279 = arith.addf %276, %278 : vector<2x1x128xf32>
    %cst_331 = arith.constant 0.000000e+00 : f32
    %280 = vector.broadcast %cst_331 : f32 to vector<2x1x128xf32>
    %281 = arith.cmpf oge, %279, %280 : vector<2x1x128xf32>
    %cst_332 = arith.constant 2.000000e-02 : f32
    %282 = vector.broadcast %cst_332 : f32 to vector<2x1x128xf32>
    %283 = arith.mulf %282, %279 : vector<2x1x128xf32>
    %284 = arith.select %281, %279, %283 : vector<2x1x128xi1>, vector<2x1x128xf32>
    %285 = vector.extract_strided_slice %270 {offsets = [0, 1, 0], sizes = [2, 15, 128], strides = [1, 1, 1]} : vector<2x16x128xf32> to vector<2x15x128xf32>
    %286 = arith.addf %285, %275 : vector<2x15x128xf32>
    %287 = vector.shape_cast %31 : vector<1x128xf32> to vector<1x1x128xf32>
    %288 = vector.broadcast %287 : vector<1x1x128xf32> to vector<2x15x128xf32>
    %289 = arith.addf %286, %288 : vector<2x15x128xf32>
    %cst_333 = arith.constant 0.000000e+00 : f32
    %290 = vector.broadcast %cst_333 : f32 to vector<2x15x128xf32>
    %291 = arith.cmpf oge, %289, %290 : vector<2x15x128xf32>
    %cst_334 = arith.constant 2.000000e-02 : f32
    %292 = vector.broadcast %cst_334 : f32 to vector<2x15x128xf32>
    %293 = arith.mulf %292, %289 : vector<2x15x128xf32>
    %294 = arith.select %291, %289, %293 : vector<2x15x128xi1>, vector<2x15x128xf32>
    %c0_335 = arith.constant 0 : index
    %c0_336 = arith.constant 0 : index
    %295 = vector.load %arg5[%c0_335, %c0_336] : memref<16x128xf32, #tpu.memory_space<vmem>>, vector<1x128xf32>
    %296 = vector.shape_cast %295 : vector<1x128xf32> to vector<1x1x128xf32>
    %297 = vector.broadcast %296 : vector<1x1x128xf32> to vector<2x1x128xf32>
    %298 = arith.mulf %284, %297 : vector<2x1x128xf32>
    %cst_337 = arith.constant dense<0.000000e+00> : vector<2x1xf32>
    %299 = vector.multi_reduction <add>, %298, %cst_337 [2] : vector<2x1x128xf32> to vector<2x1xf32>
    %cst_338 = arith.constant dense<0.000000e+00> : vector<2xf32>
    %300 = vector.multi_reduction <add>, %299, %cst_338 [1] : vector<2x1xf32> to vector<2xf32>
    %301 = vector.shape_cast %300 : vector<2xf32> to vector<2x1xf32>
    %c1_339 = arith.constant 1 : index
    %c0_340 = arith.constant 0 : index
    %302 = vector.load %arg5[%c1_339, %c0_340] : memref<16x128xf32, #tpu.memory_space<vmem>>, vector<15x128xf32>
    %303 = vector.shape_cast %302 : vector<15x128xf32> to vector<1x15x128xf32>
    %304 = vector.broadcast %303 : vector<1x15x128xf32> to vector<2x15x128xf32>
    %305 = arith.mulf %294, %304 : vector<2x15x128xf32>
    %cst_341 = arith.constant dense<0.000000e+00> : vector<2x15xf32>
    %306 = vector.multi_reduction <add>, %305, %cst_341 [2] : vector<2x15x128xf32> to vector<2x15xf32>
    %cst_342 = arith.constant dense<0.000000e+00> : vector<2xf32>
    %307 = vector.multi_reduction <add>, %306, %cst_342 [1] : vector<2x15xf32> to vector<2xf32>
    %308 = vector.shape_cast %307 : vector<2xf32> to vector<2x1xf32>
    %309 = arith.addf %301, %308 : vector<2x1xf32>
    %c0_343 = arith.constant 0 : index
    %c0_344 = arith.constant 0 : index
    %310 = vector.load %arg6[%c0_343, %c0_344] : memref<1x1xf32, #tpu.memory_space<vmem>>, vector<1x1xf32>
    %311 = vector.broadcast %310 : vector<1x1xf32> to vector<2x1xf32>
    %312 = arith.addf %309, %311 : vector<2x1xf32>
    %cst_345 = arith.constant 0.000000e+00 : f32
    %313 = vector.broadcast %cst_345 : f32 to vector<2x1xf32>
    %314 = arith.subf %313, %312 : vector<2x1xf32>
    %315 = math.exp %314 : vector<2x1xf32>
    %cst_346 = arith.constant 1.000000e+00 : f32
    %316 = vector.broadcast %cst_346 : f32 to vector<2x1xf32>
    %317 = arith.addf %316, %315 : vector<2x1xf32>
    %cst_347 = arith.constant 1.000000e+00 : f32
    %318 = vector.broadcast %cst_347 : f32 to vector<2x1xf32>
    %319 = arith.divf %318, %317 : vector<2x1xf32>
    %c0_348 = arith.constant 0 : index
    %c0_349 = arith.constant 0 : index
    %320 = vector.load %arg7[%c0_348, %c0_349] : memref<2x1xf32, #tpu.memory_space<vmem>>, vector<2x1xf32>
    tpu.vector_store %arg7[%c0_348, %c0_349], %319 {strides = array<i32>} : memref<2x1xf32, #tpu.memory_space<vmem>>, vector<2x1xf32>,
    return
  }
}

</mosaic_0001>

<bundles_post_ra>
// kernel: discriminator1_forward.2
= control target key start
LH: loop header
LB: loop body
LE: loop exit
PB: predicated region body
PF: predicated region fallthrough
CT: control target
= control target key end

     0   :  { %s3068_s12 = smov 0   ;;  %s5170_s0 = inlined_call_operand.vmem [shape: f32[2,2,2,5,65,1], index: 0, kind: input, shape index: {}]   ;;  %s5171_s1 = inlined_call_operand.vmem [shape: f32[3,3,1,32], index: 1, kind: input, shape index: {}]   ;;  %s5172_s2 = inlined_call_operand.vmem [shape: f32[1,32], index: 2, kind: input, shape index: {}]   ;;  %s5173_s3 = inlined_call_operand.vmem [shape: f32[2,4,64,32], index: 3, kind: output, shape index: {}]  }
   0x1 LB: > { %s2774_s13 = sadd.s32 4294967295, %s3045_s12   ;;  %p2778_p0 = scmp.ge.s32.totalorder %s3045_s12, 1  ;;  %s3045_s12 = sphi %s3068_s12, %s13_s12  }
   0x2   : > { %p137_p1 = scmp.lt.s32.totalorder %s3045_s12, 3 }
   0x4   : > { %p138_p2 = pnand %p2778_p0, %p137_p1 }
   0x6   : > { %141 = sbr.rel (%p138_p2) target bundleno = 731 (0x2db), region = 32 }
   0xd   : > { %p161_p3 = scmp.lt.s32.totalorder %s2774_s13, 1  ;;  %v3047_v0 = vmov 0   ;;  %vm2686_vm0 = vcmask 261120  }
   0xe   : > { %3038 = vset.pattern.permute.xlu1 %v3047_v0  ;;  %3037 = vset.pattern.permute.xlu0 %v3047_v0 }
   0xf   : > { %s5551_s13 = smov (!%p161_p3, %s2774_s13), 1 }
  0x10   : > { %s3027_s14 = smul.u32 1440, %s5551_s13  ;;  %s3026_s11 = sshll.u32 %s5551_s13, 8 }
  0x11   : > { %s4963_s15 = scalar_lea.vmem %s5173_s3, %s3026_s11 }
  0x12   : > { %s3082_s17 = scalar_lea.vmem %s5170_s0, %s3027_s14 }
  0x13   : > { %v173_v1 = vld [vmem:[%s3082_s17 + $0x10] sm:$0xff]  ;;  %v171_v2 = vld [vmem:[%s3082_s17] sm:$0xff]  ;;  %v174_v3 = vld [vmem:[%s3082_s17 + $0x18] sm:$0xff] }
  0x14   : > { %216 = vperm.xlu1 %3038, %v173_v1   ;;  %206 = vperm.xlu0 %3037, %v171_v2   ;;  %v172_v4 = vld [vmem:[%s3082_s17 + $0x8] sm:$0xff]  ;;  %v175_v6 = vld [vmem:[%s3082_s17 + $0x20] sm:$0xff]  ;;  %v178_v7 = vld [vmem:[%s3082_s17 + $0x38] sm:$0xff] }
  0x15   : > { %v176_v5 = vld [vmem:[%s3082_s17 + $0x28] sm:$0xff]  ;;  %v177_v8 = vld [vmem:[%s3082_s17 + $0x30] sm:$0xff]  ;;  %v182_v11 = vld [vmem:[%s3082_s17 + $0x60] sm:$0xff] }
  0x16   : > { %v180_v9 = vld [vmem:[%s3082_s17 + $0x50] sm:$0xff]  ;;  %v179_v10 = vld [vmem:[%s3082_s17 + $0x48] sm:$0xff]  ;;  %v181_v12 = vld [vmem:[%s3082_s17 + $0x58] sm:$0xff] }
  0x17   : > { %v184_v13 = vld [vmem:[%s3082_s17 + $0x70] sm:$0xff]  ;;  %v183_v14 = vld [vmem:[%s3082_s17 + $0x68] sm:$0xff]  ;;  %v186_v15 = vld [vmem:[%s3082_s17 + $0x80] sm:$0xff] }
  0x18   : > { %221 = vperm.xlu1 %3038, %v174_v3   ;;  %211 = vperm.xlu0 %3037, %v172_v4   ;;  %v185_v16 = vld [vmem:[%s3082_s17 + $0x78] sm:$0xff]  ;;  %v187_v18 = vld [vmem:[%s3082_s17 + $0x90] sm:$0xff]  ;;  %v190_v19 = vld [vmem:[%s3082_s17 + $0xa8] sm:$0xff] }
  0x19   : > { %v188_v17 = vld [vmem:[%s3082_s17 + $0x98] sm:$0xff]  ;;  %v189_v20 = vld [vmem:[%s3082_s17 + $0xa0] sm:$0xff]  ;;  %v191_v22 = vld [vmem:[%s3082_s17 + $0xb0] sm:$0xff] }
  0x1a   : > { %v192_v21 = vld [vmem:[%s3082_s17 + $0xb8] sm:$0xff]  ;;  %v194_v23 = vld [vmem:[%s3082_s17 + $0xc8] sm:$0xff]  ;;  %v193_v24 = vld [vmem:[%s3082_s17 + $0xc0] sm:$0xff] }
  0x1b   : > { %v196_v25 = vld [vmem:[%s3082_s17 + $0xe0] sm:$0xff]  ;;  %v195_v26 = vld [vmem:[%s3082_s17 + $0xd8] sm:$0xff]  ;;  %v198_v27 = vld [vmem:[%s3082_s17 + $0xf0] sm:$0xff] }
  0x1c   : > { %231 = vperm.xlu1 %3038, %v176_v5   ;;  %226 = vperm.xlu0 %3037, %v175_v6   ;;  %v197_v28 = vld [vmem:[%s3082_s17 + $0xe8] sm:$0xff]  ;;  %v200_v29 = vld [vmem:[%s3082_s17 + $0x100] sm:$0xff]  ;;  %v199_v30 = vld [vmem:[%s3082_s17 + $0xf8] sm:$0xff] }
  0x1d   : > { %v202_v31 = vld [vmem:[%s3082_s17 + $0x110] sm:$0xff]  ;;  %v201_v32 = vld [vmem:[%s3082_s17 + $0x108] sm:$0xff]  ;;  %v2786_v35 = vld [vmem:[%s3082_s17 + $0x180] sm:$0xff] }
  0x1e   : > { %v2784_v33 = vld [vmem:[%s3082_s17 + $0x170] sm:$0xff]  ;;  %v2783_v34 = vld [vmem:[%s3082_s17 + $0x168] sm:$0xff]  ;;  %v2785_v36 = vld [vmem:[%s3082_s17 + $0x178] sm:$0xff] }
  0x1f   : > { %v2788_v37 = vld [vmem:[%s3082_s17 + $0x190] sm:$0xff]  ;;  %v2787_v38 = vld [vmem:[%s3082_s17 + $0x188] sm:$0xff]  ;;  %v2790_v39 = vld [vmem:[%s3082_s17 + $0x1a0] sm:$0xff] }
  0x20   : > { %241 = vperm.xlu1 %3038, %v178_v7   ;;  %236 = vperm.xlu0 %3037, %v177_v8   ;;  %v2789_v40 = vld [vmem:[%s3082_s17 + $0x198] sm:$0xff]  ;;  %v2791_v42 = vld [vmem:[%s3082_s17 + $0x1b0] sm:$0xff]  ;;  %v2794_v43 = vld [vmem:[%s3082_s17 + $0x1c8] sm:$0xff] }
  0x21   : > { %v2792_v41 = vld [vmem:[%s3082_s17 + $0x1b8] sm:$0xff]  ;;  %v2793_v44 = vld [vmem:[%s3082_s17 + $0x1c0] sm:$0xff]  ;;  %v2795_v46 = vld [vmem:[%s3082_s17 + $0x1d0] sm:$0xff] }
  0x22   : > { %v2796_v45 = vld [vmem:[%s3082_s17 + $0x1d8] sm:$0xff]  ;;  %v2798_v47 = vld [vmem:[%s3082_s17 + $0x1e8] sm:$0xff]  ;;  %v2797_v48 = vld [vmem:[%s3082_s17 + $0x1e0] sm:$0xff] }
  0x23   : > { %v2800_v49 = vld [vmem:[%s3082_s17 + $0x200] sm:$0xff]  ;;  %v2799_v50 = vld [vmem:[%s3082_s17 + $0x1f8] sm:$0xff]  ;;  %v2802_v51 = vld [vmem:[%s3082_s17 + $0x210] sm:$0xff] }
  0x24   : > { %251 = vperm.xlu1 %3038, %v180_v9   ;;  %246 = vperm.xlu0 %3037, %v179_v10   ;;  %v2801_v52 = vld [vmem:[%s3082_s17 + $0x208] sm:$0xff]  ;;  %v2804_v53 = vld [vmem:[%s3082_s17 + $0x220] sm:$0xff]  ;;  %v2803_v54 = vld [vmem:[%s3082_s17 + $0x218] sm:$0xff] }
  0x25   : > { %v2806_v55 = vld [vmem:[%s3082_s17 + $0x230] sm:$0xff]  ;;  %v2805_v56 = vld [vmem:[%s3082_s17 + $0x228] sm:$0xff]  ;;  %v2807_v58 = vld [vmem:[%s3082_s17 + $0x240] sm:$0xff] }
  0x26   : > { %v2808_v57 = vld [vmem:[%s3082_s17 + $0x248] sm:$0xff]  ;;  %v2810_v59 = vld [vmem:[%s3082_s17 + $0x258] sm:$0xff]  ;;  %v2809_v60 = vld [vmem:[%s3082_s17 + $0x250] sm:$0xff] }
  0x27   : > { %v2812_v61 = vld [vmem:[%s3082_s17 + $0x268] sm:$0xff]  ;;  %v2811_v62 = vld [vmem:[%s3082_s17 + $0x260] sm:$0xff]  ;;  %v2814_v63 = vld [vmem:[%s3082_s17 + $0x278] sm:$0xff] }
  0x28   : > { %261 = vperm.xlu1 %3038, %v182_v11   ;;  %256 = vperm.xlu0 %3037, %v181_v12   ;;  %v2813_v0 = vld [vmem:[%s3082_s17 + $0x270] sm:$0xff]  ;;  %v699_v2 = vld [vmem:[%s3082_s17 + $0x1] sm:$0xff]  ;;  %v702_v5 = vld [vmem:[%s3082_s17 + $0x19] sm:$0xff] }
  0x29   : > { %v700_v1 = vld [vmem:[%s3082_s17 + $0x9] sm:$0xff]  ;;  %v701_v6 = vld [vmem:[%s3082_s17 + $0x11] sm:$0xff]  ;;  %v703_v10 = vld [vmem:[%s3082_s17 + $0x21] sm:$0xff] }
  0x2a   : > { %v704_v9 = vld [vmem:[%s3082_s17 + $0x29] sm:$0xff] }
  0x2c   : > { %271 = vperm.xlu1 %3038, %v184_v13   ;;  %266 = vperm.xlu0 %3037, %v183_v14   ;;  %v706_v13 = vld [vmem:[%s3082_s17 + $0x39] sm:$0xff]  ;;  %v705_v14 = vld [vmem:[%s3082_s17 + $0x31] sm:$0xff] }
  0x30   : > { %281 = vperm.xlu1 %3038, %v186_v15   ;;  %276 = vperm.xlu0 %3037, %v185_v16  }
  0x34   : > { %291 = vperm.xlu1 %3038, %v188_v17   ;;  %286 = vperm.xlu0 %3037, %v187_v18   ;;  %v708_v17 = vld [vmem:[%s3082_s17 + $0x51] sm:$0xff]  ;;  %v707_v18 = vld [vmem:[%s3082_s17 + $0x49] sm:$0xff] }
  0x38   : > { %301 = vperm.xlu1 %3038, %v190_v19   ;;  %296 = vperm.xlu0 %3037, %v189_v20  }
  0x3c   : > { %311 = vperm.xlu1 %3038, %v192_v21   ;;  %306 = vperm.xlu0 %3037, %v191_v22   ;;  %v710_v21 = vld [vmem:[%s3082_s17 + $0x61] sm:$0xff]  ;;  %v709_v22 = vld [vmem:[%s3082_s17 + $0x59] sm:$0xff] }
  0x40   : > { %321 = vperm.xlu1 %3038, %v194_v23   ;;  %316 = vperm.xlu0 %3037, %v193_v24  }
  0x44   : > { %331 = vperm.xlu1 %3038, %v196_v25   ;;  %326 = vperm.xlu0 %3037, %v195_v26   ;;  %v712_v25 = vld [vmem:[%s3082_s17 + $0x71] sm:$0xff]  ;;  %v711_v26 = vld [vmem:[%s3082_s17 + $0x69] sm:$0xff] }
  0x48   : > { %341 = vperm.xlu1 %3038, %v198_v27   ;;  %336 = vperm.xlu0 %3037, %v197_v28  }
  0x4c   : > { %351 = vperm.xlu1 %3038, %v200_v29   ;;  %346 = vperm.xlu0 %3037, %v199_v30   ;;  %v714_v29 = vld [vmem:[%s3082_s17 + $0x81] sm:$0xff]  ;;  %v713_v30 = vld [vmem:[%s3082_s17 + $0x79] sm:$0xff] }
  0x50   : > { %361 = vperm.xlu1 %3038, %v202_v31   ;;  %356 = vperm.xlu0 %3037, %v201_v32  }
  0x54   : > { %476 = vperm.xlu1 %3038, %v2784_v33   ;;  %471 = vperm.xlu0 %3037, %v2783_v34   ;;  %v716_v33 = vld [vmem:[%s3082_s17 + $0x99] sm:$0xff]  ;;  %v715_v34 = vld [vmem:[%s3082_s17 + $0x91] sm:$0xff] }
  0x58   : > { %486 = vperm.xlu1 %3038, %v2786_v35   ;;  %481 = vperm.xlu0 %3037, %v2785_v36  }
  0x5c   : > { %496 = vperm.xlu1 %3038, %v2788_v37   ;;  %491 = vperm.xlu0 %3037, %v2787_v38   ;;  %v718_v37 = vld [vmem:[%s3082_s17 + $0xa9] sm:$0xff]  ;;  %v717_v38 = vld [vmem:[%s3082_s17 + $0xa1] sm:$0xff] }
  0x60   : > { %506 = vperm.xlu1 %3038, %v2790_v39   ;;  %501 = vperm.xlu0 %3037, %v2789_v40  }
  0x64   : > { %516 = vperm.xlu1 %3038, %v2792_v41   ;;  %511 = vperm.xlu0 %3037, %v2791_v42   ;;  %v720_v41 = vld [vmem:[%s3082_s17 + $0xb9] sm:$0xff]  ;;  %v719_v42 = vld [vmem:[%s3082_s17 + $0xb1] sm:$0xff] }
  0x68   : > { %526 = vperm.xlu1 %3038, %v2794_v43   ;;  %521 = vperm.xlu0 %3037, %v2793_v44  }
  0x6c   : > { %536 = vperm.xlu1 %3038, %v2796_v45   ;;  %531 = vperm.xlu0 %3037, %v2795_v46   ;;  %v722_v45 = vld [vmem:[%s3082_s17 + $0xc9] sm:$0xff]  ;;  %v721_v46 = vld [vmem:[%s3082_s17 + $0xc1] sm:$0xff] }
  0x70   : > { %546 = vperm.xlu1 %3038, %v2798_v47   ;;  %541 = vperm.xlu0 %3037, %v2797_v48  }
  0x74   : > { %556 = vperm.xlu1 %3038, %v2800_v49   ;;  %551 = vperm.xlu0 %3037, %v2799_v50   ;;  %v724_v49 = vld [vmem:[%s3082_s17 + $0xe1] sm:$0xff]  ;;  %v723_v50 = vld [vmem:[%s3082_s17 + $0xd9] sm:$0xff] }
  0x78   : > { %566 = vperm.xlu1 %3038, %v2802_v51   ;;  %561 = vperm.xlu0 %3037, %v2801_v52  }
  0x7c   : > { %576 = vperm.xlu1 %3038, %v2804_v53   ;;  %571 = vperm.xlu0 %3037, %v2803_v54   ;;  %v726_v53 = vld [vmem:[%s3082_s17 + $0xf1] sm:$0xff]  ;;  %v725_v54 = vld [vmem:[%s3082_s17 + $0xe9] sm:$0xff] }
  0x80   : > { %586 = vperm.xlu1 %3038, %v2806_v55   ;;  %581 = vperm.xlu0 %3037, %v2805_v56  }
  0x84   : > { %596 = vperm.xlu1 %3038, %v2808_v57   ;;  %591 = vperm.xlu0 %3037, %v2807_v58   ;;  %v728_v57 = vld [vmem:[%s3082_s17 + $0x101] sm:$0xff]  ;;  %v727_v58 = vld [vmem:[%s3082_s17 + $0xf9] sm:$0xff] }
  0x88   : > { %606 = vperm.xlu1 %3038, %v2810_v59   ;;  %601 = vperm.xlu0 %3037, %v2809_v60  }
  0x8c   : > { %616 = vperm.xlu1 %3038, %v2812_v61   ;;  %611 = vperm.xlu0 %3037, %v2811_v62   ;;  %v730_v61 = vld [vmem:[%s3082_s17 + $0x111] sm:$0xff]  ;;  %v729_v62 = vld [vmem:[%s3082_s17 + $0x109] sm:$0xff] }
  0x90   : > { %626 = vperm.xlu1 %3038, %v2814_v63   ;;  %621 = vperm.xlu0 %3037, %v2813_v0  }
  0x93   : > { %v3150_v3 = vpop.permute.xlu1 %216  ;;  %v3152_v4 = vpop.permute.xlu0 %206 }
  0x94   : > { %740 = vperm.xlu1 %3038, %v700_v1   ;;  %735 = vperm.xlu0 %3037, %v699_v2   ;;  %v2820_v1 = vld [vmem:[%s3082_s17 + $0x2d8] sm:$0xff]  ;;  %v2819_v2 = vld [vmem:[%s3082_s17 + $0x2d0] sm:$0xff] }
  0x97   : > { %v3156_v7 = vpop.permute.xlu1 %221  ;;  %v3158_v8 = vpop.permute.xlu0 %211 }
  0x98   : > { %750 = vperm.xlu1 %3038, %v702_v5   ;;  %745 = vperm.xlu0 %3037, %v701_v6  }
  0x9b   : > { %v3162_v11 = vpop.permute.xlu1 %231  ;;  %v3164_v12 = vpop.permute.xlu0 %226 }
  0x9c   : > { %760 = vperm.xlu1 %3038, %v704_v9   ;;  %755 = vperm.xlu0 %3037, %v703_v10   ;;  %v2822_v9 = vld [vmem:[%s3082_s17 + $0x2e8] sm:$0xff]  ;;  %v2821_v10 = vld [vmem:[%s3082_s17 + $0x2e0] sm:$0xff] }
  0x9f   : > { %v3168_v15 = vpop.permute.xlu1 %241  ;;  %v3170_v16 = vpop.permute.xlu0 %236 }
  0xa0   : > { %770 = vperm.xlu1 %3038, %v706_v13   ;;  %765 = vperm.xlu0 %3037, %v705_v14  }
  0xa3   : > { %v3174_v19 = vpop.permute.xlu1 %251  ;;  %v3176_v20 = vpop.permute.xlu0 %246 }
  0xa4   : > { %780 = vperm.xlu1 %3038, %v708_v17   ;;  %775 = vperm.xlu0 %3037, %v707_v18   ;;  %v2824_v17 = vld [vmem:[%s3082_s17 + $0x2f8] sm:$0xff]  ;;  %v2823_v18 = vld [vmem:[%s3082_s17 + $0x2f0] sm:$0xff] }
  0xa7   : > { %v3180_v23 = vpop.permute.xlu1 %261  ;;  %v3182_v24 = vpop.permute.xlu0 %256 }
  0xa8   : > { %790 = vperm.xlu1 %3038, %v710_v21   ;;  %785 = vperm.xlu0 %3037, %v709_v22  }
  0xab   : > { %v3186_v27 = vpop.permute.xlu1 %271  ;;  %v3188_v28 = vpop.permute.xlu0 %266 }
  0xac   : > { %800 = vperm.xlu1 %3038, %v712_v25   ;;  %795 = vperm.xlu0 %3037, %v711_v26   ;;  %v2826_v25 = vld [vmem:[%s3082_s17 + $0x308] sm:$0xff]  ;;  %v2825_v26 = vld [vmem:[%s3082_s17 + $0x300] sm:$0xff] }
  0xaf   : > { %v3192_v31 = vpop.permute.xlu1 %281  ;;  %v3194_v32 = vpop.permute.xlu0 %276 }
  0xb0   : > { %810 = vperm.xlu1 %3038, %v714_v29   ;;  %805 = vperm.xlu0 %3037, %v713_v30  }
  0xb3   : > { %v3198_v35 = vpop.permute.xlu1 %291  ;;  %v3200_v36 = vpop.permute.xlu0 %286 }
  0xb4   : > { %820 = vperm.xlu1 %3038, %v716_v33   ;;  %815 = vperm.xlu0 %3037, %v715_v34   ;;  %v2828_v33 = vld [vmem:[%s3082_s17 + $0x320] sm:$0xff]  ;;  %v2827_v34 = vld [vmem:[%s3082_s17 + $0x318] sm:$0xff] }
  0xb7   : > { %v3204_v39 = vpop.permute.xlu1 %301  ;;  %v3206_v40 = vpop.permute.xlu0 %296 }
  0xb8   : > { %830 = vperm.xlu1 %3038, %v718_v37   ;;  %825 = vperm.xlu0 %3037, %v717_v38  }
  0xbb   : > { %v3210_v43 = vpop.permute.xlu1 %311  ;;  %v3212_v44 = vpop.permute.xlu0 %306 }
  0xbc   : > { %840 = vperm.xlu1 %3038, %v720_v41   ;;  %835 = vperm.xlu0 %3037, %v719_v42   ;;  %v2830_v41 = vld [vmem:[%s3082_s17 + $0x330] sm:$0xff]  ;;  %v2829_v42 = vld [vmem:[%s3082_s17 + $0x328] sm:$0xff] }
  0xbf   : > { %v3216_v47 = vpop.permute.xlu1 %321  ;;  %v3218_v48 = vpop.permute.xlu0 %316 }
  0xc0   : > { %850 = vperm.xlu1 %3038, %v722_v45   ;;  %845 = vperm.xlu0 %3037, %v721_v46  }
  0xc3   : > { %v3222_v51 = vpop.permute.xlu1 %331  ;;  %v3224_v52 = vpop.permute.xlu0 %326 }
  0xc4   : > { %860 = vperm.xlu1 %3038, %v724_v49   ;;  %855 = vperm.xlu0 %3037, %v723_v50   ;;  %v2832_v49 = vld [vmem:[%s3082_s17 + $0x340] sm:$0xff]  ;;  %v2831_v50 = vld [vmem:[%s3082_s17 + $0x338] sm:$0xff] }
  0xc7   : > { %v3228_v55 = vpop.permute.xlu1 %341  ;;  %v3230_v56 = vpop.permute.xlu0 %336 }
  0xc8   : > { %870 = vperm.xlu1 %3038, %v726_v53   ;;  %865 = vperm.xlu0 %3037, %v725_v54  }
  0xcb   : > { %v3234_v59 = vpop.permute.xlu1 %351  ;;  %v3236_v60 = vpop.permute.xlu0 %346 }
  0xcc   : > { %880 = vperm.xlu1 %3038, %v728_v57   ;;  %875 = vperm.xlu0 %3037, %v727_v58   ;;  %v2834_v57 = vld [vmem:[%s3082_s17 + $0x350] sm:$0xff]  ;;  %v2833_v58 = vld [vmem:[%s3082_s17 + $0x348] sm:$0xff] }
  0xcf   : > { %v3240_v63 = vpop.permute.xlu1 %361  ;;  %v3242_v0 = vpop.permute.xlu0 %356 }
  0xd0   : > { %890 = vperm.xlu1 %3038, %v730_v61   ;;  %885 = vperm.xlu0 %3037, %v729_v62  }
  0xd3   : > { %v3246_v5 = vpop.permute.xlu1 %476  ;;  %v3248_v6 = vpop.permute.xlu0 %471 }
  0xd4   : > { %1005 = vperm.xlu1 %3038, %v2820_v1   ;;  %1000 = vperm.xlu0 %3037, %v2819_v2   ;;  %v2836_v1 = vld [vmem:[%s3082_s17 + $0x368] sm:$0xff]  ;;  %v2835_v2 = vld [vmem:[%s3082_s17 + $0x360] sm:$0xff] }
  0xd7   : > { %v3252_v13 = vpop.permute.xlu1 %486  ;;  %v3254_v14 = vpop.permute.xlu0 %481 }
  0xd8   : > { %1015 = vperm.xlu1 %3038, %v2822_v9   ;;  %1010 = vperm.xlu0 %3037, %v2821_v10  }
  0xdb   : > { %v3258_v21 = vpop.permute.xlu1 %496  ;;  %v3260_v22 = vpop.permute.xlu0 %491 }
  0xdc   : > { %1025 = vperm.xlu1 %3038, %v2824_v17   ;;  %1020 = vperm.xlu0 %3037, %v2823_v18   ;;  %v2838_v17 = vld [vmem:[%s3082_s17 + $0x378] sm:$0xff]  ;;  %v2837_v18 = vld [vmem:[%s3082_s17 + $0x370] sm:$0xff] }
  0xdf   : > { %v3264_v29 = vpop.permute.xlu1 %506  ;;  %v3266_v30 = vpop.permute.xlu0 %501 }
  0xe0   : > { %1035 = vperm.xlu1 %3038, %v2826_v25   ;;  %1030 = vperm.xlu0 %3037, %v2825_v26  }
  0xe3   : > { %v3270_v37 = vpop.permute.xlu1 %516  ;;  %v3272_v38 = vpop.permute.xlu0 %511 }
  0xe4   : > { %1045 = vperm.xlu1 %3038, %v2828_v33   ;;  %1040 = vperm.xlu0 %3037, %v2827_v34   ;;  %v2840_v33 = vld [vmem:[%s3082_s17 + $0x388] sm:$0xff]  ;;  %v2839_v34 = vld [vmem:[%s3082_s17 + $0x380] sm:$0xff] }
  0xe7   : > { %v3276_v45 = vpop.permute.xlu1 %526  ;;  %v3278_v46 = vpop.permute.xlu0 %521 }
  0xe8   : > { %1055 = vperm.xlu1 %3038, %v2830_v41   ;;  %1050 = vperm.xlu0 %3037, %v2829_v42  }
  0xeb   : > { %v3282_v53 = vpop.permute.xlu1 %536  ;;  %v3284_v54 = vpop.permute.xlu0 %531 }
  0xec   : > { %1065 = vperm.xlu1 %3038, %v2832_v49   ;;  %1060 = vperm.xlu0 %3037, %v2831_v50   ;;  %v2842_v49 = vld [vmem:[%s3082_s17 + $0x398] sm:$0xff]  ;;  %v2841_v50 = vld [vmem:[%s3082_s17 + $0x390] sm:$0xff] }
  0xef   : > { %v3288_v61 = vpop.permute.xlu1 %546  ;;  %v3290_v62 = vpop.permute.xlu0 %541 }
  0xf0   : > { %1075 = vperm.xlu1 %3038, %v2834_v57   ;;  %1070 = vperm.xlu0 %3037, %v2833_v58  }
  0xf3   : > { %v3294_v9 = vpop.permute.xlu1 %556  ;;  %v3296_v10 = vpop.permute.xlu0 %551 }
  0xf4   : > { %1085 = vperm.xlu1 %3038, %v2836_v1   ;;  %1080 = vperm.xlu0 %3037, %v2835_v2   ;;  %v2844_v1 = vld [vmem:[%s3082_s17 + $0x3b0] sm:$0xff]  ;;  %v2843_v2 = vld [vmem:[%s3082_s17 + $0x3a8] sm:$0xff] }
  0xf7   : > { %v3300_v25 = vpop.permute.xlu1 %566  ;;  %v3302_v26 = vpop.permute.xlu0 %561 }
  0xf8   : > { %1095 = vperm.xlu1 %3038, %v2838_v17   ;;  %1090 = vperm.xlu0 %3037, %v2837_v18  }
  0xfb   : > { %v3306_v41 = vpop.permute.xlu1 %576  ;;  %v3308_v42 = vpop.permute.xlu0 %571 }
  0xfc   : > { %5174 = vst [vmem:[#allocation2_spill] sm:$0xff] %v3306_v41  ;;  %5175 = vst [vmem:[#allocation3_spill] sm:$0xff] %v3308_v42  ;;  %1105 = vperm.xlu1 %3038, %v2840_v33   ;;  %1100 = vperm.xlu0 %3037, %v2839_v34   ;;  %v2846_v33 = vld [vmem:[%s3082_s17 + $0x3c0] sm:$0xff]  ;;  %v2845_v34 = vld [vmem:[%s3082_s17 + $0x3b8] sm:$0xff] }
  0xff   : > { %v3312_v57 = vpop.permute.xlu1 %586  ;;  %v3314_v58 = vpop.permute.xlu0 %581 }
 0x100   : > { %5176 = vst [vmem:[#allocation4_spill] sm:$0xff] %v3312_v57  ;;  %5177 = vst [vmem:[#allocation5_spill] sm:$0xff] %v3314_v58  ;;  %1115 = vperm.xlu1 %3038, %v2842_v49   ;;  %1110 = vperm.xlu0 %3037, %v2841_v50   ;;  %v2848_v49 = vld [vmem:[%s3082_s17 + $0x3d0] sm:$0xff]  ;;  %v2847_v50 = vld [vmem:[%s3082_s17 + $0x3c8] sm:$0xff] }
 0x103   : > { %v3318_v17 = vpop.permute.xlu1 %596  ;;  %v3320_v18 = vpop.permute.xlu0 %591 }
 0x104   : > { %5178 = vst [vmem:[#allocation6_spill] sm:$0xff] %v3318_v17  ;;  %5179 = vst [vmem:[#allocation7_spill] sm:$0xff] %v3320_v18  ;;  %1125 = vperm.xlu1 %3038, %v2844_v1   ;;  %1120 = vperm.xlu0 %3037, %v2843_v2   ;;  %v2850_v1 = vld [vmem:[%s3082_s17 + $0x3e0] sm:$0xff]  ;;  %v2849_v2 = vld [vmem:[%s3082_s17 + $0x3d8] sm:$0xff] }
 0x107   : > { %v3324_v42 = vpop.permute.xlu1 %606  ;;  %v3326_v57 = vpop.permute.xlu0 %601 }
 0x108   : > { %5180 = vst [vmem:[#allocation8_spill] sm:$0xff] %v3324_v42  ;;  %5181 = vst [vmem:[#allocation9_spill] sm:$0xff] %v3326_v57  ;;  %1135 = vperm.xlu1 %3038, %v2846_v33   ;;  %1130 = vperm.xlu0 %3037, %v2845_v34   ;;  %v2854_v33 = vld [vmem:[%s3082_s17 + $0x440] sm:$0xff]  ;;  %v2853_v34 = vld [vmem:[%s3082_s17 + $0x438] sm:$0xff] }
 0x10b   : > { %v3330_v58 = vpop.permute.xlu1 %616  ;;  %v3332_v17 = vpop.permute.xlu0 %611 }
 0x10c   : > { %5182 = vst [vmem:[#allocation10_spill] sm:$0xff] %v3330_v58  ;;  %5183 = vst [vmem:[#allocation11_spill] sm:$0xff] %v3332_v17  ;;  %1145 = vperm.xlu1 %3038, %v2848_v49   ;;  %1140 = vperm.xlu0 %3037, %v2847_v50   ;;  %v2856_v49 = vld [vmem:[%s3082_s17 + $0x450] sm:$0xff]  ;;  %v2855_v50 = vld [vmem:[%s3082_s17 + $0x448] sm:$0xff] }
 0x10f   : > { %v3336_v18 = vpop.permute.xlu1 %626  ;;  %v3338_v42 = vpop.permute.xlu0 %621 }
 0x110   : > { %5184 = vst [vmem:[#allocation12_spill] sm:$0xff] %v3336_v18  ;;  %5185 = vst [vmem:[#allocation13_spill] sm:$0xff] %v3338_v42  ;;  %1155 = vperm.xlu1 %3038, %v2850_v1   ;;  %1150 = vperm.xlu0 %3037, %v2849_v2   ;;  %v2858_v1 = vld [vmem:[%s3082_s17 + $0x460] sm:$0xff]  ;;  %v2857_v2 = vld [vmem:[%s3082_s17 + $0x458] sm:$0xff] }
 0x113   : > { %v3342_v57 = vpop.permute.xlu1 %740  ;;  %v3344_v58 = vpop.permute.xlu0 %735 }
 0x114   : > { %5186 = vst [vmem:[#allocation14_spill] sm:$0xff] %v3342_v57  ;;  %5187 = vst [vmem:[#allocation15_spill] sm:$0xff] %v3344_v58  ;;  %1270 = vperm.xlu1 %3038, %v2854_v33   ;;  %1265 = vperm.xlu0 %3037, %v2853_v34   ;;  %v2860_v33 = vld [vmem:[%s3082_s17 + $0x470] sm:$0xff]  ;;  %v2859_v34 = vld [vmem:[%s3082_s17 + $0x468] sm:$0xff] }
 0x117   : > { %v3348_v17 = vpop.permute.xlu1 %750  ;;  %v3350_v18 = vpop.permute.xlu0 %745 }
 0x118   : > { %5188 = vst [vmem:[#allocation16_spill] sm:$0xff] %v3348_v17  ;;  %5189 = vst [vmem:[#allocation17_spill] sm:$0xff] %v3350_v18  ;;  %1280 = vperm.xlu1 %3038, %v2856_v49   ;;  %1275 = vperm.xlu0 %3037, %v2855_v50   ;;  %v2862_v49 = vld [vmem:[%s3082_s17 + $0x488] sm:$0xff]  ;;  %v2861_v50 = vld [vmem:[%s3082_s17 + $0x480] sm:$0xff] }
 0x11b   : > { %v3354_v42 = vpop.permute.xlu1 %760  ;;  %v3356_v57 = vpop.permute.xlu0 %755 }
 0x11c   : > { %5190 = vst [vmem:[#allocation18_spill] sm:$0xff] %v3354_v42  ;;  %5191 = vst [vmem:[#allocation19_spill] sm:$0xff] %v3356_v57  ;;  %1290 = vperm.xlu1 %3038, %v2858_v1   ;;  %1285 = vperm.xlu0 %3037, %v2857_v2   ;;  %v2864_v1 = vld [vmem:[%s3082_s17 + $0x498] sm:$0xff]  ;;  %v2863_v2 = vld [vmem:[%s3082_s17 + $0x490] sm:$0xff] }
 0x11f   : > { %v3360_v58 = vpop.permute.xlu1 %770  ;;  %v3362_v17 = vpop.permute.xlu0 %765 }
 0x120   : > { %5192 = vst [vmem:[#allocation20_spill] sm:$0xff] %v3360_v58  ;;  %5193 = vst [vmem:[#allocation21_spill] sm:$0xff] %v3362_v17  ;;  %1300 = vperm.xlu1 %3038, %v2860_v33   ;;  %1295 = vperm.xlu0 %3037, %v2859_v34   ;;  %v2866_v33 = vld [vmem:[%s3082_s17 + $0x4a8] sm:$0xff]  ;;  %v2865_v34 = vld [vmem:[%s3082_s17 + $0x4a0] sm:$0xff] }
 0x123   : > { %v3366_v18 = vpop.permute.xlu1 %780  ;;  %v3368_v42 = vpop.permute.xlu0 %775 }
 0x124   : > { %5194 = vst [vmem:[#allocation22_spill] sm:$0xff] %v3366_v18  ;;  %5195 = vst [vmem:[#allocation23_spill] sm:$0xff] %v3368_v42  ;;  %1310 = vperm.xlu1 %3038, %v2862_v49   ;;  %1305 = vperm.xlu0 %3037, %v2861_v50   ;;  %v2868_v49 = vld [vmem:[%s3082_s17 + $0x4b8] sm:$0xff]  ;;  %v2867_v50 = vld [vmem:[%s3082_s17 + $0x4b0] sm:$0xff] }
 0x127   : > { %v3372_v57 = vpop.permute.xlu1 %790  ;;  %v3374_v58 = vpop.permute.xlu0 %785 }
 0x128   : > { %5196 = vst [vmem:[#allocation24_spill] sm:$0xff] %v3372_v57  ;;  %5197 = vst [vmem:[#allocation25_spill] sm:$0xff] %v3374_v58  ;;  %1320 = vperm.xlu1 %3038, %v2864_v1   ;;  %1315 = vperm.xlu0 %3037, %v2863_v2   ;;  %v2870_v1 = vld [vmem:[%s3082_s17 + $0x4d0] sm:$0xff]  ;;  %v2869_v2 = vld [vmem:[%s3082_s17 + $0x4c8] sm:$0xff] }
 0x12b   : > { %v3378_v17 = vpop.permute.xlu1 %800  ;;  %v3380_v18 = vpop.permute.xlu0 %795 }
 0x12c   : > { %5198 = vst [vmem:[#allocation26_spill] sm:$0xff] %v3378_v17  ;;  %5199 = vst [vmem:[#allocation27_spill] sm:$0xff] %v3380_v18  ;;  %1330 = vperm.xlu1 %3038, %v2866_v33   ;;  %1325 = vperm.xlu0 %3037, %v2865_v34   ;;  %v2872_v33 = vld [vmem:[%s3082_s17 + $0x4e0] sm:$0xff]  ;;  %v2871_v34 = vld [vmem:[%s3082_s17 + $0x4d8] sm:$0xff] }
 0x12f   : > { %v3384_v42 = vpop.permute.xlu1 %810  ;;  %v3386_v57 = vpop.permute.xlu0 %805 }
 0x130   : > { %5200 = vst [vmem:[#allocation28_spill] sm:$0xff] %v3384_v42  ;;  %5201 = vst [vmem:[#allocation29_spill] sm:$0xff] %v3386_v57  ;;  %1340 = vperm.xlu1 %3038, %v2868_v49   ;;  %1335 = vperm.xlu0 %3037, %v2867_v50   ;;  %v2874_v49 = vld [vmem:[%s3082_s17 + $0x4f0] sm:$0xff]  ;;  %v2873_v50 = vld [vmem:[%s3082_s17 + $0x4e8] sm:$0xff] }
 0x133   : > { %v3390_v58 = vpop.permute.xlu1 %820  ;;  %v3392_v17 = vpop.permute.xlu0 %815 }
 0x134   : > { %5202 = vst [vmem:[#allocation30_spill] sm:$0xff] %v3390_v58  ;;  %5203 = vst [vmem:[#allocation31_spill] sm:$0xff] %v3392_v17  ;;  %1350 = vperm.xlu1 %3038, %v2870_v1   ;;  %1345 = vperm.xlu0 %3037, %v2869_v2   ;;  %v2876_v1 = vld [vmem:[%s3082_s17 + $0x500] sm:$0xff]  ;;  %v2875_v2 = vld [vmem:[%s3082_s17 + $0x4f8] sm:$0xff] }
 0x137   : > { %v3396_v18 = vpop.permute.xlu1 %830  ;;  %v3398_v42 = vpop.permute.xlu0 %825 }
 0x138   : > { %5204 = vst [vmem:[#allocation32_spill] sm:$0xff] %v3396_v18  ;;  %5205 = vst [vmem:[#allocation33_spill] sm:$0xff] %v3398_v42  ;;  %1360 = vperm.xlu1 %3038, %v2872_v33   ;;  %1355 = vperm.xlu0 %3037, %v2871_v34   ;;  %v2878_v33 = vld [vmem:[%s3082_s17 + $0x518] sm:$0xff]  ;;  %v2877_v34 = vld [vmem:[%s3082_s17 + $0x510] sm:$0xff] }
 0x13b   : > { %v3402_v57 = vpop.permute.xlu1 %840  ;;  %v3404_v58 = vpop.permute.xlu0 %835 }
 0x13c   : > { %5206 = vst [vmem:[#allocation34_spill] sm:$0xff] %v3402_v57  ;;  %5207 = vst [vmem:[#allocation35_spill] sm:$0xff] %v3404_v58  ;;  %1370 = vperm.xlu1 %3038, %v2874_v49   ;;  %1365 = vperm.xlu0 %3037, %v2873_v50   ;;  %v2880_v49 = vld [vmem:[%s3082_s17 + $0x528] sm:$0xff]  ;;  %v2879_v50 = vld [vmem:[%s3082_s17 + $0x520] sm:$0xff] }
 0x13f   : > { %v3408_v17 = vpop.permute.xlu1 %850  ;;  %v3410_v18 = vpop.permute.xlu0 %845 }
 0x140   : > { %5208 = vst [vmem:[#allocation36_spill] sm:$0xff] %v3408_v17  ;;  %5209 = vst [vmem:[#allocation37_spill] sm:$0xff] %v3410_v18  ;;  %1380 = vperm.xlu1 %3038, %v2876_v1   ;;  %1375 = vperm.xlu0 %3037, %v2875_v2   ;;  %v2882_v1 = vld [vmem:[%s3082_s17 + $0x538] sm:$0xff]  ;;  %v2881_v2 = vld [vmem:[%s3082_s17 + $0x530] sm:$0xff] }
 0x143   : > { %v3414_v42 = vpop.permute.xlu1 %860  ;;  %v3416_v57 = vpop.permute.xlu0 %855 }
 0x144   : > { %5210 = vst [vmem:[#allocation38_spill] sm:$0xff] %v3414_v42  ;;  %5211 = vst [vmem:[#allocation39_spill] sm:$0xff] %v3416_v57  ;;  %1390 = vperm.xlu1 %3038, %v2878_v33   ;;  %1385 = vperm.xlu0 %3037, %v2877_v34   ;;  %v2884_v33 = vld [vmem:[%s3082_s17 + $0x548] sm:$0xff]  ;;  %v2883_v34 = vld [vmem:[%s3082_s17 + $0x540] sm:$0xff] }
 0x147   : > { %v3420_v58 = vpop.permute.xlu1 %870  ;;  %v3422_v17 = vpop.permute.xlu0 %865 }
 0x148   : > { %5212 = vst [vmem:[#allocation40_spill] sm:$0xff] %v3420_v58  ;;  %5213 = vst [vmem:[#allocation41_spill] sm:$0xff] %v3422_v17  ;;  %1400 = vperm.xlu1 %3038, %v2880_v49   ;;  %1395 = vperm.xlu0 %3037, %v2879_v50   ;;  %v2888_v49 = vld [vmem:[%s3082_s17 + $0x2d9] sm:$0xff]  ;;  %v2887_v50 = vld [vmem:[%s3082_s17 + $0x2d1] sm:$0xff] }
 0x14b   : > { %v3426_v18 = vpop.permute.xlu1 %880  ;;  %v3428_v42 = vpop.permute.xlu0 %875 }
 0x14c   : > { %5214 = vst [vmem:[#allocation42_spill] sm:$0xff] %v3426_v18  ;;  %5215 = vst [vmem:[#allocation43_spill] sm:$0xff] %v3428_v42  ;;  %1410 = vperm.xlu1 %3038, %v2882_v1   ;;  %1405 = vperm.xlu0 %3037, %v2881_v2   ;;  %v2890_v1 = vld [vmem:[%s3082_s17 + $0x2e9] sm:$0xff]  ;;  %v2889_v2 = vld [vmem:[%s3082_s17 + $0x2e1] sm:$0xff] }
 0x14f   : > { %v3432_v57 = vpop.permute.xlu1 %890  ;;  %v3434_v58 = vpop.permute.xlu0 %885 }
 0x150   : > { %5216 = vst [vmem:[#allocation44_spill] sm:$0xff] %v3432_v57  ;;  %5217 = vst [vmem:[#allocation45_spill] sm:$0xff] %v3434_v58  ;;  %1420 = vperm.xlu1 %3038, %v2884_v33   ;;  %1415 = vperm.xlu0 %3037, %v2883_v34   ;;  %v2892_v33 = vld [vmem:[%s3082_s17 + $0x2f9] sm:$0xff]  ;;  %v2891_v34 = vld [vmem:[%s3082_s17 + $0x2f1] sm:$0xff] }
 0x153   : > { %v3438_v17 = vpop.permute.xlu1 %1005  ;;  %v3440_v18 = vpop.permute.xlu0 %1000 }
 0x154   : > { %5218 = vst [vmem:[#allocation46_spill] sm:$0xff] %v3438_v17  ;;  %5219 = vst [vmem:[#allocation47_spill] sm:$0xff] %v3440_v18  ;;  %1534 = vperm.xlu1 %3038, %v2888_v49   ;;  %1529 = vperm.xlu0 %3037, %v2887_v50   ;;  %v2894_v49 = vld [vmem:[%s3082_s17 + $0x309] sm:$0xff]  ;;  %v2893_v50 = vld [vmem:[%s3082_s17 + $0x301] sm:$0xff] }
 0x157   : > { %v3444_v42 = vpop.permute.xlu1 %1015  ;;  %v3446_v57 = vpop.permute.xlu0 %1010 }
 0x158   : > { %5220 = vst [vmem:[#allocation48_spill] sm:$0xff] %v3444_v42  ;;  %5221 = vst [vmem:[#allocation49_spill] sm:$0xff] %v3446_v57  ;;  %1544 = vperm.xlu1 %3038, %v2890_v1   ;;  %1539 = vperm.xlu0 %3037, %v2889_v2   ;;  %v2896_v1 = vld [vmem:[%s3082_s17 + $0x321] sm:$0xff]  ;;  %v2895_v2 = vld [vmem:[%s3082_s17 + $0x319] sm:$0xff] }
 0x15b   : > { %v3450_v58 = vpop.permute.xlu1 %1025  ;;  %v3452_v17 = vpop.permute.xlu0 %1020 }
 0x15c   : > { %5222 = vst [vmem:[#allocation50_spill] sm:$0xff] %v3450_v58  ;;  %5223 = vst [vmem:[#allocation51_spill] sm:$0xff] %v3452_v17  ;;  %1554 = vperm.xlu1 %3038, %v2892_v33   ;;  %1549 = vperm.xlu0 %3037, %v2891_v34   ;;  %v2898_v33 = vld [vmem:[%s3082_s17 + $0x331] sm:$0xff]  ;;  %v2897_v34 = vld [vmem:[%s3082_s17 + $0x329] sm:$0xff] }
 0x15f   : > { %v3456_v18 = vpop.permute.xlu1 %1035  ;;  %v3458_v42 = vpop.permute.xlu0 %1030 }
 0x160   : > { %5224 = vst [vmem:[#allocation52_spill] sm:$0xff] %v3456_v18  ;;  %5225 = vst [vmem:[#allocation53_spill] sm:$0xff] %v3458_v42  ;;  %1564 = vperm.xlu1 %3038, %v2894_v49   ;;  %1559 = vperm.xlu0 %3037, %v2893_v50   ;;  %v2900_v49 = vld [vmem:[%s3082_s17 + $0x341] sm:$0xff]  ;;  %v2899_v50 = vld [vmem:[%s3082_s17 + $0x339] sm:$0xff] }
 0x163   : > { %v3462_v57 = vpop.permute.xlu1 %1045  ;;  %v3464_v58 = vpop.permute.xlu0 %1040 }
 0x164   : > { %5226 = vst [vmem:[#allocation54_spill] sm:$0xff] %v3462_v57  ;;  %5227 = vst [vmem:[#allocation55_spill] sm:$0xff] %v3464_v58  ;;  %1574 = vperm.xlu1 %3038, %v2896_v1   ;;  %1569 = vperm.xlu0 %3037, %v2895_v2   ;;  %v2902_v1 = vld [vmem:[%s3082_s17 + $0x351] sm:$0xff]  ;;  %v2901_v2 = vld [vmem:[%s3082_s17 + $0x349] sm:$0xff] }
 0x167   : > { %v3468_v17 = vpop.permute.xlu1 %1055  ;;  %v3470_v18 = vpop.permute.xlu0 %1050 }
 0x168   : > { %5228 = vst [vmem:[#allocation56_spill] sm:$0xff] %v3468_v17  ;;  %5229 = vst [vmem:[#allocation57_spill] sm:$0xff] %v3470_v18  ;;  %1584 = vperm.xlu1 %3038, %v2898_v33   ;;  %1579 = vperm.xlu0 %3037, %v2897_v34   ;;  %v2904_v33 = vld [vmem:[%s3082_s17 + $0x369] sm:$0xff]  ;;  %v2903_v34 = vld [vmem:[%s3082_s17 + $0x361] sm:$0xff] }
 0x16b   : > { %v3474_v42 = vpop.permute.xlu1 %1065  ;;  %v3476_v57 = vpop.permute.xlu0 %1060 }
 0x16c   : > { %5230 = vst [vmem:[#allocation58_spill] sm:$0xff] %v3474_v42  ;;  %5231 = vst [vmem:[#allocation59_spill] sm:$0xff] %v3476_v57  ;;  %1594 = vperm.xlu1 %3038, %v2900_v49   ;;  %1589 = vperm.xlu0 %3037, %v2899_v50   ;;  %v2906_v49 = vld [vmem:[%s3082_s17 + $0x379] sm:$0xff]  ;;  %v2905_v50 = vld [vmem:[%s3082_s17 + $0x371] sm:$0xff] }
 0x16f   : > { %v3480_v58 = vpop.permute.xlu1 %1075  ;;  %v3482_v17 = vpop.permute.xlu0 %1070 }
 0x170   : > { %5232 = vst [vmem:[#allocation60_spill] sm:$0xff] %v3480_v58  ;;  %5233 = vst [vmem:[#allocation61_spill] sm:$0xff] %v3482_v17  ;;  %1604 = vperm.xlu1 %3038, %v2902_v1   ;;  %1599 = vperm.xlu0 %3037, %v2901_v2   ;;  %v2908_v1 = vld [vmem:[%s3082_s17 + $0x389] sm:$0xff]  ;;  %v2907_v2 = vld [vmem:[%s3082_s17 + $0x381] sm:$0xff] }
 0x173   : > { %v3486_v18 = vpop.permute.xlu1 %1085  ;;  %v3488_v42 = vpop.permute.xlu0 %1080 }
 0x174   : > { %5234 = vst [vmem:[#allocation62_spill] sm:$0xff] %v3486_v18  ;;  %5235 = vst [vmem:[#allocation63_spill] sm:$0xff] %v3488_v42  ;;  %1614 = vperm.xlu1 %3038, %v2904_v33   ;;  %1609 = vperm.xlu0 %3037, %v2903_v34   ;;  %v2910_v33 = vld [vmem:[%s3082_s17 + $0x399] sm:$0xff]  ;;  %v2909_v34 = vld [vmem:[%s3082_s17 + $0x391] sm:$0xff] }
 0x177   : > { %v3492_v57 = vpop.permute.xlu1 %1095  ;;  %v3494_v58 = vpop.permute.xlu0 %1090 }
 0x178   : > { %5236 = vst [vmem:[#allocation64_spill] sm:$0xff] %v3492_v57  ;;  %5237 = vst [vmem:[#allocation65_spill] sm:$0xff] %v3494_v58  ;;  %1624 = vperm.xlu1 %3038, %v2906_v49   ;;  %1619 = vperm.xlu0 %3037, %v2905_v50   ;;  %v2912_v49 = vld [vmem:[%s3082_s17 + $0x3b1] sm:$0xff]  ;;  %v2911_v50 = vld [vmem:[%s3082_s17 + $0x3a9] sm:$0xff] }
 0x17b   : > { %v3498_v17 = vpop.permute.xlu1 %1105  ;;  %v3500_v18 = vpop.permute.xlu0 %1100 }
 0x17c   : > { %5238 = vst [vmem:[#allocation66_spill] sm:$0xff] %v3498_v17  ;;  %5239 = vst [vmem:[#allocation67_spill] sm:$0xff] %v3500_v18  ;;  %1634 = vperm.xlu1 %3038, %v2908_v1   ;;  %1629 = vperm.xlu0 %3037, %v2907_v2   ;;  %v2914_v1 = vld [vmem:[%s3082_s17 + $0x3c1] sm:$0xff]  ;;  %v2913_v2 = vld [vmem:[%s3082_s17 + $0x3b9] sm:$0xff] }
 0x17f   : > { %v3504_v42 = vpop.permute.xlu1 %1115  ;;  %v3506_v57 = vpop.permute.xlu0 %1110 }
 0x180   : > { %5240 = vst [vmem:[#allocation68_spill] sm:$0xff] %v3504_v42  ;;  %5241 = vst [vmem:[#allocation69_spill] sm:$0xff] %v3506_v57  ;;  %1644 = vperm.xlu1 %3038, %v2910_v33   ;;  %1639 = vperm.xlu0 %3037, %v2909_v34   ;;  %v2916_v33 = vld [vmem:[%s3082_s17 + $0x3d1] sm:$0xff]  ;;  %v2915_v34 = vld [vmem:[%s3082_s17 + $0x3c9] sm:$0xff] }
 0x183   : > { %v3510_v58 = vpop.permute.xlu1 %1125  ;;  %v3512_v17 = vpop.permute.xlu0 %1120 }
 0x184   : > { %5242 = vst [vmem:[#allocation70_spill] sm:$0xff] %v3510_v58  ;;  %5243 = vst [vmem:[#allocation71_spill] sm:$0xff] %v3512_v17  ;;  %1654 = vperm.xlu1 %3038, %v2912_v49   ;;  %1649 = vperm.xlu0 %3037, %v2911_v50   ;;  %v2918_v49 = vld [vmem:[%s3082_s17 + $0x3e1] sm:$0xff]  ;;  %v2917_v50 = vld [vmem:[%s3082_s17 + $0x3d9] sm:$0xff] }
 0x187   : > { %v3516_v18 = vpop.permute.xlu1 %1135  ;;  %v3518_v42 = vpop.permute.xlu0 %1130 }
 0x188   : > { %5244 = vst [vmem:[#allocation72_spill] sm:$0xff] %v3516_v18  ;;  %5245 = vst [vmem:[#allocation73_spill] sm:$0xff] %v3518_v42  ;;  %1664 = vperm.xlu1 %3038, %v2914_v1   ;;  %1659 = vperm.xlu0 %3037, %v2913_v2   ;;  %v2922_v1 = vld [vmem:[%s3082_s17 + $0x50] sm:$0xff]  ;;  %v2921_v2 = vld [vmem:[%s3082_s17 + $0x48] sm:$0xff] }
 0x18b   : > { %v3522_v57 = vpop.permute.xlu1 %1145  ;;  %v3524_v58 = vpop.permute.xlu0 %1140 }
 0x18c   : > { %5246 = vst [vmem:[#allocation74_spill] sm:$0xff] %v3522_v57  ;;  %5247 = vst [vmem:[#allocation75_spill] sm:$0xff] %v3524_v58  ;;  %1674 = vperm.xlu1 %3038, %v2916_v33   ;;  %1669 = vperm.xlu0 %3037, %v2915_v34   ;;  %v2924_v33 = vld [vmem:[%s3082_s17 + $0x60] sm:$0xff]  ;;  %v2923_v34 = vld [vmem:[%s3082_s17 + $0x58] sm:$0xff] }
 0x18f   : > { %v3528_v17 = vpop.permute.xlu1 %1155  ;;  %v3530_v18 = vpop.permute.xlu0 %1150 }
 0x190   : > { %5248 = vst [vmem:[#allocation76_spill] sm:$0xff] %v3528_v17  ;;  %5249 = vst [vmem:[#allocation77_spill] sm:$0xff] %v3530_v18  ;;  %1684 = vperm.xlu1 %3038, %v2918_v49   ;;  %1679 = vperm.xlu0 %3037, %v2917_v50   ;;  %v2926_v49 = vld [vmem:[%s3082_s17 + $0x70] sm:$0xff]  ;;  %v2925_v50 = vld [vmem:[%s3082_s17 + $0x68] sm:$0xff] }
 0x193   : > { %v3534_v42 = vpop.permute.xlu1 %1270  ;;  %v3536_v57 = vpop.permute.xlu0 %1265 }
 0x194   : > { %5250 = vst [vmem:[#allocation78_spill] sm:$0xff] %v3534_v42  ;;  %5251 = vst [vmem:[#allocation79_spill] sm:$0xff] %v3536_v57  ;;  %1799 = vperm.xlu1 %3038, %v2922_v1   ;;  %1794 = vperm.xlu0 %3037, %v2921_v2   ;;  %v2928_v1 = vld [vmem:[%s3082_s17 + $0x80] sm:$0xff]  ;;  %v2927_v2 = vld [vmem:[%s3082_s17 + $0x78] sm:$0xff] }
 0x197   : > { %v3540_v58 = vpop.permute.xlu1 %1280  ;;  %v3542_v17 = vpop.permute.xlu0 %1275 }
 0x198   : > { %5252 = vst [vmem:[#allocation80_spill] sm:$0xff] %v3540_v58  ;;  %5253 = vst [vmem:[#allocation81_spill] sm:$0xff] %v3542_v17  ;;  %1809 = vperm.xlu1 %3038, %v2924_v33   ;;  %1804 = vperm.xlu0 %3037, %v2923_v34   ;;  %v2930_v33 = vld [vmem:[%s3082_s17 + $0x98] sm:$0xff]  ;;  %v2929_v34 = vld [vmem:[%s3082_s17 + $0x90] sm:$0xff] }
 0x19b   : > { %v3546_v18 = vpop.permute.xlu1 %1290  ;;  %v3548_v42 = vpop.permute.xlu0 %1285 }
 0x19c   : > { %5254 = vst [vmem:[#allocation82_spill] sm:$0xff] %v3546_v18  ;;  %5255 = vst [vmem:[#allocation83_spill] sm:$0xff] %v3548_v42  ;;  %1819 = vperm.xlu1 %3038, %v2926_v49   ;;  %1814 = vperm.xlu0 %3037, %v2925_v50   ;;  %v2932_v49 = vld [vmem:[%s3082_s17 + $0xa8] sm:$0xff]  ;;  %v2931_v50 = vld [vmem:[%s3082_s17 + $0xa0] sm:$0xff] }
 0x19f   : > { %v3552_v57 = vpop.permute.xlu1 %1300  ;;  %v3554_v58 = vpop.permute.xlu0 %1295 }
 0x1a0   : > { %5256 = vst [vmem:[#allocation84_spill] sm:$0xff] %v3552_v57  ;;  %5257 = vst [vmem:[#allocation85_spill] sm:$0xff] %v3554_v58  ;;  %1829 = vperm.xlu1 %3038, %v2928_v1   ;;  %1824 = vperm.xlu0 %3037, %v2927_v2   ;;  %v2934_v1 = vld [vmem:[%s3082_s17 + $0xb8] sm:$0xff]  ;;  %v2933_v2 = vld [vmem:[%s3082_s17 + $0xb0] sm:$0xff] }
 0x1a3   : > { %v3558_v17 = vpop.permute.xlu1 %1310  ;;  %v3560_v18 = vpop.permute.xlu0 %1305 }
 0x1a4   : > { %5258 = vst [vmem:[#allocation86_spill] sm:$0xff] %v3558_v17  ;;  %5259 = vst [vmem:[#allocation87_spill] sm:$0xff] %v3560_v18  ;;  %1839 = vperm.xlu1 %3038, %v2930_v33   ;;  %1834 = vperm.xlu0 %3037, %v2929_v34   ;;  %v2936_v33 = vld [vmem:[%s3082_s17 + $0xc8] sm:$0xff]  ;;  %v2935_v34 = vld [vmem:[%s3082_s17 + $0xc0] sm:$0xff] }
 0x1a7   : > { %v3564_v42 = vpop.permute.xlu1 %1320  ;;  %v3566_v57 = vpop.permute.xlu0 %1315 }
 0x1a8   : > { %5260 = vst [vmem:[#allocation88_spill] sm:$0xff] %v3564_v42  ;;  %5261 = vst [vmem:[#allocation89_spill] sm:$0xff] %v3566_v57  ;;  %1849 = vperm.xlu1 %3038, %v2932_v49   ;;  %1844 = vperm.xlu0 %3037, %v2931_v50   ;;  %v2938_v49 = vld [vmem:[%s3082_s17 + $0xe0] sm:$0xff]  ;;  %v2937_v50 = vld [vmem:[%s3082_s17 + $0xd8] sm:$0xff] }
 0x1ab   : > { %v3570_v58 = vpop.permute.xlu1 %1330  ;;  %v3572_v17 = vpop.permute.xlu0 %1325 }
 0x1ac   : > { %5262 = vst [vmem:[#allocation90_spill] sm:$0xff] %v3570_v58  ;;  %5263 = vst [vmem:[#allocation91_spill] sm:$0xff] %v3572_v17  ;;  %1859 = vperm.xlu1 %3038, %v2934_v1   ;;  %1854 = vperm.xlu0 %3037, %v2933_v2   ;;  %v2940_v1 = vld [vmem:[%s3082_s17 + $0xf0] sm:$0xff]  ;;  %v2939_v2 = vld [vmem:[%s3082_s17 + $0xe8] sm:$0xff] }
 0x1af   : > { %v3576_v18 = vpop.permute.xlu1 %1340  ;;  %v3578_v42 = vpop.permute.xlu0 %1335 }
 0x1b0   : > { %5264 = vst [vmem:[#allocation92_spill] sm:$0xff] %v3576_v18  ;;  %5265 = vst [vmem:[#allocation93_spill] sm:$0xff] %v3578_v42  ;;  %1869 = vperm.xlu1 %3038, %v2936_v33   ;;  %1864 = vperm.xlu0 %3037, %v2935_v34   ;;  %v2942_v33 = vld [vmem:[%s3082_s17 + $0x100] sm:$0xff]  ;;  %v2941_v34 = vld [vmem:[%s3082_s17 + $0xf8] sm:$0xff] }
 0x1b3   : > { %v3582_v57 = vpop.permute.xlu1 %1350  ;;  %v3584_v58 = vpop.permute.xlu0 %1345 }
 0x1b4   : > { %5266 = vst [vmem:[#allocation94_spill] sm:$0xff] %v3582_v57  ;;  %5267 = vst [vmem:[#allocation95_spill] sm:$0xff] %v3584_v58  ;;  %1879 = vperm.xlu1 %3038, %v2938_v49   ;;  %1874 = vperm.xlu0 %3037, %v2937_v50   ;;  %v2944_v49 = vld [vmem:[%s3082_s17 + $0x110] sm:$0xff]  ;;  %v2943_v50 = vld [vmem:[%s3082_s17 + $0x108] sm:$0xff] }
 0x1b7   : > { %v3588_v17 = vpop.permute.xlu1 %1360  ;;  %v3590_v18 = vpop.permute.xlu0 %1355 }
 0x1b8   : > { %5268 = vst [vmem:[#allocation96_spill] sm:$0xff] %v3588_v17  ;;  %5269 = vst [vmem:[#allocation97_spill] sm:$0xff] %v3590_v18  ;;  %1889 = vperm.xlu1 %3038, %v2940_v1   ;;  %1884 = vperm.xlu0 %3037, %v2939_v2   ;;  %v2946_v1 = vld [vmem:[%s3082_s17 + $0x128] sm:$0xff]  ;;  %v2945_v2 = vld [vmem:[%s3082_s17 + $0x120] sm:$0xff] }
 0x1bb   : > { %v3594_v42 = vpop.permute.xlu1 %1370  ;;  %v3596_v57 = vpop.permute.xlu0 %1365 }
 0x1bc   : > { %5270 = vst [vmem:[#allocation98_spill] sm:$0xff] %v3594_v42  ;;  %5271 = vst [vmem:[#allocation99_spill] sm:$0xff] %v3596_v57  ;;  %1899 = vperm.xlu1 %3038, %v2942_v33   ;;  %1894 = vperm.xlu0 %3037, %v2941_v34   ;;  %v2948_v33 = vld [vmem:[%s3082_s17 + $0x138] sm:$0xff]  ;;  %v2947_v34 = vld [vmem:[%s3082_s17 + $0x130] sm:$0xff] }
 0x1bf   : > { %v3600_v58 = vpop.permute.xlu1 %1380  ;;  %v3602_v17 = vpop.permute.xlu0 %1375 }
 0x1c0   : > { %5272 = vst [vmem:[#allocation100_spill] sm:$0xff] %v3600_v58  ;;  %5273 = vst [vmem:[#allocation101_spill] sm:$0xff] %v3602_v17  ;;  %1909 = vperm.xlu1 %3038, %v2944_v49   ;;  %1904 = vperm.xlu0 %3037, %v2943_v50   ;;  %v2950_v49 = vld [vmem:[%s3082_s17 + $0x148] sm:$0xff]  ;;  %v2949_v50 = vld [vmem:[%s3082_s17 + $0x140] sm:$0xff] }
 0x1c3   : > { %v3606_v18 = vpop.permute.xlu1 %1390  ;;  %v3608_v42 = vpop.permute.xlu0 %1385 }
 0x1c4   : > { %5274 = vst [vmem:[#allocation102_spill] sm:$0xff] %v3606_v18  ;;  %5275 = vst [vmem:[#allocation103_spill] sm:$0xff] %v3608_v42  ;;  %1919 = vperm.xlu1 %3038, %v2946_v1   ;;  %1914 = vperm.xlu0 %3037, %v2945_v2   ;;  %v2952_v1 = vld [vmem:[%s3082_s17 + $0x158] sm:$0xff]  ;;  %v2951_v2 = vld [vmem:[%s3082_s17 + $0x150] sm:$0xff] }
 0x1c7   : > { %v3612_v57 = vpop.permute.xlu1 %1400  ;;  %v3614_v58 = vpop.permute.xlu0 %1395 }
 0x1c8   : > { %5276 = vst [vmem:[#allocation104_spill] sm:$0xff] %v3612_v57  ;;  %5277 = vst [vmem:[#allocation105_spill] sm:$0xff] %v3614_v58  ;;  %1929 = vperm.xlu1 %3038, %v2948_v33   ;;  %1924 = vperm.xlu0 %3037, %v2947_v34   ;;  %v2956_v33 = vld [vmem:[%s3082_s17 + $0x1b8] sm:$0xff]  ;;  %v2955_v34 = vld [vmem:[%s3082_s17 + $0x1b0] sm:$0xff] }
 0x1cb   : > { %v3618_v17 = vpop.permute.xlu1 %1410  ;;  %v3620_v18 = vpop.permute.xlu0 %1405 }
 0x1cc   : > { %5278 = vst [vmem:[#allocation106_spill] sm:$0xff] %v3618_v17  ;;  %5279 = vst [vmem:[#allocation107_spill] sm:$0xff] %v3620_v18  ;;  %1939 = vperm.xlu1 %3038, %v2950_v49   ;;  %1934 = vperm.xlu0 %3037, %v2949_v50   ;;  %v2958_v49 = vld [vmem:[%s3082_s17 + $0x1c8] sm:$0xff]  ;;  %v2957_v50 = vld [vmem:[%s3082_s17 + $0x1c0] sm:$0xff] }
 0x1cf   : > { %v3624_v42 = vpop.permute.xlu1 %1420  ;;  %v3626_v57 = vpop.permute.xlu0 %1415 }
 0x1d0   : > { %5280 = vst [vmem:[#allocation108_spill] sm:$0xff] %v3624_v42  ;;  %5281 = vst [vmem:[#allocation109_spill] sm:$0xff] %v3626_v57  ;;  %1949 = vperm.xlu1 %3038, %v2952_v1   ;;  %1944 = vperm.xlu0 %3037, %v2951_v2   ;;  %v2960_v1 = vld [vmem:[%s3082_s17 + $0x1d8] sm:$0xff]  ;;  %v2959_v2 = vld [vmem:[%s3082_s17 + $0x1d0] sm:$0xff] }
 0x1d3   : > { %v3630_v58 = vpop.permute.xlu1 %1534  ;;  %v3632_v17 = vpop.permute.xlu0 %1529 }
 0x1d4   : > { %5282 = vst [vmem:[#allocation110_spill] sm:$0xff] %v3630_v58  ;;  %5283 = vst [vmem:[#allocation111_spill] sm:$0xff] %v3632_v17  ;;  %2064 = vperm.xlu1 %3038, %v2956_v33   ;;  %2059 = vperm.xlu0 %3037, %v2955_v34   ;;  %v2962_v33 = vld [vmem:[%s3082_s17 + $0x1e8] sm:$0xff]  ;;  %v2961_v34 = vld [vmem:[%s3082_s17 + $0x1e0] sm:$0xff] }
 0x1d7   : > { %v3636_v18 = vpop.permute.xlu1 %1544  ;;  %v3638_v42 = vpop.permute.xlu0 %1539 }
 0x1d8   : > { %5284 = vst [vmem:[#allocation112_spill] sm:$0xff] %v3636_v18  ;;  %5285 = vst [vmem:[#allocation113_spill] sm:$0xff] %v3638_v42  ;;  %2074 = vperm.xlu1 %3038, %v2958_v49   ;;  %2069 = vperm.xlu0 %3037, %v2957_v50   ;;  %v2964_v49 = vld [vmem:[%s3082_s17 + $0x200] sm:$0xff]  ;;  %v2963_v50 = vld [vmem:[%s3082_s17 + $0x1f8] sm:$0xff] }
 0x1db   : > { %v3642_v57 = vpop.permute.xlu1 %1554  ;;  %v3644_v58 = vpop.permute.xlu0 %1549 }
 0x1dc   : > { %5286 = vst [vmem:[#allocation114_spill] sm:$0xff] %v3642_v57  ;;  %5287 = vst [vmem:[#allocation115_spill] sm:$0xff] %v3644_v58  ;;  %2084 = vperm.xlu1 %3038, %v2960_v1   ;;  %2079 = vperm.xlu0 %3037, %v2959_v2   ;;  %v2966_v1 = vld [vmem:[%s3082_s17 + $0x210] sm:$0xff]  ;;  %v2965_v2 = vld [vmem:[%s3082_s17 + $0x208] sm:$0xff] }
 0x1df   : > { %v3648_v17 = vpop.permute.xlu1 %1564  ;;  %v3650_v18 = vpop.permute.xlu0 %1559 }
 0x1e0   : > { %5288 = vst [vmem:[#allocation116_spill] sm:$0xff] %v3648_v17  ;;  %5289 = vst [vmem:[#allocation117_spill] sm:$0xff] %v3650_v18  ;;  %2094 = vperm.xlu1 %3038, %v2962_v33   ;;  %2089 = vperm.xlu0 %3037, %v2961_v34   ;;  %v2968_v33 = vld [vmem:[%s3082_s17 + $0x220] sm:$0xff]  ;;  %v2967_v34 = vld [vmem:[%s3082_s17 + $0x218] sm:$0xff] }
 0x1e3   : > { %v3654_v42 = vpop.permute.xlu1 %1574  ;;  %v3656_v57 = vpop.permute.xlu0 %1569 }
 0x1e4   : > { %5290 = vst [vmem:[#allocation118_spill] sm:$0xff] %v3654_v42  ;;  %5291 = vst [vmem:[#allocation119_spill] sm:$0xff] %v3656_v57  ;;  %2104 = vperm.xlu1 %3038, %v2964_v49   ;;  %2099 = vperm.xlu0 %3037, %v2963_v50   ;;  %v2970_v49 = vld [vmem:[%s3082_s17 + $0x230] sm:$0xff]  ;;  %v2969_v50 = vld [vmem:[%s3082_s17 + $0x228] sm:$0xff] }
 0x1e7   : > { %v3660_v58 = vpop.permute.xlu1 %1584  ;;  %v3662_v17 = vpop.permute.xlu0 %1579 }
 0x1e8   : > { %5292 = vst [vmem:[#allocation120_spill] sm:$0xff] %v3660_v58  ;;  %5293 = vst [vmem:[#allocation121_spill] sm:$0xff] %v3662_v17  ;;  %2114 = vperm.xlu1 %3038, %v2966_v1   ;;  %2109 = vperm.xlu0 %3037, %v2965_v2   ;;  %v2972_v1 = vld [vmem:[%s3082_s17 + $0x248] sm:$0xff]  ;;  %v2971_v2 = vld [vmem:[%s3082_s17 + $0x240] sm:$0xff] }
 0x1eb   : > { %v3666_v18 = vpop.permute.xlu1 %1594  ;;  %v3668_v42 = vpop.permute.xlu0 %1589 }
 0x1ec   : > { %5294 = vst [vmem:[#allocation122_spill] sm:$0xff] %v3666_v18  ;;  %5295 = vst [vmem:[#allocation123_spill] sm:$0xff] %v3668_v42  ;;  %2124 = vperm.xlu1 %3038, %v2968_v33   ;;  %2119 = vperm.xlu0 %3037, %v2967_v34   ;;  %v2974_v33 = vld [vmem:[%s3082_s17 + $0x258] sm:$0xff]  ;;  %v2973_v34 = vld [vmem:[%s3082_s17 + $0x250] sm:$0xff] }
 0x1ef   : > { %v3672_v57 = vpop.permute.xlu1 %1604  ;;  %v3674_v58 = vpop.permute.xlu0 %1599 }
 0x1f0   : > { %5296 = vst [vmem:[#allocation124_spill] sm:$0xff] %v3672_v57  ;;  %5297 = vst [vmem:[#allocation125_spill] sm:$0xff] %v3674_v58  ;;  %2134 = vperm.xlu1 %3038, %v2970_v49   ;;  %2129 = vperm.xlu0 %3037, %v2969_v50   ;;  %v2976_v49 = vld [vmem:[%s3082_s17 + $0x268] sm:$0xff]  ;;  %v2975_v50 = vld [vmem:[%s3082_s17 + $0x260] sm:$0xff] }
 0x1f3   : > { %v3678_v17 = vpop.permute.xlu1 %1614  ;;  %v3680_v18 = vpop.permute.xlu0 %1609 }
 0x1f4   : > { %5298 = vst [vmem:[#allocation126_spill] sm:$0xff] %v3678_v17  ;;  %5299 = vst [vmem:[#allocation127_spill] sm:$0xff] %v3680_v18  ;;  %2144 = vperm.xlu1 %3038, %v2972_v1   ;;  %2139 = vperm.xlu0 %3037, %v2971_v2   ;;  %v2978_v1 = vld [vmem:[%s3082_s17 + $0x278] sm:$0xff]  ;;  %v2977_v2 = vld [vmem:[%s3082_s17 + $0x270] sm:$0xff] }
 0x1f7   : > { %v3684_v42 = vpop.permute.xlu1 %1624  ;;  %v3686_v57 = vpop.permute.xlu0 %1619 }
 0x1f8   : > { %5300 = vst [vmem:[#allocation128_spill] sm:$0xff] %v3684_v42  ;;  %5301 = vst [vmem:[#allocation129_spill] sm:$0xff] %v3686_v57  ;;  %2154 = vperm.xlu1 %3038, %v2974_v33   ;;  %2149 = vperm.xlu0 %3037, %v2973_v34   ;;  %v2980_v33 = vld [vmem:[%s3082_s17 + $0x290] sm:$0xff]  ;;  %v2979_v34 = vld [vmem:[%s3082_s17 + $0x288] sm:$0xff] }
 0x1fb   : > { %v3690_v58 = vpop.permute.xlu1 %1634  ;;  %v3692_v17 = vpop.permute.xlu0 %1629 }
 0x1fc   : > { %5302 = vst [vmem:[#allocation130_spill] sm:$0xff] %v3690_v58  ;;  %5303 = vst [vmem:[#allocation131_spill] sm:$0xff] %v3692_v17  ;;  %2164 = vperm.xlu1 %3038, %v2976_v49   ;;  %2159 = vperm.xlu0 %3037, %v2975_v50   ;;  %v2982_v49 = vld [vmem:[%s3082_s17 + $0x2a0] sm:$0xff]  ;;  %v2981_v50 = vld [vmem:[%s3082_s17 + $0x298] sm:$0xff] }
 0x1ff   : > { %v3696_v18 = vpop.permute.xlu1 %1644  ;;  %v3698_v42 = vpop.permute.xlu0 %1639 }
 0x200   : > { %5304 = vst [vmem:[#allocation132_spill] sm:$0xff] %v3696_v18  ;;  %5305 = vst [vmem:[#allocation133_spill] sm:$0xff] %v3698_v42  ;;  %2174 = vperm.xlu1 %3038, %v2978_v1   ;;  %2169 = vperm.xlu0 %3037, %v2977_v2   ;;  %v2984_v1 = vld [vmem:[%s3082_s17 + $0x2b0] sm:$0xff]  ;;  %v2983_v2 = vld [vmem:[%s3082_s17 + $0x2a8] sm:$0xff] }
 0x203   : > { %v3702_v57 = vpop.permute.xlu1 %1654  ;;  %v3704_v58 = vpop.permute.xlu0 %1649 }
 0x204   : > { %5306 = vst [vmem:[#allocation134_spill] sm:$0xff] %v3702_v57  ;;  %5307 = vst [vmem:[#allocation135_spill] sm:$0xff] %v3704_v58  ;;  %2184 = vperm.xlu1 %3038, %v2980_v33   ;;  %2179 = vperm.xlu0 %3037, %v2979_v34   ;;  %v2986_v33 = vld [vmem:[%s3082_s17 + $0x2c0] sm:$0xff]  ;;  %v2985_v34 = vld [vmem:[%s3082_s17 + $0x2b8] sm:$0xff] }
 0x207   : > { %v3708_v17 = vpop.permute.xlu1 %1664  ;;  %v3710_v18 = vpop.permute.xlu0 %1659 }
 0x208   : > { %5308 = vst [vmem:[#allocation136_spill] sm:$0xff] %v3708_v17  ;;  %5309 = vst [vmem:[#allocation137_spill] sm:$0xff] %v3710_v18  ;;  %2194 = vperm.xlu1 %3038, %v2982_v49   ;;  %2189 = vperm.xlu0 %3037, %v2981_v50   ;;  %v2990_v49 = vld [vmem:[%s3082_s17 + $0x51] sm:$0xff]  ;;  %v2989_v50 = vld [vmem:[%s3082_s17 + $0x49] sm:$0xff] }
 0x20b   : > { %v3714_v42 = vpop.permute.xlu1 %1674  ;;  %v3716_v57 = vpop.permute.xlu0 %1669 }
 0x20c   : > { %5310 = vst [vmem:[#allocation138_spill] sm:$0xff] %v3714_v42  ;;  %5311 = vst [vmem:[#allocation139_spill] sm:$0xff] %v3716_v57  ;;  %2204 = vperm.xlu1 %3038, %v2984_v1   ;;  %2199 = vperm.xlu0 %3037, %v2983_v2   ;;  %v2992_v1 = vld [vmem:[%s3082_s17 + $0x61] sm:$0xff]  ;;  %v2991_v2 = vld [vmem:[%s3082_s17 + $0x59] sm:$0xff] }
 0x20f   : > { %v3720_v58 = vpop.permute.xlu1 %1684  ;;  %v3722_v17 = vpop.permute.xlu0 %1679 }
 0x210   : > { %5312 = vst [vmem:[#allocation140_spill] sm:$0xff] %v3720_v58  ;;  %5313 = vst [vmem:[#allocation141_spill] sm:$0xff] %v3722_v17  ;;  %2214 = vperm.xlu1 %3038, %v2986_v33   ;;  %2209 = vperm.xlu0 %3037, %v2985_v34   ;;  %v2994_v33 = vld [vmem:[%s3082_s17 + $0x71] sm:$0xff]  ;;  %v2993_v34 = vld [vmem:[%s3082_s17 + $0x69] sm:$0xff] }
 0x213   : > { %v3726_v18 = vpop.permute.xlu1 %1799  ;;  %v3728_v42 = vpop.permute.xlu0 %1794 }
 0x214   : > { %5314 = vst [vmem:[#allocation142_spill] sm:$0xff] %v3726_v18  ;;  %5315 = vst [vmem:[#allocation143_spill] sm:$0xff] %v3728_v42  ;;  %2328 = vperm.xlu1 %3038, %v2990_v49   ;;  %2323 = vperm.xlu0 %3037, %v2989_v50   ;;  %v2996_v49 = vld [vmem:[%s3082_s17 + $0x81] sm:$0xff]  ;;  %v2995_v50 = vld [vmem:[%s3082_s17 + $0x79] sm:$0xff] }
 0x217   : > { %v3732_v57 = vpop.permute.xlu1 %1809  ;;  %v3734_v58 = vpop.permute.xlu0 %1804 }
 0x218   : > { %5316 = vst [vmem:[#allocation144_spill] sm:$0xff] %v3732_v57  ;;  %5317 = vst [vmem:[#allocation145_spill] sm:$0xff] %v3734_v58  ;;  %2338 = vperm.xlu1 %3038, %v2992_v1   ;;  %2333 = vperm.xlu0 %3037, %v2991_v2   ;;  %v2998_v1 = vld [vmem:[%s3082_s17 + $0x99] sm:$0xff]  ;;  %v2997_v2 = vld [vmem:[%s3082_s17 + $0x91] sm:$0xff] }
 0x21b   : > { %v3738_v17 = vpop.permute.xlu1 %1819  ;;  %v3740_v18 = vpop.permute.xlu0 %1814 }
 0x21c   : > { %5318 = vst [vmem:[#allocation146_spill] sm:$0xff] %v3738_v17  ;;  %5319 = vst [vmem:[#allocation147_spill] sm:$0xff] %v3740_v18  ;;  %2348 = vperm.xlu1 %3038, %v2994_v33   ;;  %2343 = vperm.xlu0 %3037, %v2993_v34   ;;  %v3000_v33 = vld [vmem:[%s3082_s17 + $0xa9] sm:$0xff]  ;;  %v2999_v34 = vld [vmem:[%s3082_s17 + $0xa1] sm:$0xff] }
 0x21f   : > { %v3744_v42 = vpop.permute.xlu1 %1829  ;;  %v3746_v57 = vpop.permute.xlu0 %1824 }
 0x220   : > { %5320 = vst [vmem:[#allocation148_spill] sm:$0xff] %v3744_v42  ;;  %5321 = vst [vmem:[#allocation149_spill] sm:$0xff] %v3746_v57  ;;  %2358 = vperm.xlu1 %3038, %v2996_v49   ;;  %2353 = vperm.xlu0 %3037, %v2995_v50   ;;  %v2782_v49 = vld [vmem:[%s5171_s1] ss:$0 sm:$0xff]  ;;  %v3001_v57 = vld [vmem:[%s3082_s17 + $0xb1] sm:$0xff] }
 0x221   : > { %v3002_v50 = vld [vmem:[%s3082_s17 + $0xb9] sm:$0xff]  ;;  %v3855_v42 = vmul.f32 %v2782_v49, %v3228_v55  ;;  %v3870_v55 = vmul.f32 %v2782_v49, %v3236_v60  ;;  %v3886_v60 = vmul.f32 %v2782_v49, %v3242_v0 }
 0x223   : > { %v3750_v58 = vpop.permute.xlu1 %1839  ;;  %v3752_v17 = vpop.permute.xlu0 %1834 }
 0x224   : > { %5322 = vst [vmem:[#allocation150_spill] sm:$0xff] %v3750_v58  ;;  %5323 = vst [vmem:[#allocation151_spill] sm:$0xff] %v3752_v17  ;;  %2368 = vperm.xlu1 %3038, %v2998_v1   ;;  %2363 = vperm.xlu0 %3037, %v2997_v2   ;;  %v3766_v58 = vmul.f32 %v2782_v49, %v3150_v3  ;;  %v370_v1 = vmul.f32 %v2782_v49, %v3152_v4 }
 0x225   : > { %v373_v2 = vmul.f32 %v2782_v49, %v3156_v7  ;;  %v3782_v3 = vmul.f32 %v2782_v49, %v3168_v15  ;;  %v3785_v4 = vmul.f32 %v2782_v49, %v3170_v16  ;;  %v3788_v7 = vmul.f32 %v2782_v49, %v3174_v19 }
 0x226   : > { %v3802_v15 = vmul.f32 %v2782_v49, %v3186_v27  ;;  %v3805_v16 = vmul.f32 %v2782_v49, %v3188_v28  ;;  %v3808_v19 = vmul.f32 %v2782_v49, %v3192_v31  ;;  %v3820_v27 = vmul.f32 %v2782_v49, %v3204_v39  ;;  %v3825_v28 = vld [vmem:[%s5171_s1 + $0x1] ss:$0 sm:$0xff] }
 0x227   : > { %v3756_v18 = vpop.permute.xlu1 %1849  ;;  %v3758_v41 = vpop.permute.xlu0 %1844  ;;  %v3841_v39 = vmul.f32 %v2782_v49, %v3216_v47  ;;  %v635_v47 = vmul.f32 %v3825_v28, %v3248_v6  ;;  %v643_v0 = vmul.f32 %v3825_v28, %v3272_v38 }
 0x228   : > { %5324 = vst [vmem:[#allocation152_spill] sm:$0xff] %v3756_v18  ;;  %5325 = vst [vmem:[#allocation153_spill] sm:$0xff] %v3758_v41  ;;  %2378 = vperm.xlu1 %3038, %v3000_v33   ;;  %2373 = vperm.xlu0 %3037, %v2999_v34   ;;  %v371_v18 = vmul.f32 %v2782_v49, %v3158_v8  ;;  %v3776_v33 = vmul.f32 %v2782_v49, %v3162_v11 }
 0x229   : > { %v3779_v34 = vmul.f32 %v2782_v49, %v3164_v12  ;;  %v3791_v8 = vmul.f32 %v2782_v49, %v3176_v20  ;;  %v3794_v11 = vmul.f32 %v2782_v49, %v3180_v23  ;;  %v3003_v12 = vld [vmem:[%s3082_s17 + $0xc1] sm:$0xff]  ;;  %v3811_v20 = vmul.f32 %v2782_v49, %v3194_v32 }
 0x22a   : > { %v3814_v23 = vmul.f32 %v2782_v49, %v3198_v35  ;;  %v3835_v35 = vmul.f32 %v2782_v49, %v3210_v43  ;;  %v3005_v43 = vld [vmem:[%s3082_s17 + $0xd9] sm:$0xff] }
 0x22b   : > { %v3771_v41 = vpop.permute.xlu1 %1859  ;;  %v3773_v17 = vpop.permute.xlu0 %1854 }
 0x22c   : > { %5326 = vst [vmem:[#allocation154_spill] sm:$0xff] %v3771_v41  ;;  %5327 = vst [vmem:[#allocation155_spill] sm:$0xff] %v3773_v17  ;;  %2388 = vperm.xlu1 %3038, %v3002_v50   ;;  %2383 = vperm.xlu0 %3037, %v3001_v57   ;;  %v3004_v17 = vld [vmem:[%s3082_s17 + $0xc9] sm:$0xff]  ;;  %v3799_v41 = vmul.f32 %v2782_v49, %v3182_v24  ;;  %v3817_v24 = vmul.f32 %v2782_v49, %v3200_v36 }
 0x22d   : > { %v3832_v57 = vmul.f32 %v2782_v49, %v3206_v40  ;;  %v3838_v36 = vmul.f32 %v2782_v49, %v3212_v44  ;;  %v3844_v50 = vmul.f32 %v2782_v49, %v3218_v48  ;;  %v3850_v40 = vmul.f32 %v2782_v49, %v3224_v52 }
 0x22e   : > { %v636_v44 = vmul.f32 %v3825_v28, %v3246_v5  ;;  %v638_v48 = vmul.f32 %v3825_v28, %v3252_v13  ;;  %v3867_v52 = vmul.f32 %v2782_v49, %v3234_v59  ;;  %v637_v5 = vmul.f32 %v3825_v28, %v3254_v14 }
 0x22f   : > { %v3827_v31 = vpop.permute.xlu1 %1869  ;;  %v3829_v32 = vpop.permute.xlu0 %1864  ;;  %v3879_v13 = vmul.f32 %v2782_v49, %v3240_v63  ;;  %v639_v59 = vmul.f32 %v3825_v28, %v3260_v22  ;;  %v642_v14 = vmul.f32 %v3825_v28, %v3264_v29  ;;  %v644_v63 = vmul.f32 %v3825_v28, %v3270_v37 }
 0x230   : > { %5328 = vst [vmem:[#allocation156_spill] sm:$0xff] %v3827_v31  ;;  %5329 = vst [vmem:[#allocation157_spill] sm:$0xff] %v3829_v32  ;;  %2398 = vperm.xlu1 %3038, %v3004_v17   ;;  %2393 = vperm.xlu0 %3037, %v3003_v12   ;;  %v3847_v31 = vmul.f32 %v2782_v49, %v3222_v51  ;;  %v3006_v32 = vld [vmem:[%s3082_s17 + $0xe1] sm:$0xff]  ;;  %v3864_v51 = vmul.f32 %v2782_v49, %v3230_v56 }
 0x231   : > { %5332 = vst [vmem:[#allocation160_spill] sm:$0xff] %v3879_v13  ;;  %v640_v56 = vmul.f32 %v3825_v28, %v3258_v21  ;;  %v641_v12 = vmul.f32 %v3825_v28, %v3266_v30  ;;  %v3896_v21 = vadd.f32 %v636_v44, %v371_v18  ;;  %v3898_v13 = vadd.f32 %v635_v47, %v370_v1  ;;  %v5333_v47 = vld [vmem:[#allocation2_spill] sm:$0xff] }
 0x232   : > { %v3900_v22 = vadd.f32 %v638_v48, %v373_v2  ;;  %v3905_v29 = vadd.f32 %v637_v5, %v3766_v58  ;;  %v646_v30 = vmul.f32 %v3825_v28, %v3276_v45  ;;  %v645_v37 = vmul.f32 %v3825_v28, %v3278_v46  ;;  %v5334_v48 = vld [vmem:[#allocation3_spill] sm:$0xff]  ;;  %v5335_v5 = vld [vmem:[#allocation4_spill] sm:$0xff] }
 0x233   : > { %v3874_v17 = vpop.permute.xlu1 %1879  ;;  %v3876_v6 = vpop.permute.xlu0 %1874  ;;  %v648_v18 = vmul.f32 %v3825_v28, %v3282_v53  ;;  %v3918_v38 = vadd.f32 %v640_v56, %v3776_v33  ;;  %v3921_v58 = vadd.f32 %v639_v59, %v3779_v34  ;;  %v647_v2 = vmul.f32 %v3825_v28, %v3284_v54  ;;  %v3009_v34 = vld [vmem:[%s3082_s17 + $0xf9] sm:$0xff]  ;;  %v3012_v56 = vld [vmem:[%s3082_s17 + $0x111] sm:$0xff]  ;;  %v3011_v59 = vld [vmem:[%s3082_s17 + $0x109] sm:$0xff] }
 0x234   : > { %5330 = vst [vmem:[#allocation158_spill] sm:$0xff] %v3874_v17  ;;  %5331 = vst [vmem:[#allocation159_spill] sm:$0xff] %v3876_v6  ;;  %2408 = vperm.xlu1 %3038, %v3006_v32   ;;  %2403 = vperm.xlu0 %3037, %v3005_v43   ;;  %v3008_v6 = vld [vmem:[%s3082_s17 + $0xf1] sm:$0xff]  ;;  %v3007_v17 = vld [vmem:[%s3082_s17 + $0xe9] sm:$0xff]  ;;  %v3926_v45 = vadd.f32 %v642_v14, %v3782_v3  ;;  %v3929_v46 = vadd.f32 %v641_v12, %v3785_v4 }
 0x235   : > { %v3932_v53 = vadd.f32 %v644_v63, %v3788_v7  ;;  %v650_v33 = vmul.f32 %v3825_v28, %v3288_v61  ;;  %v3010_v32 = vld [vmem:[%s3082_s17 + $0x101] sm:$0xff]  ;;  %v3939_v43 = vadd.f32 %v643_v0, %v3791_v8  ;;  %v649_v54 = vmul.f32 %v3825_v28, %v3290_v62 }
 0x236   : > { %v652_v3 = vmul.f32 %v3825_v28, %v3294_v9  ;;  %v651_v4 = vmul.f32 %v3825_v28, %v3296_v10  ;;  %v3948_v7 = vadd.f32 %v646_v30, %v3794_v11  ;;  %v3951_v61 = vadd.f32 %v645_v37, %v3799_v41  ;;  %v5337_v12 = vld [vmem:[#allocation6_spill] sm:$0xff]  ;;  %v5338_v30 = vld [vmem:[#allocation7_spill] sm:$0xff] }
 0x237   : > { %v3913_v49 = vpop.permute.xlu1 %1889  ;;  %v3915_v1 = vpop.permute.xlu0 %1884  ;;  %v3954_v8 = vadd.f32 %v648_v18, %v3802_v15  ;;  %v654_v62 = vmul.f32 %v3825_v28, %v3300_v25  ;;  %v3963_v10 = vadd.f32 %v647_v2, %v3805_v16  ;;  %v653_v11 = vmul.f32 %v3825_v28, %v3302_v26  ;;  %v5339_v18 = vld [vmem:[#allocation8_spill] sm:$0xff]  ;;  %v5340_v2 = vld [vmem:[#allocation9_spill] sm:$0xff] }
 0x238   : > { %2418 = vperm.xlu1 %3038, %v3008_v6   ;;  %2413 = vperm.xlu0 %3037, %v3007_v17   ;;  %v656_v41 = vmul.f32 %v3825_v28, %v5333_v47  ;;  %v3970_v15 = vadd.f32 %v650_v33, %v3808_v19  ;;  %v655_v25 = vmul.f32 %v3825_v28, %v5334_v48  ;;  %v5336_v6 = vld [vmem:[#allocation5_spill] sm:$0xff]  ;;  %v5343_v48 = vld [vmem:[#allocation11_spill] sm:$0xff] }
 0x239   : > { %v658_v17 = vmul.f32 %v3825_v28, %v5335_v5  ;;  %v657_v16 = vmul.f32 %v3825_v28, %v5336_v6  ;;  %v3981_v26 = vadd.f32 %v649_v54, %v3811_v20  ;;  %v3984_v14 = vadd.f32 %v652_v3, %v3814_v23  ;;  %v5342_v54 = vld [vmem:[#allocation10_spill] sm:$0xff]  ;;  %v5344_v5 = vld [vmem:[#allocation12_spill] sm:$0xff] }
 0x23a   : > { %v3987_v19 = vadd.f32 %v651_v4, %v3817_v24  ;;  %v660_v63 = vmul.f32 %v3825_v28, %v5337_v12  ;;  %v3992_v0 = vadd.f32 %v654_v62, %v3820_v27  ;;  %v659_v37 = vmul.f32 %v3825_v28, %v5338_v30  ;;  %v4003_v24 = vld [vmem:[%s5171_s1 + $0x2] ss:$0 sm:$0xff]  ;;  %v5350_v30 = vld [vmem:[#allocation16_spill] sm:$0xff] }
 0x23b   : > { %v3958_v44 = vpop.permute.xlu1 %1899  ;;  %v3960_v9 = vpop.permute.xlu0 %1894  ;;  %v662_v20 = vmul.f32 %v3825_v28, %v5339_v18  ;;  %v661_v23 = vmul.f32 %v3825_v28, %v5340_v2  ;;  %v664_v3 = vmul.f32 %v3825_v28, %v5342_v54  ;;  %v4018_v4 = vadd.f32 %v655_v25, %v3838_v36  ;;  %v5346_v25 = vld [vmem:[#allocation14_spill] sm:$0xff]  ;;  %v5353_v2 = vld [vmem:[#allocation19_spill] sm:$0xff]  ;;  %v5354_v54 = vld [vmem:[#allocation44_spill] sm:$0xff] }
 0x23c   : > { %2428 = vperm.xlu1 %3038, %v3010_v32   ;;  %2423 = vperm.xlu0 %3037, %v3009_v34   ;;  %v4010_v32 = vadd.f32 %v653_v11, %v3832_v57  ;;  %v4013_v34 = vadd.f32 %v656_v41, %v3835_v35  ;;  %v4021_v62 = vadd.f32 %v658_v17, %v3841_v39  ;;  %v3014_v11 = vld [vmem:[%s3082_s17 + $0x129] sm:$0xff]  ;;  %v3013_v35 = vld [vmem:[%s3082_s17 + $0x121] sm:$0xff] }
 0x23d   : > { %v4024_v47 = vadd.f32 %v657_v16, %v3844_v50  ;;  %v663_v57 = vmul.f32 %v3825_v28, %v5343_v48  ;;  %v4031_v41 = vadd.f32 %v660_v63, %v3847_v31  ;;  %v666_v6 = vmul.f32 %v3825_v28, %v5344_v5  ;;  %v5347_v16 = vld [vmem:[#allocation15_spill] sm:$0xff]  ;;  %v5352_v18 = vld [vmem:[#allocation18_spill] sm:$0xff]  ;;  %v3015_v48 = vld [vmem:[%s3082_s17 + $0x131] sm:$0xff] }
 0x23e   : > { %v900_v39 = vmul.f32 %v4003_v24, %v5346_v25  ;;  %v4040_v50 = vadd.f32 %v659_v37, %v3850_v40  ;;  %v4043_v17 = vadd.f32 %v662_v20, %v3855_v42  ;;  %v4046_v31 = vadd.f32 %v661_v23, %v3864_v51  ;;  %v5351_v37 = vld [vmem:[#allocation17_spill] sm:$0xff]  ;;  %v5355_v5 = vld [vmem:[#allocation160_spill] sm:$0xff] }
 0x23f   : > { %v4005_v33 = vpop.permute.xlu1 %1909  ;;  %v4007_v27 = vpop.permute.xlu0 %1904  ;;  %v4055_v63 = vadd.f32 %v664_v3, %v3867_v52  ;;  %v902_v40 = vmul.f32 %v4003_v24, %v5350_v30  ;;  %v901_v42 = vmul.f32 %v4003_v24, %v5351_v37  ;;  %v4062_v51 = vadd.f32 %v663_v57, %v3870_v55  ;;  %v3016_v3 = vld [vmem:[%s3082_s17 + $0x139] sm:$0xff]  ;;  %v5357_v30 = vld [vmem:[#allocation20_spill] sm:$0xff] }
 0x240   : > { %5341 = vst [vmem:[#allocation2_spill] sm:$0xff] %v4007_v27  ;;  %2438 = vperm.xlu1 %3038, %v3012_v56   ;;  %2433 = vperm.xlu0 %3037, %v3011_v59   ;;  %v5345_v56 = vld [vmem:[#allocation13_spill] sm:$0xff]  ;;  %v899_v59 = vmul.f32 %v4003_v24, %v5347_v16  ;;  %v904_v20 = vmul.f32 %v4003_v24, %v5352_v18 }
 0x241   : > { %v665_v36 = vmul.f32 %v3825_v28, %v5345_v56  ;;  %v903_v23 = vmul.f32 %v4003_v24, %v5353_v2  ;;  %v930_v52 = vmul.f32 %v4003_v24, %v5354_v54  ;;  %v698_v56 = vadd.f32 %v666_v6, %v5355_v5  ;;  %v5356_v55 = vld [vmem:[#allocation45_spill] sm:$0xff]  ;;  %v4108_v5 = vld [vmem:[%s5171_s1 + $0x4] ss:$0 sm:$0xff] }
 0x242   : > { %v929_v57 = vmul.f32 %v4003_v24, %v5356_v55  ;;  %v4085_v16 = vadd.f32 %v899_v59, %v3898_v13  ;;  %v906_v6 = vmul.f32 %v4003_v24, %v5357_v30  ;;  %v5358_v37 = vld [vmem:[#allocation21_spill] sm:$0xff]  ;;  %v4098_v2 = vadd.f32 %v902_v40, %v3900_v22  ;;  %v5363_v40 = vld [vmem:[#allocation108_spill] sm:$0xff] }
 0x243   : > { %v4050_v12 = vpop.permute.xlu1 %1919  ;;  %v4052_v28 = vpop.permute.xlu0 %1914  ;;  %v697_v25 = vadd.f32 %v665_v36, %v3886_v60  ;;  %v905_v60 = vmul.f32 %v4003_v24, %v5358_v37  ;;  %v4101_v13 = vadd.f32 %v901_v42, %v3905_v29  ;;  %v5362_v59 = vld [vmem:[#allocation77_spill] sm:$0xff]  ;;  %v4111_v55 = vadd.f32 %v904_v20, %v3918_v38  ;;  %v3018_v42 = vld [vmem:[%s3082_s17 + $0x149] sm:$0xff]  ;;  %v3017_v37 = vld [vmem:[%s3082_s17 + $0x141] sm:$0xff] }
 0x244   : > { %5348 = vst [vmem:[#allocation3_spill] sm:$0xff] %v4050_v12  ;;  %5349 = vst [vmem:[#allocation4_spill] sm:$0xff] %v4052_v28  ;;  %2448 = vperm.xlu1 %3038, %v3014_v11   ;;  %2443 = vperm.xlu0 %3037, %v3013_v35   ;;  %v4075_v11 = vadd.f32 %v900_v39, %v3896_v21  ;;  %v4082_v35 = vld [vmem:[%s5171_s1 + $0x3] ss:$0 sm:$0xff]  ;;  %v5359_v21 = vld [vmem:[#allocation76_spill] sm:$0xff]  ;;  %v4114_v30 = vadd.f32 %v903_v23, %v3921_v58 }
 0x245   : > { %v1195_v36 = vmul.f32 %v4082_v35, %v5359_v21  ;;  %v1194_v54 = vmul.f32 %v4082_v35, %v5362_v59  ;;  %v962_v22 = vadd.f32 %v930_v52, %v698_v56  ;;  %v1460_v29 = vmul.f32 %v4108_v5, %v5363_v40  ;;  %v5364_v21 = vld [vmem:[#allocation22_spill] sm:$0xff]  ;;  %v5367_v56 = vld [vmem:[#allocation140_spill] sm:$0xff]  ;;  %v5371_v28 = vld [vmem:[#allocation141_spill] sm:$0xff] }
 0x246   : > { %v908_v59 = vmul.f32 %v4003_v24, %v5364_v21  ;;  %v4129_v58 = vld [vmem:[%s5171_s1 + $0x5] ss:$0 sm:$0xff]  ;;  %v4132_v20 = vadd.f32 %v906_v6, %v3926_v45  ;;  %v4135_v23 = vadd.f32 %v905_v60, %v3929_v46  ;;  %v5370_v40 = vld [vmem:[#allocation24_spill] sm:$0xff]  ;;  %v5372_v6 = vld [vmem:[#allocation25_spill] sm:$0xff] }
 0x247   : > { %v4093_v39 = vpop.permute.xlu1 %1929  ;;  %v4095_v18 = vpop.permute.xlu0 %1924  ;;  %v1227_v52 = vadd.f32 %v1195_v36, %v962_v22  ;;  %v910_v21 = vmul.f32 %v4003_v24, %v5370_v40  ;;  %v1723_v45 = vmul.f32 %v4129_v58, %v5371_v28  ;;  %v909_v46 = vmul.f32 %v4003_v24, %v5372_v6  ;;  %v5373_v60 = vld [vmem:[#allocation26_spill] sm:$0xff]  ;;  %v5374_v22 = vld [vmem:[#allocation27_spill] sm:$0xff]  ;;  %v3019_v12 = vld [vmem:[%s3082_s17 + $0x151] sm:$0xff] }
 0x248   : > { %5360 = vst [vmem:[#allocation5_spill] sm:$0xff] %v4093_v39  ;;  %5361 = vst [vmem:[#allocation6_spill] sm:$0xff] %v4095_v18  ;;  %2458 = vperm.xlu1 %3038, %v3016_v3   ;;  %2453 = vperm.xlu0 %3037, %v3015_v48   ;;  %v5365_v18 = vld [vmem:[#allocation23_spill] sm:$0xff]  ;;  %v961_v3 = vadd.f32 %v929_v57, %v697_v25  ;;  %v5366_v48 = vld [vmem:[#allocation109_spill] sm:$0xff]  ;;  %v1724_v25 = vmul.f32 %v4129_v58, %v5367_v56 }
 0x249   : > { %v907_v39 = vmul.f32 %v4003_v24, %v5365_v18  ;;  %v1459_v38 = vmul.f32 %v4108_v5, %v5366_v48  ;;  %v912_v36 = vmul.f32 %v4003_v24, %v5373_v60  ;;  %v911_v56 = vmul.f32 %v4003_v24, %v5374_v22  ;;  %v5375_v28 = vld [vmem:[#allocation28_spill] sm:$0xff]  ;;  %v5377_v60 = vld [vmem:[#allocation30_spill] sm:$0xff]  ;;  %v5378_v22 = vld [vmem:[#allocation31_spill] sm:$0xff] }
 0x24a   : > { %v1226_v48 = vadd.f32 %v1194_v54, %v961_v3  ;;  %v4156_v40 = vadd.f32 %v908_v59, %v3932_v53  ;;  %v5376_v3 = vld [vmem:[#allocation29_spill] sm:$0xff]  ;;  %v916_v27 = vmul.f32 %v4003_v24, %v5377_v60  ;;  %v4172_v53 = vld [vmem:[%s5171_s1 + $0x6] ss:$0 sm:$0xff]  ;;  %v5379_v60 = vld [vmem:[#allocation32_spill] sm:$0xff] }
 0x24b   : > { %v4139_v57 = vpop.permute.xlu1 %1939  ;;  %v4141_v18 = vpop.permute.xlu0 %1934  ;;  %v4159_v54 = vadd.f32 %v907_v39, %v3939_v43  ;;  %v913_v6 = vmul.f32 %v4003_v24, %v5376_v3  ;;  %v4180_v3 = vadd.f32 %v909_v46, %v3951_v61 }
 0x24c   : > { %5368 = vst [vmem:[#allocation7_spill] sm:$0xff] %v4139_v57  ;;  %5369 = vst [vmem:[#allocation8_spill] sm:$0xff] %v4141_v18  ;;  %2468 = vperm.xlu1 %3038, %v3018_v42   ;;  %2463 = vperm.xlu0 %3037, %v3017_v37   ;;  %v1492_v57 = vadd.f32 %v1460_v29, %v1227_v52  ;;  %v3020_v18 = vld [vmem:[%s3082_s17 + $0x159] sm:$0xff]  ;;  %v914_v42 = vmul.f32 %v4003_v24, %v5375_v28 }
 0x24d   : > { %v1491_v37 = vadd.f32 %v1459_v38, %v1226_v48  ;;  %v915_v29 = vmul.f32 %v4003_v24, %v5378_v22  ;;  %v4177_v28 = vadd.f32 %v910_v21, %v3948_v7  ;;  %v4200_v61 = vadd.f32 %v913_v6, %v3981_v26  ;;  %v5384_v21 = vld [vmem:[#allocation35_spill] sm:$0xff] }
 0x24e   : > { %v1756_v52 = vadd.f32 %v1724_v25, %v1492_v57  ;;  %v4183_v25 = vadd.f32 %v912_v36, %v3954_v8  ;;  %v4186_v57 = vadd.f32 %v911_v56, %v3963_v10  ;;  %v4197_v7 = vadd.f32 %v914_v42, %v3970_v15  ;;  %v5383_v8 = vld [vmem:[#allocation34_spill] sm:$0xff]  ;;  %v5385_v15 = vld [vmem:[#allocation36_spill] sm:$0xff]  ;;  %v5386_v42 = vld [vmem:[#allocation37_spill] sm:$0xff] }
 0x24f   : > { %v1950_v43 = vpop.permute.xlu1 %1949  ;;  %v1945_v39 = vpop.permute.xlu0 %1944  ;;  %v1755_v59 = vadd.f32 %v1723_v45, %v1491_v37  ;;  %v918_v45 = vmul.f32 %v4003_v24, %v5379_v60  ;;  %v5380_v37 = vld [vmem:[#allocation33_spill] sm:$0xff]  ;;  %v920_v10 = vmul.f32 %v4003_v24, %v5383_v8  ;;  %v919_v46 = vmul.f32 %v4003_v24, %v5384_v21  ;;  %v5389_v60 = vld [vmem:[#allocation40_spill] sm:$0xff]  ;;  %v5391_v8 = vld [vmem:[#allocation42_spill] sm:$0xff] }
 0x250   : > { %v1989_v38 = vmul.f32 %v4172_v53, %v1950_v43  ;;  %v1988_v48 = vmul.f32 %v4172_v53, %v1945_v39  ;;  %2478 = vperm.xlu1 %3038, %v3020_v18   ;;  %2473 = vperm.xlu0 %3037, %v3019_v12   ;;  %v917_v22 = vmul.f32 %v4003_v24, %v5380_v37  ;;  %v5387_v39 = vld [vmem:[#allocation38_spill] sm:$0xff] }
 0x251   : > { %v4214_v43 = vadd.f32 %v915_v29, %v3987_v19  ;;  %v922_v26 = vmul.f32 %v4003_v24, %v5385_v15  ;;  %v921_v6 = vmul.f32 %v4003_v24, %v5386_v42  ;;  %v926_v37 = vmul.f32 %v4003_v24, %v5389_v60  ;;  %v5392_v15 = vld [vmem:[#allocation43_spill] sm:$0xff]  ;;  %v5393_v60 = vld [vmem:[#allocation46_spill] sm:$0xff] }
 0x252   : > { %v4192_v18 = vadd.f32 %v1989_v38, %v1756_v52  ;;  %v4194_v12 = vadd.f32 %v1988_v48, %v1755_v59  ;;  %v4211_v52 = vadd.f32 %v916_v27, %v3984_v14  ;;  %v924_v59 = vmul.f32 %v4003_v24, %v5387_v39  ;;  %v5388_v38 = vld [vmem:[#allocation39_spill] sm:$0xff]  ;;  %v5390_v14 = vld [vmem:[#allocation41_spill] sm:$0xff] }
 0x253   : > { %v4206_v36 = vpop.permute.xlu1 %2064  ;;  %v4208_v56 = vpop.permute.xlu0 %2059  ;;  %v923_v48 = vmul.f32 %v4003_v24, %v5388_v38  ;;  %v925_v27 = vmul.f32 %v4003_v24, %v5390_v14  ;;  %v4229_v19 = vadd.f32 %v918_v45, %v3992_v0  ;;  %v4232_v29 = vadd.f32 %v917_v22, %v4010_v32  ;;  %v5394_v0 = vld [vmem:[#allocation47_spill] sm:$0xff] }
 0x254   : > { %5381 = vst [vmem:[#allocation9_spill] sm:$0xff] %v4192_v18  ;;  %5382 = vst [vmem:[#allocation10_spill] sm:$0xff] %v4194_v12  ;;  %v928_v21 = vmul.f32 %v4003_v24, %v5391_v8  ;;  %v927_v42 = vmul.f32 %v4003_v24, %v5392_v15  ;;  %v4239_v39 = vadd.f32 %v920_v10, %v4013_v34  ;;  %v5395_v34 = vld [vmem:[#allocation48_spill] sm:$0xff]  ;;  %v5396_v10 = vld [vmem:[#allocation49_spill] sm:$0xff] }
 0x255   : > { %v4242_v38 = vadd.f32 %v919_v46, %v4018_v4  ;;  %v1165_v14 = vmul.f32 %v4082_v35, %v5393_v60  ;;  %v1164_v45 = vmul.f32 %v4082_v35, %v5394_v0  ;;  %v4253_v8 = vadd.f32 %v922_v26, %v4021_v62  ;;  %v5409_v18 = vld [vmem:[#allocation61_spill] sm:$0xff] }
 0x256   : > { %v4256_v24 = vadd.f32 %v921_v6, %v4024_v47  ;;  %v1167_v4 = vmul.f32 %v4082_v35, %v5395_v34  ;;  %v1166_v46 = vmul.f32 %v4082_v35, %v5396_v10  ;;  %v4263_v15 = vadd.f32 %v924_v59, %v4031_v41  ;;  %v5397_v6 = vld [vmem:[#allocation50_spill] sm:$0xff]  ;;  %v5398_v41 = vld [vmem:[#allocation51_spill] sm:$0xff]  ;;  %v5404_v10 = vld [vmem:[#allocation56_spill] sm:$0xff] }
 0x257   : > { %v4248_v32 = vpop.permute.xlu1 %2074  ;;  %v4250_v22 = vpop.permute.xlu0 %2069  ;;  %v4266_v60 = vadd.f32 %v923_v48, %v4040_v50  ;;  %v4269_v0 = vadd.f32 %v926_v37, %v4043_v17  ;;  %v4272_v62 = vadd.f32 %v925_v27, %v4046_v31  ;;  %v4275_v47 = vadd.f32 %v928_v21, %v4055_v63  ;;  %v5399_v31 = vld [vmem:[#allocation52_spill] sm:$0xff]  ;;  %v5400_v63 = vld [vmem:[#allocation53_spill] sm:$0xff] }
 0x258   : > { %v4278_v26 = vadd.f32 %v927_v42, %v4062_v51  ;;  %v1169_v34 = vmul.f32 %v4082_v35, %v5397_v6  ;;  %v1168_v59 = vmul.f32 %v4082_v35, %v5398_v41  ;;  %v4285_v50 = vadd.f32 %v1165_v14, %v4075_v11  ;;  %v5402_v11 = vld [vmem:[#allocation54_spill] sm:$0xff]  ;;  %v5403_v14 = vld [vmem:[#allocation55_spill] sm:$0xff]  ;;  %v5405_v41 = vld [vmem:[#allocation57_spill] sm:$0xff] }
 0x259   : > { %v4288_v17 = vadd.f32 %v1164_v45, %v4085_v16  ;;  %v1171_v48 = vmul.f32 %v4082_v35, %v5399_v31  ;;  %v1170_v37 = vmul.f32 %v4082_v35, %v5400_v63  ;;  %v4299_v21 = vadd.f32 %v1167_v4, %v4098_v2  ;;  %v5406_v63 = vld [vmem:[#allocation58_spill] sm:$0xff]  ;;  %v5407_v2 = vld [vmem:[#allocation59_spill] sm:$0xff] }
 0x25a   : > { %v4302_v42 = vadd.f32 %v1166_v46, %v4101_v13  ;;  %v1173_v16 = vmul.f32 %v4082_v35, %v5402_v11  ;;  %v1172_v45 = vmul.f32 %v4082_v35, %v5403_v14  ;;  %v1175_v6 = vmul.f32 %v4082_v35, %v5404_v10  ;;  %v5408_v11 = vld [vmem:[#allocation60_spill] sm:$0xff] }
 0x25b   : > { %v4294_v51 = vpop.permute.xlu1 %2084  ;;  %v4296_v27 = vpop.permute.xlu0 %2079  ;;  %v1174_v31 = vmul.f32 %v4082_v35, %v5405_v41  ;;  %v1177_v12 = vmul.f32 %v4082_v35, %v5406_v63  ;;  %v1176_v4 = vmul.f32 %v4082_v35, %v5407_v2  ;;  %v4317_v13 = vadd.f32 %v1169_v34, %v4111_v55  ;;  %v5411_v55 = vld [vmem:[#allocation63_spill] sm:$0xff] }
 0x25c   : > { %5401 = vst [vmem:[#allocation11_spill] sm:$0xff] %v4296_v27  ;;  %v4320_v46 = vadd.f32 %v1168_v59, %v4114_v30  ;;  %v1179_v14 = vmul.f32 %v4082_v35, %v5408_v11  ;;  %v1178_v10 = vmul.f32 %v4082_v35, %v5409_v18  ;;  %v4327_v41 = vadd.f32 %v1171_v48, %v4132_v20  ;;  %v5410_v27 = vld [vmem:[#allocation62_spill] sm:$0xff]  ;;  %v5414_v20 = vld [vmem:[#allocation64_spill] sm:$0xff]  ;;  %v5415_v48 = vld [vmem:[#allocation65_spill] sm:$0xff] }
 0x25d   : > { %v4330_v63 = vadd.f32 %v1170_v37, %v4135_v23  ;;  %v1181_v2 = vmul.f32 %v4082_v35, %v5410_v27  ;;  %v1180_v34 = vmul.f32 %v4082_v35, %v5411_v55  ;;  %v4341_v11 = vadd.f32 %v1173_v16, %v4156_v40 }
 0x25e   : > { %v4344_v18 = vadd.f32 %v1172_v45, %v4159_v54  ;;  %v1183_v23 = vmul.f32 %v4082_v35, %v5414_v20  ;;  %v1182_v37 = vmul.f32 %v4082_v35, %v5415_v48  ;;  %v4351_v27 = vadd.f32 %v1175_v6, %v4177_v28  ;;  %v5416_v45 = vld [vmem:[#allocation66_spill] sm:$0xff]  ;;  %v5417_v28 = vld [vmem:[#allocation67_spill] sm:$0xff]  ;;  %v5424_v48 = vld [vmem:[#allocation72_spill] sm:$0xff] }
 0x25f   : > { %v4336_v30 = vpop.permute.xlu1 %2094  ;;  %v4338_v59 = vpop.permute.xlu0 %2089  ;;  %v4354_v55 = vadd.f32 %v1174_v31, %v4180_v3  ;;  %v4360_v40 = vadd.f32 %v1176_v4, %v4186_v57  ;;  %v4363_v54 = vadd.f32 %v1179_v14, %v4197_v7  ;;  %v4366_v16 = vadd.f32 %v1178_v10, %v4200_v61  ;;  %v5418_v57 = vld [vmem:[#allocation68_spill] sm:$0xff]  ;;  %v5419_v7 = vld [vmem:[#allocation69_spill] sm:$0xff] }
 0x260   : > { %5412 = vst [vmem:[#allocation12_spill] sm:$0xff] %v4336_v30  ;;  %5413 = vst [vmem:[#allocation13_spill] sm:$0xff] %v4338_v59  ;;  %v4357_v59 = vadd.f32 %v1177_v12, %v4183_v25  ;;  %v1185_v20 = vmul.f32 %v4082_v35, %v5416_v45  ;;  %v1184_v6 = vmul.f32 %v4082_v35, %v5417_v28  ;;  %v5425_v28 = vld [vmem:[#allocation73_spill] sm:$0xff]  ;;  %v5430_v30 = vld [vmem:[#allocation80_spill] sm:$0xff] }
 0x261   : > { %v4373_v3 = vadd.f32 %v1181_v2, %v4211_v52  ;;  %v4376_v25 = vadd.f32 %v1180_v34, %v4214_v43  ;;  %v1187_v12 = vmul.f32 %v4082_v35, %v5418_v57  ;;  %v1186_v31 = vmul.f32 %v4082_v35, %v5419_v7  ;;  %v5422_v52 = vld [vmem:[#allocation70_spill] sm:$0xff]  ;;  %v5423_v2 = vld [vmem:[#allocation71_spill] sm:$0xff] }
 0x262   : > { %v4387_v14 = vadd.f32 %v1183_v23, %v4229_v19  ;;  %v4390_v10 = vadd.f32 %v1182_v37, %v4232_v29  ;;  %v1189_v43 = vmul.f32 %v4082_v35, %v5422_v52  ;;  %v1188_v34 = vmul.f32 %v4082_v35, %v5423_v2  ;;  %v5426_v7 = vld [vmem:[#allocation74_spill] sm:$0xff]  ;;  %v5427_v19 = vld [vmem:[#allocation75_spill] sm:$0xff] }
 0x263   : > { %v4382_v61 = vpop.permute.xlu1 %2104  ;;  %v4384_v4 = vpop.permute.xlu0 %2099  ;;  %v1191_v45 = vmul.f32 %v4082_v35, %v5424_v48  ;;  %v1190_v57 = vmul.f32 %v4082_v35, %v5425_v28  ;;  %v1192_v23 = vmul.f32 %v4082_v35, %v5427_v19  ;;  %v4405_v29 = vadd.f32 %v1185_v20, %v4239_v39  ;;  %v5428_v52 = vld [vmem:[#allocation78_spill] sm:$0xff]  ;;  %v5431_v39 = vld [vmem:[#allocation81_spill] sm:$0xff] }
 0x264   : > { %5420 = vst [vmem:[#allocation14_spill] sm:$0xff] %v4382_v61  ;;  %5421 = vst [vmem:[#allocation15_spill] sm:$0xff] %v4384_v4  ;;  %v1193_v4 = vmul.f32 %v4082_v35, %v5426_v7  ;;  %v4408_v37 = vadd.f32 %v1184_v6, %v4242_v38  ;;  %v1430_v2 = vmul.f32 %v4108_v5, %v5428_v52  ;;  %v5429_v61 = vld [vmem:[#allocation79_spill] sm:$0xff] }
 0x265   : > { %v1429_v48 = vmul.f32 %v4108_v5, %v5429_v61  ;;  %v4415_v28 = vadd.f32 %v1187_v12, %v4253_v8  ;;  %v4418_v7 = vadd.f32 %v1186_v31, %v4256_v24  ;;  %v1432_v35 = vmul.f32 %v4108_v5, %v5430_v30  ;;  %v5433_v8 = vld [vmem:[#allocation82_spill] sm:$0xff]  ;;  %v5434_v12 = vld [vmem:[#allocation83_spill] sm:$0xff] }
 0x266   : > { %v1431_v20 = vmul.f32 %v4108_v5, %v5431_v39  ;;  %v4429_v19 = vadd.f32 %v1189_v43, %v4263_v15  ;;  %v4432_v61 = vadd.f32 %v1188_v34, %v4266_v60  ;;  %v1434_v24 = vmul.f32 %v4108_v5, %v5433_v8  ;;  %v5435_v34 = vld [vmem:[#allocation84_spill] sm:$0xff] }
 0x267   : > { %v4424_v38 = vpop.permute.xlu1 %2114  ;;  %v4426_v6 = vpop.permute.xlu0 %2109  ;;  %v1433_v31 = vmul.f32 %v4108_v5, %v5434_v12  ;;  %v4439_v30 = vadd.f32 %v1191_v45, %v4269_v0  ;;  %v4442_v52 = vadd.f32 %v1190_v57, %v4272_v62  ;;  %v4445_v39 = vadd.f32 %v1193_v4, %v4275_v47  ;;  %v5436_v0 = vld [vmem:[#allocation85_spill] sm:$0xff]  ;;  %v5443_v12 = vld [vmem:[#allocation90_spill] sm:$0xff] }
 0x268   : > { %5432 = vst [vmem:[#allocation16_spill] sm:$0xff] %v4426_v6  ;;  %v4448_v15 = vadd.f32 %v1192_v23, %v4278_v26  ;;  %v4451_v60 = vadd.f32 %v1430_v2, %v4285_v50  ;;  %v4454_v43 = vadd.f32 %v1429_v48, %v4288_v17  ;;  %v1436_v8 = vmul.f32 %v4108_v5, %v5435_v34  ;;  %v5437_v26 = vld [vmem:[#allocation86_spill] sm:$0xff]  ;;  %v5438_v50 = vld [vmem:[#allocation87_spill] sm:$0xff]  ;;  %v5449_v6 = vld [vmem:[#allocation96_spill] sm:$0xff] }
 0x269   : > { %v1435_v45 = vmul.f32 %v4108_v5, %v5436_v0  ;;  %v4461_v62 = vadd.f32 %v1432_v35, %v4299_v21  ;;  %v4464_v47 = vadd.f32 %v1431_v20, %v4302_v42  ;;  %v1438_v4 = vmul.f32 %v4108_v5, %v5437_v26  ;;  %v5441_v21 = vld [vmem:[#allocation88_spill] sm:$0xff]  ;;  %v5442_v35 = vld [vmem:[#allocation89_spill] sm:$0xff]  ;;  %v5444_v0 = vld [vmem:[#allocation91_spill] sm:$0xff] }
 0x26a   : > { %v1437_v57 = vmul.f32 %v4108_v5, %v5438_v50  ;;  %v4475_v2 = vadd.f32 %v1434_v24, %v4317_v13  ;;  %v4478_v48 = vadd.f32 %v1433_v31, %v4320_v46  ;;  %v1440_v42 = vmul.f32 %v4108_v5, %v5441_v21  ;;  %v5445_v50 = vld [vmem:[#allocation92_spill] sm:$0xff]  ;;  %v5446_v13 = vld [vmem:[#allocation93_spill] sm:$0xff]  ;;  %v5447_v21 = vld [vmem:[#allocation94_spill] sm:$0xff] }
 0x26b   : > { %v4470_v17 = vpop.permute.xlu1 %2124  ;;  %v4472_v23 = vpop.permute.xlu0 %2119  ;;  %v1439_v20 = vmul.f32 %v4108_v5, %v5442_v35  ;;  %v1442_v34 = vmul.f32 %v4108_v5, %v5443_v12  ;;  %v1441_v26 = vmul.f32 %v4108_v5, %v5444_v0  ;;  %v1443_v24 = vmul.f32 %v4108_v5, %v5446_v13 }
 0x26c   : > { %5439 = vst [vmem:[#allocation17_spill] sm:$0xff] %v4470_v17  ;;  %5440 = vst [vmem:[#allocation18_spill] sm:$0xff] %v4472_v23  ;;  %v1444_v23 = vmul.f32 %v4108_v5, %v5445_v50  ;;  %v4493_v46 = vadd.f32 %v1436_v8, %v4327_v41  ;;  %v4496_v31 = vadd.f32 %v1435_v45, %v4330_v63  ;;  %v5448_v17 = vld [vmem:[#allocation95_spill] sm:$0xff]  ;;  %v5450_v41 = vld [vmem:[#allocation97_spill] sm:$0xff] }
 0x26d   : > { %v1446_v35 = vmul.f32 %v4108_v5, %v5447_v21  ;;  %v1445_v12 = vmul.f32 %v4108_v5, %v5448_v17  ;;  %v4503_v0 = vadd.f32 %v1438_v4, %v4341_v11  ;;  %v4506_v50 = vadd.f32 %v1437_v57, %v4344_v18  ;;  %v5452_v11 = vld [vmem:[#allocation98_spill] sm:$0xff]  ;;  %v5453_v4 = vld [vmem:[#allocation99_spill] sm:$0xff] }
 0x26e   : > { %v1448_v13 = vmul.f32 %v4108_v5, %v5449_v6  ;;  %v1447_v8 = vmul.f32 %v4108_v5, %v5450_v41  ;;  %v4517_v21 = vadd.f32 %v1440_v42, %v4351_v27  ;;  %v4520_v17 = vadd.f32 %v1439_v20, %v4354_v55  ;;  %v5454_v20 = vld [vmem:[#allocation100_spill] sm:$0xff] }
 0x26f   : > { %v4512_v63 = vpop.permute.xlu1 %2134  ;;  %v4514_v45 = vpop.permute.xlu0 %2129  ;;  %v1450_v18 = vmul.f32 %v4108_v5, %v5452_v11  ;;  %v1449_v57 = vmul.f32 %v4108_v5, %v5453_v4  ;;  %v4527_v6 = vadd.f32 %v1442_v34, %v4357_v59  ;;  %v4530_v41 = vadd.f32 %v1441_v26, %v4360_v40  ;;  %v5455_v59 = vld [vmem:[#allocation101_spill] sm:$0xff]  ;;  %v5462_v4 = vld [vmem:[#allocation106_spill] sm:$0xff] }
 0x270   : > { %5451 = vst [vmem:[#allocation19_spill] sm:$0xff] %v4514_v45  ;;  %v4533_v45 = vadd.f32 %v1444_v23, %v4363_v54  ;;  %v4536_v27 = vadd.f32 %v1443_v24, %v4366_v16  ;;  %v4539_v55 = vadd.f32 %v1446_v35, %v4373_v3  ;;  %v4542_v42 = vadd.f32 %v1445_v12, %v4376_v25  ;;  %v5456_v16 = vld [vmem:[#allocation102_spill] sm:$0xff]  ;;  %v5457_v3 = vld [vmem:[#allocation103_spill] sm:$0xff] }
 0x271   : > { %v1452_v11 = vmul.f32 %v4108_v5, %v5454_v20  ;;  %v1451_v34 = vmul.f32 %v4108_v5, %v5455_v59  ;;  %v4549_v40 = vadd.f32 %v1448_v13, %v4387_v14  ;;  %v4552_v54 = vadd.f32 %v1447_v8, %v4390_v10  ;;  %v5460_v14 = vld [vmem:[#allocation104_spill] sm:$0xff]  ;;  %v5461_v13 = vld [vmem:[#allocation105_spill] sm:$0xff]  ;;  %v5463_v59 = vld [vmem:[#allocation107_spill] sm:$0xff] }
 0x272   : > { %v1454_v23 = vmul.f32 %v4108_v5, %v5456_v16  ;;  %v1453_v26 = vmul.f32 %v4108_v5, %v5457_v3  ;;  %v4563_v35 = vadd.f32 %v1450_v18, %v4405_v29  ;;  %v4566_v12 = vadd.f32 %v1449_v57, %v4408_v37  ;;  %v5464_v3 = vld [vmem:[#allocation110_spill] sm:$0xff]  ;;  %v5465_v29 = vld [vmem:[#allocation111_spill] sm:$0xff] }
 0x273   : > { %v4558_v25 = vpop.permute.xlu1 %2144  ;;  %v4560_v24 = vpop.permute.xlu0 %2139  ;;  %v1456_v10 = vmul.f32 %v4108_v5, %v5460_v14  ;;  %v1455_v8 = vmul.f32 %v4108_v5, %v5461_v13  ;;  %v1458_v20 = vmul.f32 %v4108_v5, %v5462_v4  ;;  %v1457_v16 = vmul.f32 %v4108_v5, %v5463_v59  ;;  %v5466_v14 = vld [vmem:[#allocation112_spill] sm:$0xff] }
 0x274   : > { %5458 = vst [vmem:[#allocation44_spill] sm:$0xff] %v4558_v25  ;;  %5459 = vst [vmem:[#allocation160_spill] sm:$0xff] %v4560_v24  ;;  %v1694_v24 = vmul.f32 %v4129_v58, %v5464_v3  ;;  %v1693_v18 = vmul.f32 %v4129_v58, %v5465_v29  ;;  %v4581_v37 = vadd.f32 %v1452_v11, %v4415_v28  ;;  %v5467_v25 = vld [vmem:[#allocation113_spill] sm:$0xff]  ;;  %v5468_v3 = vld [vmem:[#allocation114_spill] sm:$0xff] }
 0x275   : > { %v4584_v57 = vadd.f32 %v1451_v34, %v4418_v7  ;;  %v1696_v13 = vmul.f32 %v4129_v58, %v5466_v14  ;;  %v1695_v4 = vmul.f32 %v4129_v58, %v5467_v25  ;;  %v4591_v5 = vadd.f32 %v1454_v23, %v4429_v19  ;;  %v5469_v28 = vld [vmem:[#allocation115_spill] sm:$0xff]  ;;  %v5472_v19 = vld [vmem:[#allocation116_spill] sm:$0xff]  ;;  %v5473_v23 = vld [vmem:[#allocation117_spill] sm:$0xff] }
 0x276   : > { %v4594_v59 = vadd.f32 %v1453_v26, %v4432_v61  ;;  %v1698_v29 = vmul.f32 %v4129_v58, %v5468_v3  ;;  %v1697_v11 = vmul.f32 %v4129_v58, %v5469_v28  ;;  %v4605_v14 = vadd.f32 %v1456_v10, %v4439_v30 }
 0x277   : > { %v4600_v7 = vpop.permute.xlu1 %2154  ;;  %v4602_v34 = vpop.permute.xlu0 %2149  ;;  %v4608_v25 = vadd.f32 %v1455_v8, %v4442_v52  ;;  %v1700_v61 = vmul.f32 %v4129_v58, %v5472_v19  ;;  %v1699_v26 = vmul.f32 %v4129_v58, %v5473_v23  ;;  %v4615_v3 = vadd.f32 %v1458_v20, %v4445_v39  ;;  %v5474_v8 = vld [vmem:[#allocation118_spill] sm:$0xff]  ;;  %v5475_v39 = vld [vmem:[#allocation119_spill] sm:$0xff]  ;;  %v5482_v23 = vld [vmem:[#allocation124_spill] sm:$0xff] }
 0x278   : > { %5470 = vst [vmem:[#allocation45_spill] sm:$0xff] %v4600_v7  ;;  %5471 = vst [vmem:[#allocation20_spill] sm:$0xff] %v4602_v34  ;;  %v4618_v28 = vadd.f32 %v1457_v16, %v4448_v15  ;;  %v4621_v34 = vadd.f32 %v1694_v24, %v4451_v60  ;;  %v4624_v30 = vadd.f32 %v1693_v18, %v4454_v43  ;;  %v5476_v43 = vld [vmem:[#allocation120_spill] sm:$0xff]  ;;  %v5488_v7 = vld [vmem:[#allocation130_spill] sm:$0xff] }
 0x279   : > { %v4627_v52 = vadd.f32 %v1696_v13, %v4461_v62  ;;  %v4630_v10 = vadd.f32 %v1695_v4, %v4464_v47  ;;  %v1702_v19 = vmul.f32 %v4129_v58, %v5474_v8  ;;  %v1701_v20 = vmul.f32 %v4129_v58, %v5475_v39  ;;  %v5477_v62 = vld [vmem:[#allocation121_spill] sm:$0xff] }
 0x27a   : > { %v4637_v15 = vadd.f32 %v1698_v29, %v4475_v2  ;;  %v4640_v60 = vadd.f32 %v1697_v11, %v4478_v48  ;;  %v1704_v24 = vmul.f32 %v4129_v58, %v5476_v43  ;;  %v1703_v16 = vmul.f32 %v4129_v58, %v5477_v62  ;;  %v5480_v2 = vld [vmem:[#allocation122_spill] sm:$0xff]  ;;  %v5481_v29 = vld [vmem:[#allocation123_spill] sm:$0xff]  ;;  %v5483_v39 = vld [vmem:[#allocation125_spill] sm:$0xff] }
 0x27b   : > { %v4646_v47 = vpop.permute.xlu1 %2164  ;;  %v4648_v18 = vpop.permute.xlu0 %2159  ;;  %v4651_v13 = vadd.f32 %v1700_v61, %v4493_v46  ;;  %v4654_v4 = vadd.f32 %v1699_v26, %v4496_v31  ;;  %v1706_v48 = vmul.f32 %v4129_v58, %v5480_v2  ;;  %v1705_v11 = vmul.f32 %v4129_v58, %v5481_v29  ;;  %v5484_v62 = vld [vmem:[#allocation126_spill] sm:$0xff]  ;;  %v5485_v46 = vld [vmem:[#allocation127_spill] sm:$0xff]  ;;  %v5486_v2 = vld [vmem:[#allocation128_spill] sm:$0xff] }
 0x27c   : > { %5478 = vst [vmem:[#allocation21_spill] sm:$0xff] %v4646_v47  ;;  %5479 = vst [vmem:[#allocation76_spill] sm:$0xff] %v4648_v18  ;;  %v1708_v8 = vmul.f32 %v4129_v58, %v5482_v23  ;;  %v1707_v43 = vmul.f32 %v4129_v58, %v5483_v39  ;;  %v1710_v18 = vmul.f32 %v4129_v58, %v5484_v62  ;;  %v5487_v47 = vld [vmem:[#allocation129_spill] sm:$0xff] }
 0x27d   : > { %v1709_v61 = vmul.f32 %v4129_v58, %v5485_v46  ;;  %v4669_v31 = vadd.f32 %v1702_v19, %v4503_v0  ;;  %v4672_v26 = vadd.f32 %v1701_v20, %v4506_v50  ;;  %v1712_v29 = vmul.f32 %v4129_v58, %v5486_v2  ;;  %v5489_v0 = vld [vmem:[#allocation131_spill] sm:$0xff] }
 0x27e   : > { %v1711_v23 = vmul.f32 %v4129_v58, %v5487_v47  ;;  %v4679_v39 = vadd.f32 %v1704_v24, %v4517_v21  ;;  %v4682_v62 = vadd.f32 %v1703_v16, %v4520_v17  ;;  %v1714_v46 = vmul.f32 %v4129_v58, %v5488_v7  ;;  %v5491_v21 = vld [vmem:[#allocation132_spill] sm:$0xff]  ;;  %v5492_v24 = vld [vmem:[#allocation133_spill] sm:$0xff] }
 0x27f   : > { %v1713_v19 = vmul.f32 %v4129_v58, %v5489_v0  ;;  %v4688_v50 = vpop.permute.xlu1 %2174  ;;  %v4690_v20 = vpop.permute.xlu0 %2169  ;;  %v4693_v2 = vadd.f32 %v1706_v48, %v4527_v6  ;;  %v4696_v47 = vadd.f32 %v1705_v11, %v4530_v41  ;;  %v1716_v17 = vmul.f32 %v4129_v58, %v5491_v21  ;;  %v5493_v11 = vld [vmem:[#allocation134_spill] sm:$0xff] }
 0x280   : > { %5490 = vst [vmem:[#allocation77_spill] sm:$0xff] %v4690_v20  ;;  %v1715_v16 = vmul.f32 %v4129_v58, %v5492_v24  ;;  %v4703_v7 = vadd.f32 %v1708_v8, %v4533_v45  ;;  %v4706_v0 = vadd.f32 %v1707_v43, %v4536_v27  ;;  %v4709_v20 = vadd.f32 %v1710_v18, %v4539_v55  ;;  %v5494_v45 = vld [vmem:[#allocation135_spill] sm:$0xff]  ;;  %v5501_v24 = vld [vmem:[#allocation142_spill] sm:$0xff] }
 0x281   : > { %v4712_v6 = vadd.f32 %v1709_v61, %v4542_v42  ;;  %v4715_v41 = vadd.f32 %v1712_v29, %v4549_v40  ;;  %v4718_v48 = vadd.f32 %v1711_v23, %v4552_v54  ;;  %v1718_v21 = vmul.f32 %v4129_v58, %v5493_v11  ;;  %v5495_v42 = vld [vmem:[#allocation136_spill] sm:$0xff]  ;;  %v5496_v40 = vld [vmem:[#allocation137_spill] sm:$0xff] }
 0x282   : > { %v1717_v8 = vmul.f32 %v4129_v58, %v5494_v45  ;;  %v4725_v27 = vadd.f32 %v1714_v46, %v4563_v35  ;;  %v4728_v55 = vadd.f32 %v1713_v19, %v4566_v12  ;;  %v1720_v18 = vmul.f32 %v4129_v58, %v5495_v42  ;;  %v5499_v35 = vld [vmem:[#allocation138_spill] sm:$0xff]  ;;  %v5500_v46 = vld [vmem:[#allocation139_spill] sm:$0xff] }
 0x283   : > { %v1719_v43 = vmul.f32 %v4129_v58, %v5496_v40  ;;  %v4734_v54 = vpop.permute.xlu1 %2184  ;;  %v4736_v61 = vpop.permute.xlu0 %2179  ;;  %v4739_v29 = vadd.f32 %v1716_v17, %v4581_v37  ;;  %v4742_v23 = vadd.f32 %v1715_v16, %v4584_v57  ;;  %v1722_v12 = vmul.f32 %v4129_v58, %v5499_v35  ;;  %v5502_v45 = vld [vmem:[#allocation143_spill] sm:$0xff]  ;;  %v5503_v40 = vld [vmem:[#allocation144_spill] sm:$0xff]  ;;  %v5504_v37 = vld [vmem:[#allocation145_spill] sm:$0xff] }
 0x284   : > { %5497 = vst [vmem:[#allocation108_spill] sm:$0xff] %v4734_v54  ;;  %5498 = vst [vmem:[#allocation22_spill] sm:$0xff] %v4736_v61  ;;  %v1721_v19 = vmul.f32 %v4129_v58, %v5500_v46  ;;  %v1959_v11 = vmul.f32 %v4172_v53, %v5501_v24  ;;  %v1958_v42 = vmul.f32 %v4172_v53, %v5502_v45  ;;  %v5505_v35 = vld [vmem:[#allocation146_spill] sm:$0xff]  ;;  %v5506_v46 = vld [vmem:[#allocation147_spill] sm:$0xff] }
 0x285   : > { %v1961_v61 = vmul.f32 %v4172_v53, %v5503_v40  ;;  %v1960_v17 = vmul.f32 %v4172_v53, %v5504_v37  ;;  %v4757_v57 = vadd.f32 %v1718_v21, %v4591_v5  ;;  %v4760_v16 = vadd.f32 %v1717_v8, %v4594_v59  ;;  %v5507_v54 = vld [vmem:[#allocation148_spill] sm:$0xff]  ;;  %v5508_v5 = vld [vmem:[#allocation149_spill] sm:$0xff] }
 0x286   : > { %v1963_v58 = vmul.f32 %v4172_v53, %v5505_v35  ;;  %v1962_v24 = vmul.f32 %v4172_v53, %v5506_v46  ;;  %v4767_v45 = vadd.f32 %v1720_v18, %v4605_v14  ;;  %v4770_v40 = vadd.f32 %v1719_v43, %v4608_v25  ;;  %v5511_v14 = vld [vmem:[#allocation150_spill] sm:$0xff]  ;;  %v5512_v18 = vld [vmem:[#allocation151_spill] sm:$0xff] }
 0x287   : > { %v1965_v37 = vmul.f32 %v4172_v53, %v5507_v54  ;;  %v1964_v21 = vmul.f32 %v4172_v53, %v5508_v5  ;;  %v4776_v59 = vpop.permute.xlu1 %2194  ;;  %v4778_v8 = vpop.permute.xlu0 %2189  ;;  %v4781_v35 = vadd.f32 %v1722_v12, %v4615_v3  ;;  %v4784_v46 = vadd.f32 %v1721_v19, %v4618_v28  ;;  %v5513_v12 = vld [vmem:[#allocation152_spill] sm:$0xff] }
 0x288   : > { %5509 = vst [vmem:[#allocation23_spill] sm:$0xff] %v4776_v59  ;;  %5510 = vst [vmem:[#allocation109_spill] sm:$0xff] %v4778_v8  ;;  %v1967_v25 = vmul.f32 %v4172_v53, %v5511_v14  ;;  %v1966_v43 = vmul.f32 %v4172_v53, %v5512_v18  ;;  %v1991_v54 = vadd.f32 %v1959_v11, %v4621_v34  ;;  %v5514_v14 = vld [vmem:[#allocation153_spill] sm:$0xff] }
 0x289   : > { %v1990_v5 = vadd.f32 %v1958_v42, %v4624_v30  ;;  %v4793_v59 = vadd.f32 %v1961_v61, %v4627_v52  ;;  %v4796_v8 = vadd.f32 %v1960_v17, %v4630_v10  ;;  %v4799_v3 = vadd.f32 %v1963_v58, %v4637_v15  ;;  %v5515_v10 = vld [vmem:[#allocation154_spill] sm:$0xff]  ;;  %v5516_v15 = vld [vmem:[#allocation155_spill] sm:$0xff] }
 0x28a   : > { %v4802_v28 = vadd.f32 %v1962_v24, %v4640_v60  ;;  %v1969_v19 = vmul.f32 %v4172_v53, %v5513_v12  ;;  %v1968_v34 = vmul.f32 %v4172_v53, %v5514_v14  ;;  %v4809_v30 = vadd.f32 %v1965_v37, %v4651_v13  ;;  %v5517_v13 = vld [vmem:[#allocation156_spill] sm:$0xff]  ;;  %v5518_v24 = vld [vmem:[#allocation157_spill] sm:$0xff]  ;;  %v5520_v12 = vld [vmem:[#allocation159_spill] sm:$0xff] }
 0x28b   : > { %v4812_v52 = vadd.f32 %v1964_v21, %v4654_v4  ;;  %v1971_v61 = vmul.f32 %v4172_v53, %v5515_v10  ;;  %v1970_v11 = vmul.f32 %v4172_v53, %v5516_v15  ;;  %v4818_v60 = vpop.permute.xlu1 %2204  ;;  %v4820_v42 = vpop.permute.xlu0 %2199  ;;  %v4823_v17 = vadd.f32 %v1967_v25, %v4669_v31  ;;  %v5519_v21 = vld [vmem:[#allocation158_spill] sm:$0xff] }
 0x28c   : > { %v4826_v58 = vadd.f32 %v1966_v43, %v4672_v26  ;;  %v1973_v4 = vmul.f32 %v4172_v53, %v5517_v13  ;;  %v1972_v37 = vmul.f32 %v4172_v53, %v5518_v24  ;;  %v1975_v18 = vmul.f32 %v4172_v53, %v5519_v21  ;;  %v4843_v26 = vld [vmem:[%s5171_s1 + $0x7] ss:$0 sm:$0xff]  ;;  %v5524_v21 = vld [vmem:[#allocation5_spill] sm:$0xff] }
 0x28d   : > { %v1974_v14 = vmul.f32 %v4172_v53, %v5520_v12  ;;  %v1977_v10 = vmul.f32 %v4172_v53, %v3913_v49  ;;  %v1976_v31 = vmul.f32 %v4172_v53, %v3915_v1  ;;  %v4846_v25 = vadd.f32 %v1969_v19, %v4679_v39  ;;  %v5521_v39 = vld [vmem:[#allocation2_spill] sm:$0xff] }
 0x28e   : > { %v4849_v43 = vadd.f32 %v1968_v34, %v4682_v62  ;;  %v1979_v15 = vmul.f32 %v4172_v53, %v3958_v44  ;;  %v1978_v49 = vmul.f32 %v4172_v53, %v3960_v9  ;;  %v4856_v13 = vadd.f32 %v1971_v61, %v4693_v2 }
 0x28f   : > { %v4859_v1 = vadd.f32 %v1970_v11, %v4696_v47  ;;  %v1981_v24 = vmul.f32 %v4172_v53, %v4005_v33  ;;  %v1980_v19 = vmul.f32 %v4172_v53, %v5521_v39  ;;  %v4865_v62 = vpop.permute.xlu1 %2214  ;;  %v4867_v34 = vpop.permute.xlu0 %2209  ;;  %v4870_v44 = vadd.f32 %v1973_v4, %v4703_v7  ;;  %v5523_v4 = vld [vmem:[#allocation4_spill] sm:$0xff] }
 0x290   : > { %v4873_v9 = vadd.f32 %v1972_v37, %v4706_v0  ;;  %v2224_v2 = vmul.f32 %v4843_v26, %v4206_v36  ;;  %v2223_v47 = vmul.f32 %v4843_v26, %v4208_v56  ;;  %v4880_v33 = vadd.f32 %v1975_v18, %v4709_v20  ;;  %v4894_v0 = vld [vmem:[%s5171_s1 + $0x8] ss:$0 sm:$0xff]  ;;  %v5525_v18 = vld [vmem:[#allocation6_spill] sm:$0xff] }
 0x291   : > { %v4883_v61 = vadd.f32 %v1974_v14, %v4712_v6  ;;  %v4886_v11 = vadd.f32 %v1977_v10, %v4715_v41  ;;  %v4889_v7 = vadd.f32 %v1976_v31, %v4718_v48  ;;  %v4897_v36 = vadd.f32 %v1979_v15, %v4725_v27  ;;  %v5522_v20 = vld [vmem:[#allocation3_spill] sm:$0xff] }
 0x292   : > { %v4900_v56 = vadd.f32 %v1978_v49, %v4728_v55  ;;  %v1983_v6 = vmul.f32 %v4172_v53, %v5522_v20  ;;  %v1982_v41 = vmul.f32 %v4172_v53, %v5523_v4  ;;  %v4907_v48 = vadd.f32 %v1981_v24, %v4739_v29  ;;  %v5526_v29 = vld [vmem:[#allocation7_spill] sm:$0xff] }
 0x293   : > { %v4910_v37 = vadd.f32 %v1980_v19, %v4742_v23  ;;  %v1985_v27 = vmul.f32 %v4172_v53, %v5524_v21  ;;  %v1984_v55 = vmul.f32 %v4172_v53, %v5525_v18  ;;  %v2329_v12 = vpop.permute.xlu1 %2328  ;;  %v2324_v14 = vpop.permute.xlu0 %2323  ;;  %v2256_v10 = vadd.f32 %v2224_v2, %v1991_v54  ;;  %v5527_v23 = vld [vmem:[#allocation8_spill] sm:$0xff]  ;;  %v4929_v54 = vld [vmem:[%s5172_s2] ss:$0 sm:$0xff]  ;;  %v5528_v21 = vld [vmem:[#allocation11_spill] sm:$0xff] }
 0x294   : > { %v2255_v31 = vadd.f32 %v2223_v47, %v1990_v5  ;;  %v2488_v15 = vmul.f32 %v4894_v0, %v2329_v12  ;;  %v2487_v49 = vmul.f32 %v4894_v0, %v2324_v14  ;;  %v1987_v24 = vmul.f32 %v4172_v53, %v5526_v29 }
 0x295   : > { %v1986_v39 = vmul.f32 %v4172_v53, %v5527_v23  ;;  %v2226_v19 = vmul.f32 %v4843_v26, %v4248_v32  ;;  %v2225_v20 = vmul.f32 %v4843_v26, %v4250_v22  ;;  %v4932_v5 = vadd.f32 %v1983_v6, %v4757_v57 }
 0x296   : > { %v4935_v2 = vadd.f32 %v1982_v41, %v4760_v16  ;;  %v2520_v47 = vadd.f32 %v2488_v15, %v2256_v10  ;;  %v2519_v4 = vadd.f32 %v2487_v49, %v2255_v31  ;;  %v4938_v53 = vadd.f32 %v1985_v27, %v4767_v45 }
 0x297   : > { %v4941_v32 = vadd.f32 %v1984_v55, %v4770_v40  ;;  %v2228_v22 = vmul.f32 %v4843_v26, %v4294_v51  ;;  %v2227_v18 = vmul.f32 %v4843_v26, %v5528_v21  ;;  %v2339_v57 = vpop.permute.xlu1 %2338  ;;  %v2334_v6 = vpop.permute.xlu0 %2333  ;;  %v4953_v40 = vadd.f32 %v1987_v24, %v4781_v35  ;;  %v5532_v21 = vld [vmem:[#allocation15_spill] sm:$0xff] }
 0x298   : > { %v2559_v16 = vadd.f32 %v4929_v54, %v2520_v47  ;;  %v2558_v41 = vadd.f32 %v4929_v54, %v2519_v4  ;;  %v2490_v12 = vmul.f32 %v4894_v0, %v2339_v57  ;;  %v2489_v45 = vmul.f32 %v4894_v0, %v2334_v6  ;;  %v5531_v4 = vld [vmem:[#allocation14_spill] sm:$0xff] }
 0x299   : > { %v4956_v27 = vadd.f32 %v1986_v39, %v4784_v46  ;;  %v2258_v51 = vadd.f32 %v2226_v19, %v4793_v59  ;;  %v2257_v55 = vadd.f32 %v2225_v20, %v4796_v8  ;;  %v2260_v35 = vadd.f32 %v2228_v22, %v4799_v3  ;;  %v5529_v39 = vld [vmem:[#allocation12_spill] sm:$0xff]  ;;  %v5530_v20 = vld [vmem:[#allocation13_spill] sm:$0xff] }
 0x29a   : > { %vm2591_vm1 = vcmp.ge.f32.partialorder %v2559_v16, 0.0  ;;  %v2623_v14 = vmul.f32 0.02, %v2559_v16  ;;  %vm2590_vm2 = vcmp.ge.f32.partialorder %v2558_v41, 0.0  ;;  %v2622_v10 = vmul.f32 0.02, %v2558_v41 }
 0x29b   : > { %v2259_v46 = vadd.f32 %v2227_v18, %v4802_v28  ;;  %v2522_v31 = vadd.f32 %v2490_v12, %v2258_v51  ;;  %v2521_v15 = vadd.f32 %v2489_v45, %v2257_v55  ;;  %v2349_v59 = vpop.permute.xlu1 %2348  ;;  %v2344_v49 = vpop.permute.xlu0 %2343  ;;  %v2230_v19 = vmul.f32 %v4843_v26, %v5529_v39 }
 0x29c   : > { %v2655_v8 = vsel %vm2591_vm1, %v2559_v16, %v2623_v14  ;;  %v2654_v29 = vsel %vm2590_vm2, %v2558_v41, %v2622_v10  ;;  %v2492_v24 = vmul.f32 %v4894_v0, %v2349_v59  ;;  %v2491_v23 = vmul.f32 %v4894_v0, %v2344_v49 }
 0x29d   : > { %v2229_v47 = vmul.f32 %v4843_v26, %v5530_v20  ;;  %2688 = vst.msk [vmem:[%s4963_s15 + $0x8] sm:$0xff] %vm2686_vm0, %v2655_v8  ;;  %2687 = vst.msk [vmem:[%s4963_s15] sm:$0xff] %vm2686_vm0, %v2654_v29  ;;  %v2561_v3 = vadd.f32 %v4929_v54, %v2522_v31  ;;  %v2560_v28 = vadd.f32 %v4929_v54, %v2521_v15 }
 0x29e   : > { %v2232_v22 = vmul.f32 %v4843_v26, %v5531_v4  ;;  %v2231_v18 = vmul.f32 %v4843_v26, %v5532_v21  ;;  %v2524_v57 = vadd.f32 %v2492_v24, %v2260_v35  ;;  %v2523_v6 = vadd.f32 %v2491_v23, %v2259_v46 }
 0x29f   : > { %vm2593_vm3 = vcmp.ge.f32.partialorder %v2561_v3, 0.0  ;;  %v2625_v16 = vmul.f32 0.02, %v2561_v3  ;;  %vm2592_vm4 = vcmp.ge.f32.partialorder %v2560_v28, 0.0  ;;  %v2624_v41 = vmul.f32 0.02, %v2560_v28  ;;  %v2359_v12 = vpop.permute.xlu1 %2358  ;;  %v2354_v45 = vpop.permute.xlu0 %2353 }
 0x2a0   : > { %v2563_v51 = vadd.f32 %v4929_v54, %v2524_v57  ;;  %v2562_v55 = vadd.f32 %v4929_v54, %v2523_v6  ;;  %v2494_v14 = vmul.f32 %v4894_v0, %v2359_v12  ;;  %v2493_v10 = vmul.f32 %v4894_v0, %v2354_v45 }
 0x2a1   : > { %v2262_v31 = vadd.f32 %v2230_v19, %v4809_v30  ;;  %v2261_v35 = vadd.f32 %v2229_v47, %v4812_v52  ;;  %v2657_v46 = vsel %vm2593_vm3, %v2561_v3, %v2625_v16  ;;  %v2656_v15 = vsel %vm2592_vm4, %v2560_v28, %v2624_v41  ;;  %v5533_v28 = vld [vmem:[#allocation16_spill] sm:$0xff] }
 0x2a2   : > { %2690 = vst.msk [vmem:[%s4963_s15 + $0x18] sm:$0xff] %vm2686_vm0, %v2657_v46  ;;  %2689 = vst.msk [vmem:[%s4963_s15 + $0x10] sm:$0xff] %vm2686_vm0, %v2656_v15  ;;  %vm2595_vm5 = vcmp.ge.f32.partialorder %v2563_v51, 0.0  ;;  %v2627_v59 = vmul.f32 0.02, %v2563_v51  ;;  %vm2594_vm6 = vcmp.ge.f32.partialorder %v2562_v55, 0.0  ;;  %v2264_v8 = vadd.f32 %v2232_v22, %v4823_v17 }
 0x2a3   : > { %v2626_v49 = vmul.f32 0.02, %v2562_v55  ;;  %v2263_v29 = vadd.f32 %v2231_v18, %v4826_v58  ;;  %v2526_v24 = vadd.f32 %v2494_v14, %v2262_v31  ;;  %v2525_v30 = vadd.f32 %v2493_v10, %v2261_v35  ;;  %v2369_v23 = vpop.permute.xlu1 %2368  ;;  %v2364_v52 = vpop.permute.xlu0 %2363  ;;  %v5534_v22 = vld [vmem:[#allocation17_spill] sm:$0xff]  ;;  %v5535_v18 = vld [vmem:[#allocation18_spill] sm:$0xff] }
 0x2a4   : > { %v2659_v39 = vsel %vm2595_vm5, %v2563_v51, %v2627_v59  ;;  %v2496_v20 = vmul.f32 %v4894_v0, %v2369_v23  ;;  %v2495_v47 = vmul.f32 %v4894_v0, %v2364_v52  ;;  %v2234_v3 = vmul.f32 %v4843_v26, %v4424_v38 }
 0x2a5   : > { %v2658_v19 = vsel %vm2594_vm6, %v2562_v55, %v2626_v49  ;;  %v2233_v4 = vmul.f32 %v4843_v26, %v5533_v28  ;;  %2692 = vst.msk [vmem:[%s4963_s15 + $0x28] sm:$0xff] %vm2686_vm0, %v2659_v39  ;;  %v2565_v17 = vadd.f32 %v4929_v54, %v2526_v24  ;;  %v2564_v58 = vadd.f32 %v4929_v54, %v2525_v30  ;;  %v5537_v28 = vld [vmem:[#allocation44_spill] sm:$0xff] }
 0x2a6   : > { %2691 = vst.msk [vmem:[%s4963_s15 + $0x20] sm:$0xff] %vm2686_vm0, %v2658_v19  ;;  %v2236_v21 = vmul.f32 %v4843_v26, %v5534_v22  ;;  %v2235_v57 = vmul.f32 %v4843_v26, %v5535_v18  ;;  %v2528_v6 = vadd.f32 %v2496_v20, %v2264_v8  ;;  %v2527_v38 = vadd.f32 %v2495_v47, %v2263_v29  ;;  %v5536_v47 = vld [vmem:[#allocation19_spill] sm:$0xff] }
 0x2a7   : > { %vm2597_vm7 = vcmp.ge.f32.partialorder %v2565_v17, 0.0  ;;  %v2629_v16 = vmul.f32 0.02, %v2565_v17  ;;  %vm2596_vm8 = vcmp.ge.f32.partialorder %v2564_v58, 0.0  ;;  %v2628_v41 = vmul.f32 0.02, %v2564_v58  ;;  %v2379_v12 = vpop.permute.xlu1 %2378  ;;  %v2374_v45 = vpop.permute.xlu0 %2373 }
 0x2a8   : > { %v2567_v51 = vadd.f32 %v4929_v54, %v2528_v6  ;;  %v2566_v55 = vadd.f32 %v4929_v54, %v2527_v38  ;;  %v2498_v14 = vmul.f32 %v4894_v0, %v2379_v12  ;;  %v2497_v10 = vmul.f32 %v4894_v0, %v2374_v45 }
 0x2a9   : > { %v2266_v31 = vadd.f32 %v2234_v3, %v4846_v25  ;;  %v2265_v35 = vadd.f32 %v2233_v4, %v4849_v43  ;;  %v2661_v46 = vsel %vm2597_vm7, %v2565_v17, %v2629_v16  ;;  %v2660_v15 = vsel %vm2596_vm8, %v2564_v58, %v2628_v41  ;;  %v5538_v17 = vld [vmem:[#allocation160_spill] sm:$0xff] }
 0x2aa   : > { %2694 = vst.msk [vmem:[%s4963_s15 + $0x38] sm:$0xff] %vm2686_vm0, %v2661_v46  ;;  %2693 = vst.msk [vmem:[%s4963_s15 + $0x30] sm:$0xff] %vm2686_vm0, %v2660_v15  ;;  %vm2599_vm9 = vcmp.ge.f32.partialorder %v2567_v51, 0.0  ;;  %v2631_v59 = vmul.f32 0.02, %v2567_v51  ;;  %vm2598_vm10 = vcmp.ge.f32.partialorder %v2566_v55, 0.0  ;;  %v2268_v8 = vadd.f32 %v2236_v21, %v4856_v13 }
 0x2ab   : > { %v2630_v49 = vmul.f32 0.02, %v2566_v55  ;;  %v2267_v29 = vadd.f32 %v2235_v57, %v4859_v1  ;;  %v2530_v24 = vadd.f32 %v2498_v14, %v2266_v31  ;;  %v2529_v25 = vadd.f32 %v2497_v10, %v2265_v35  ;;  %v2389_v30 = vpop.permute.xlu1 %2388  ;;  %v2384_v43 = vpop.permute.xlu0 %2383 }
 0x2ac   : > { %v2663_v23 = vsel %vm2599_vm9, %v2567_v51, %v2631_v59  ;;  %v2500_v39 = vmul.f32 %v4894_v0, %v2389_v30  ;;  %v2499_v19 = vmul.f32 %v4894_v0, %v2384_v43  ;;  %v2238_v20 = vmul.f32 %v4843_v26, %v4512_v63  ;;  %v5540_v43 = vld [vmem:[#allocation20_spill] sm:$0xff] }
 0x2ad   : > { %v2662_v52 = vsel %vm2598_vm10, %v2566_v55, %v2630_v49  ;;  %v2237_v3 = vmul.f32 %v4843_v26, %v5536_v47  ;;  %2696 = vst.msk [vmem:[%s4963_s15 + $0x48] sm:$0xff] %vm2686_vm0, %v2663_v23  ;;  %v2569_v13 = vadd.f32 %v4929_v54, %v2530_v24  ;;  %v2568_v1 = vadd.f32 %v4929_v54, %v2529_v25  ;;  %v5539_v25 = vld [vmem:[#allocation45_spill] sm:$0xff] }
 0x2ae   : > { %2695 = vst.msk [vmem:[%s4963_s15 + $0x40] sm:$0xff] %vm2686_vm0, %v2662_v52  ;;  %v2240_v4 = vmul.f32 %v4843_v26, %v5537_v28  ;;  %v2239_v58 = vmul.f32 %v4843_v26, %v5538_v17  ;;  %v2532_v22 = vadd.f32 %v2500_v39, %v2268_v8  ;;  %v2531_v63 = vadd.f32 %v2499_v19, %v2267_v29  ;;  %v5541_v52 = vld [vmem:[#allocation21_spill] sm:$0xff]  ;;  %v5542_v19 = vld [vmem:[#allocation76_spill] sm:$0xff] }
 0x2af   : > { %vm2601_vm11 = vcmp.ge.f32.partialorder %v2569_v13, 0.0  ;;  %v2633_v21 = vmul.f32 0.02, %v2569_v13  ;;  %vm2600_vm12 = vcmp.ge.f32.partialorder %v2568_v1, 0.0  ;;  %v2632_v18 = vmul.f32 0.02, %v2568_v1  ;;  %v2399_v57 = vpop.permute.xlu1 %2398  ;;  %v2394_v6 = vpop.permute.xlu0 %2393 }
 0x2b0   : > { %v2571_v38 = vadd.f32 %v4929_v54, %v2532_v22  ;;  %v2570_v16 = vadd.f32 %v4929_v54, %v2531_v63  ;;  %v2502_v41 = vmul.f32 %v4894_v0, %v2399_v57  ;;  %v2501_v12 = vmul.f32 %v4894_v0, %v2394_v6 }
 0x2b1   : > { %v2270_v45 = vadd.f32 %v2238_v20, %v4870_v44  ;;  %v2269_v51 = vadd.f32 %v2237_v3, %v4873_v9  ;;  %v2665_v55 = vsel %vm2601_vm11, %v2569_v13, %v2633_v21  ;;  %v2664_v14 = vsel %vm2600_vm12, %v2568_v1, %v2632_v18 }
 0x2b2   : > { %2698 = vst.msk [vmem:[%s4963_s15 + $0x58] sm:$0xff] %vm2686_vm0, %v2665_v55  ;;  %2697 = vst.msk [vmem:[%s4963_s15 + $0x50] sm:$0xff] %vm2686_vm0, %v2664_v14  ;;  %vm2603_vm13 = vcmp.ge.f32.partialorder %v2571_v38, 0.0  ;;  %v2635_v10 = vmul.f32 0.02, %v2571_v38  ;;  %vm2602_vm14 = vcmp.ge.f32.partialorder %v2570_v16, 0.0  ;;  %v2272_v35 = vadd.f32 %v2240_v4, %v4880_v33 }
 0x2b3   : > { %v2634_v31 = vmul.f32 0.02, %v2570_v16  ;;  %v2271_v46 = vadd.f32 %v2239_v58, %v4883_v61  ;;  %v2534_v15 = vadd.f32 %v2502_v41, %v2270_v45  ;;  %v2533_v44 = vadd.f32 %v2501_v12, %v2269_v51  ;;  %v2409_v59 = vpop.permute.xlu1 %2408  ;;  %v2404_v9 = vpop.permute.xlu0 %2403 }
 0x2b4   : > { %v2667_v49 = vsel %vm2603_vm13, %v2571_v38, %v2635_v10  ;;  %v2504_v29 = vmul.f32 %v4894_v0, %v2409_v59  ;;  %v2503_v24 = vmul.f32 %v4894_v0, %v2404_v9  ;;  %v2242_v30 = vmul.f32 %v4843_v26, %v5539_v25  ;;  %v5545_v9 = vld [vmem:[#allocation22_spill] sm:$0xff] }
 0x2b5   : > { %v2666_v8 = vsel %vm2602_vm14, %v2570_v16, %v2634_v31  ;;  %v2241_v23 = vmul.f32 %v4843_v26, %v5540_v43  ;;  %2700 = vst.msk [vmem:[%s4963_s15 + $0x68] sm:$0xff] %vm2686_vm0, %v2667_v49  ;;  %v2573_v33 = vadd.f32 %v4929_v54, %v2534_v15  ;;  %v2572_v61 = vadd.f32 %v4929_v54, %v2533_v44  ;;  %v5544_v44 = vld [vmem:[#allocation108_spill] sm:$0xff] }
 0x2b6   : > { %2699 = vst.msk [vmem:[%s4963_s15 + $0x60] sm:$0xff] %vm2686_vm0, %v2666_v8  ;;  %v2244_v39 = vmul.f32 %v4843_v26, %v5541_v52  ;;  %v2243_v20 = vmul.f32 %v4843_v26, %v5542_v19  ;;  %v2536_v47 = vadd.f32 %v2504_v29, %v2272_v35  ;;  %v2535_v3 = vadd.f32 %v2503_v24, %v2271_v46  ;;  %v5543_v46 = vld [vmem:[#allocation77_spill] sm:$0xff] }
 0x2b7   : > { %vm2605_vm15 = vcmp.ge.f32.partialorder %v2573_v33, 0.0  ;;  %v2637_v13 = vmul.f32 0.02, %v2573_v33  ;;  %vm2604_vm1 = vcmp.ge.f32.partialorder %v2572_v61, 0.0  ;;  %v2636_v1 = vmul.f32 0.02, %v2572_v61  ;;  %v2419_v28 = vpop.permute.xlu1 %2418  ;;  %v2414_v4 = vpop.permute.xlu0 %2413 }
 0x2b8   : > { %v2575_v17 = vadd.f32 %v4929_v54, %v2536_v47  ;;  %v2574_v58 = vadd.f32 %v4929_v54, %v2535_v3  ;;  %v2506_v22 = vmul.f32 %v4894_v0, %v2419_v28  ;;  %v2505_v63 = vmul.f32 %v4894_v0, %v2414_v4 }
 0x2b9   : > { %v2274_v21 = vadd.f32 %v2242_v30, %v4886_v11  ;;  %v2273_v18 = vadd.f32 %v2241_v23, %v4889_v7  ;;  %v2669_v57 = vsel %vm2605_vm15, %v2573_v33, %v2637_v13  ;;  %v2668_v6 = vsel %vm2604_vm1, %v2572_v61, %v2636_v1 }
 0x2ba   : > { %2702 = vst.msk [vmem:[%s4963_s15 + $0x78] sm:$0xff] %vm2686_vm0, %v2669_v57  ;;  %2701 = vst.msk [vmem:[%s4963_s15 + $0x70] sm:$0xff] %vm2686_vm0, %v2668_v6  ;;  %vm2607_vm2 = vcmp.ge.f32.partialorder %v2575_v17, 0.0  ;;  %v2639_v38 = vmul.f32 0.02, %v2575_v17  ;;  %vm2606_vm3 = vcmp.ge.f32.partialorder %v2574_v58, 0.0  ;;  %v2276_v41 = vadd.f32 %v2244_v39, %v4897_v36 }
 0x2bb   : > { %v2638_v16 = vmul.f32 0.02, %v2574_v58  ;;  %v2275_v12 = vadd.f32 %v2243_v20, %v4900_v56  ;;  %v2538_v45 = vadd.f32 %v2506_v22, %v2274_v21  ;;  %v2537_v11 = vadd.f32 %v2505_v63, %v2273_v18  ;;  %v2429_v51 = vpop.permute.xlu1 %2428  ;;  %v2424_v7 = vpop.permute.xlu0 %2423  ;;  %v5546_v21 = vld [vmem:[#allocation23_spill] sm:$0xff]  ;;  %v5547_v57 = vld [vmem:[#allocation109_spill] sm:$0xff] }
 0x2bc   : > { %v2671_v55 = vsel %vm2607_vm2, %v2575_v17, %v2639_v38  ;;  %v2508_v10 = vmul.f32 %v4894_v0, %v2429_v51  ;;  %v2507_v31 = vmul.f32 %v4894_v0, %v2424_v7  ;;  %v2246_v35 = vmul.f32 %v4843_v26, %v4688_v50 }
 0x2bd   : > { %v2670_v14 = vsel %vm2606_vm3, %v2574_v58, %v2638_v16  ;;  %v2245_v15 = vmul.f32 %v4843_v26, %v5543_v46  ;;  %2704 = vst.msk [vmem:[%s4963_s15 + $0x88] sm:$0xff] %vm2686_vm0, %v2671_v55  ;;  %v2577_v36 = vadd.f32 %v4929_v54, %v2538_v45  ;;  %v2576_v56 = vadd.f32 %v4929_v54, %v2537_v11 }
 0x2be   : > { %2703 = vst.msk [vmem:[%s4963_s15 + $0x80] sm:$0xff] %vm2686_vm0, %v2670_v14  ;;  %v2248_v59 = vmul.f32 %v4843_v26, %v5544_v44  ;;  %v2247_v49 = vmul.f32 %v4843_v26, %v5545_v9  ;;  %v2540_v8 = vadd.f32 %v2508_v10, %v2276_v41  ;;  %v2539_v50 = vadd.f32 %v2507_v31, %v2275_v12 }
 0x2bf   : > { %vm2609_vm4 = vcmp.ge.f32.partialorder %v2577_v36, 0.0  ;;  %v2641_v29 = vmul.f32 0.02, %v2577_v36  ;;  %vm2608_vm5 = vcmp.ge.f32.partialorder %v2576_v56, 0.0  ;;  %v2640_v24 = vmul.f32 0.02, %v2576_v56  ;;  %v2439_v25 = vpop.permute.xlu1 %2438  ;;  %v2434_v30 = vpop.permute.xlu0 %2433 }
 0x2c0   : > { %v2579_v43 = vadd.f32 %v4929_v54, %v2540_v8  ;;  %v2578_v23 = vadd.f32 %v4929_v54, %v2539_v50  ;;  %v2510_v33 = vmul.f32 %v4894_v0, %v2439_v25  ;;  %v2509_v61 = vmul.f32 %v4894_v0, %v2434_v30 }
 0x2c1   : > { %v2278_v52 = vadd.f32 %v2246_v35, %v4907_v48  ;;  %v2277_v39 = vadd.f32 %v2245_v15, %v4910_v37  ;;  %v2673_v19 = vsel %vm2609_vm4, %v2577_v36, %v2641_v29  ;;  %v2672_v20 = vsel %vm2608_vm5, %v2576_v56, %v2640_v24 }
 0x2c2   : > { %2706 = vst.msk [vmem:[%s4963_s15 + $0x98] sm:$0xff] %vm2686_vm0, %v2673_v19  ;;  %2705 = vst.msk [vmem:[%s4963_s15 + $0x90] sm:$0xff] %vm2686_vm0, %v2672_v20  ;;  %vm2611_vm6 = vcmp.ge.f32.partialorder %v2579_v43, 0.0  ;;  %v2643_v47 = vmul.f32 0.02, %v2579_v43  ;;  %vm2610_vm7 = vcmp.ge.f32.partialorder %v2578_v23, 0.0  ;;  %v2280_v13 = vadd.f32 %v2248_v59, %v4932_v5 }
 0x2c3   : > { %v2642_v3 = vmul.f32 0.02, %v2578_v23  ;;  %v2279_v1 = vadd.f32 %v2247_v49, %v4935_v2  ;;  %v2542_v28 = vadd.f32 %v2510_v33, %v2278_v52  ;;  %v2541_v48 = vadd.f32 %v2509_v61, %v2277_v39  ;;  %v2449_v4 = vpop.permute.xlu1 %2448  ;;  %v2444_v37 = vpop.permute.xlu0 %2443  ;;  %v5548_v19 = vld [vmem:[#allocation9_spill] sm:$0xff] }
 0x2c4   : > { %v2675_v17 = vsel %vm2611_vm6, %v2579_v43, %v2643_v47  ;;  %v2512_v22 = vmul.f32 %v4894_v0, %v2449_v4  ;;  %v2511_v63 = vmul.f32 %v4894_v0, %v2444_v37  ;;  %v2250_v18 = vmul.f32 %v4843_v26, %v5546_v21  ;;  %v5549_v47 = vld [vmem:[#allocation10_spill] sm:$0xff] }
 0x2c5   : > { %v2674_v58 = vsel %vm2610_vm7, %v2578_v23, %v2642_v3  ;;  %v2249_v6 = vmul.f32 %v4843_v26, %v5547_v57  ;;  %2708 = vst.msk [vmem:[%s4963_s15 + $0xa8] sm:$0xff] %vm2686_vm0, %v2675_v17  ;;  %v2581_v5 = vadd.f32 %v4929_v54, %v2542_v28  ;;  %v2580_v2 = vadd.f32 %v4929_v54, %v2541_v48 }
 0x2c6   : > { %2707 = vst.msk [vmem:[%s4963_s15 + $0xa0] sm:$0xff] %vm2686_vm0, %v2674_v58  ;;  %v2252_v38 = vmul.f32 %v4843_v26, %v4818_v60  ;;  %v2251_v16 = vmul.f32 %v4843_v26, %v4820_v42  ;;  %v2544_v41 = vadd.f32 %v2512_v22, %v2280_v13  ;;  %v2543_v12 = vadd.f32 %v2511_v63, %v2279_v1 }
 0x2c7   : > { %vm2613_vm8 = vcmp.ge.f32.partialorder %v2581_v5, 0.0  ;;  %v2645_v45 = vmul.f32 0.02, %v2581_v5  ;;  %vm2612_vm9 = vcmp.ge.f32.partialorder %v2580_v2, 0.0  ;;  %v2644_v11 = vmul.f32 0.02, %v2580_v2  ;;  %v2459_v51 = vpop.permute.xlu1 %2458  ;;  %v2454_v7 = vpop.permute.xlu0 %2453 }
 0x2c8   : > { %v2583_v55 = vadd.f32 %v4929_v54, %v2544_v41  ;;  %v2582_v14 = vadd.f32 %v4929_v54, %v2543_v12  ;;  %v2514_v10 = vmul.f32 %v4894_v0, %v2459_v51  ;;  %v2513_v60 = vmul.f32 %v4894_v0, %v2454_v7 }
 0x2c9   : > { %v2282_v42 = vadd.f32 %v2250_v18, %v4938_v53  ;;  %v2281_v31 = vadd.f32 %v2249_v6, %v4941_v32  ;;  %v2677_v35 = vsel %vm2613_vm8, %v2581_v5, %v2645_v45  ;;  %v2676_v46 = vsel %vm2612_vm9, %v2580_v2, %v2644_v11 }
 0x2ca   : > { %2710 = vst.msk [vmem:[%s4963_s15 + $0xb8] sm:$0xff] %vm2686_vm0, %v2677_v35  ;;  %2709 = vst.msk [vmem:[%s4963_s15 + $0xb0] sm:$0xff] %vm2686_vm0, %v2676_v46  ;;  %vm2615_vm10 = vcmp.ge.f32.partialorder %v2583_v55, 0.0  ;;  %v2647_v15 = vmul.f32 0.02, %v2583_v55  ;;  %vm2614_vm11 = vcmp.ge.f32.partialorder %v2582_v14, 0.0  ;;  %v2284_v56 = vadd.f32 %v2252_v38, %v4953_v40 }
 0x2cb   : > { %v2646_v36 = vmul.f32 0.02, %v2582_v14  ;;  %v2283_v44 = vadd.f32 %v2251_v16, %v4956_v27  ;;  %v2546_v59 = vadd.f32 %v2514_v10, %v2282_v42  ;;  %v2545_v53 = vadd.f32 %v2513_v60, %v2281_v31  ;;  %v2469_v9 = vpop.permute.xlu1 %2468  ;;  %v2464_v32 = vpop.permute.xlu0 %2463 }
 0x2cc   : > { %v2679_v49 = vsel %vm2615_vm10, %v2583_v55, %v2647_v15  ;;  %v2516_v50 = vmul.f32 %v4894_v0, %v2469_v9  ;;  %v2515_v29 = vmul.f32 %v4894_v0, %v2464_v32  ;;  %v2254_v24 = vmul.f32 %v4843_v26, %v4865_v62 }
 0x2cd   : > { %v2678_v8 = vsel %vm2614_vm11, %v2582_v14, %v2646_v36  ;;  %v2253_v25 = vmul.f32 %v4843_v26, %v4867_v34  ;;  %2712 = vst.msk [vmem:[%s4963_s15 + $0xc8] sm:$0xff] %vm2686_vm0, %v2679_v49  ;;  %v2585_v40 = vadd.f32 %v4929_v54, %v2546_v59  ;;  %v2584_v27 = vadd.f32 %v4929_v54, %v2545_v53 }
 0x2ce   : > { %2711 = vst.msk [vmem:[%s4963_s15 + $0xc0] sm:$0xff] %vm2686_vm0, %v2678_v8  ;;  %v2548_v30 = vadd.f32 %v2516_v50, %v2284_v56  ;;  %v2547_v43 = vadd.f32 %v2515_v29, %v2283_v44  ;;  %v2286_v20 = vadd.f32 %v2254_v24, %v5548_v19 }
 0x2cf   : > { %vm2617_vm12 = vcmp.ge.f32.partialorder %v2585_v40, 0.0  ;;  %v2649_v23 = vmul.f32 0.02, %v2585_v40  ;;  %vm2616_vm13 = vcmp.ge.f32.partialorder %v2584_v27, 0.0  ;;  %v2648_v33 = vmul.f32 0.02, %v2584_v27  ;;  %v2479_v62 = vpop.permute.xlu1 %2478  ;;  %v2474_v61 = vpop.permute.xlu0 %2473 }
 0x2d0   : > { %v2587_v26 = vadd.f32 %v4929_v54, %v2548_v30  ;;  %v2586_v34 = vadd.f32 %v4929_v54, %v2547_v43  ;;  %v2518_v52 = vmul.f32 %v4894_v0, %v2479_v62  ;;  %v2517_v39 = vmul.f32 %v4894_v0, %v2474_v61 }
 0x2d1   : > { %v2285_v3 = vadd.f32 %v2253_v25, %v5549_v47  ;;  %v2681_v13 = vsel %vm2617_vm12, %v2585_v40, %v2649_v23  ;;  %v2680_v1 = vsel %vm2616_vm13, %v2584_v27, %v2648_v33 }
 0x2d2   : > { %2714 = vst.msk [vmem:[%s4963_s15 + $0xd8] sm:$0xff] %vm2686_vm0, %v2681_v13  ;;  %2713 = vst.msk [vmem:[%s4963_s15 + $0xd0] sm:$0xff] %vm2686_vm0, %v2680_v1  ;;  %vm2619_vm14 = vcmp.ge.f32.partialorder %v2587_v26, 0.0  ;;  %v2651_v28 = vmul.f32 0.02, %v2587_v26  ;;  %vm2618_vm15 = vcmp.ge.f32.partialorder %v2586_v34, 0.0  ;;  %v2550_v4 = vadd.f32 %v2518_v52, %v2286_v20 }
 0x2d3   : > { %v2650_v48 = vmul.f32 0.02, %v2586_v34  ;;  %v2549_v37 = vadd.f32 %v2517_v39, %v2285_v3 }
 0x2d4   : > { %v2683_v0 = vsel %vm2619_vm14, %v2587_v26, %v2651_v28  ;;  %v2589_v58 = vadd.f32 %v4929_v54, %v2550_v4 }
 0x2d5   : > { %v2682_v17 = vsel %vm2618_vm15, %v2586_v34, %v2650_v48  ;;  %2716 = vst.msk [vmem:[%s4963_s15 + $0xe8] sm:$0xff] %vm2686_vm0, %v2683_v0  ;;  %v2588_v22 = vadd.f32 %v4929_v54, %v2549_v37 }
 0x2d6   : > { %2715 = vst.msk [vmem:[%s4963_s15 + $0xe0] sm:$0xff] %vm2686_vm0, %v2682_v17  ;;  %vm2621_vm1 = vcmp.ge.f32.partialorder %v2589_v58, 0.0  ;;  %v2653_v63 = vmul.f32 0.02, %v2589_v58 }
 0x2d7   : > { %vm2620_vm2 = vcmp.ge.f32.partialorder %v2588_v22, 0.0  ;;  %v2652_v21 = vmul.f32 0.02, %v2588_v22 }
 0x2d8   : > { %v2685_v18 = vsel %vm2621_vm1, %v2589_v58, %v2653_v63 }
 0x2d9   : > { %v2684_v57 = vsel %vm2620_vm2, %v2588_v22, %v2652_v21  ;;  %2718 = vst.msk [vmem:[%s4963_s15 + $0xf8] sm:$0xff] %vm2686_vm0, %v2685_v18 }
 0x2da   : > { %2717 = vst.msk [vmem:[%s4963_s15 + $0xf0] sm:$0xff] %vm2686_vm0, %v2684_v57 }
 0x2db PF: > { %s13_s12 = sadd.s32 1, %s3045_s12  }
 0x2dc   : > { %p10_p4 = scmp.ge.s32.totalorder %s13_s12, 4  }
 0x2de   :  { %12 = sbr.rel (!%p10_p4) target bundleno = 1 (0x1), region = 75 }

// kernel: discriminator1_forward.3
= control target key start
LH: loop header
LB: loop body
LE: loop exit
PB: predicated region body
PF: predicated region fallthrough
CT: control target
= control target key end

     0   :  { %vm137_vm0 = vcmask 261120   ;;  %vm3790_vm3 = vcmask 523264   ;;  %s9542_s1 = inlined_call_operand.vmem [shape: f32[3,3,32,64], index: 1, kind: input, shape index: {}]   ;;  %s9543_s0 = inlined_call_operand.vmem [shape: f32[2,2,4,3,17,32], index: 0, kind: input, shape index: {}]   ;;  %s9544_s3 = inlined_call_operand.vmem [shape: f32[3,3,64,128], index: 3, kind: input, shape index: {}]   ;;  %s9545_s2 = inlined_call_operand.vmem [shape: f32[1,64], index: 2, kind: input, shape index: {}]   ;;  %s9546_s4 = inlined_call_operand.vmem [shape: f32[1,128], index: 4, kind: input, shape index: {}]   ;;  %s9547_s5 = inlined_call_operand.vmem [shape: f32[16,128], index: 5, kind: input, shape index: {}]   ;;  %s9548_s6 = inlined_call_operand.<no memory space> [shape: f32[1,1], index: 6, kind: input, shape index: {}]   ;;  %s9549_s7 = inlined_call_operand.vmem [shape: f32[2,1], index: 7, kind: output, shape index: {}]  }
   0x1   :  { %v6031_v0 = vld [vmem:[%s9542_s1 + $0x20] sm:$0xff]  ;;  %v6032_v1 = vld [vmem:[%s9542_s1 + $0x28] sm:$0xff]  ;;  %v6033_v2 = vld [vmem:[%s9542_s1 + $0x30] sm:$0xff] }
   0x2   :  { %v7958_v3 = vpack.c.bf16 %v6032_v1, %v6031_v0  ;;  %v6034_v4 = vld [vmem:[%s9542_s1 + $0x38] sm:$0xff]  ;;  %v6111_v5 = vld [vmem:[%s9543_s0 + $0x48] sm:$0xff]  ;;  %v7969_v6 = vld [vmem:[%s9543_s0 + $0x60] sm:$0xff] }
   0x3   :  { %v7971_v7 = vpack.c.bf16 %v6034_v4, %v6033_v2  ;;  %6747 = vmatprep.mubr.msk.f32.mxu0 %vm137_vm0, %v6111_v5  ;;  %6873 = vmatprep.mubr.msk.f32.mxu1 %vm137_vm0, %v7969_v6  ;;  %v28_v8 = vld [vmem:[%s9542_s1] sm:$0xff]  ;;  %v29_v9 = vld [vmem:[%s9542_s1 + $0x8] sm:$0xff]  ;;  %v30_v11 = vld [vmem:[%s9542_s1 + $0x10] sm:$0xff] }
   0x4   :  { %7376 = vmatprep.subr.bf16.mxu0 %v7958_v3  ;;  %7448 = vmatprep.subr.bf16.mxu1 %v7958_v3  ;;  %v7988_v10 = vpack.c.bf16 %v29_v9, %v28_v8  ;;  %v31_v12 = vld [vmem:[%s9542_s1 + $0x18] sm:$0xff]  ;;  %v6112_v13 = vld [vmem:[%s9543_s0 + $0x50] sm:$0xff]  ;;  %v8004_v14 = vld [vmem:[%s9543_s0 + $0x68] sm:$0xff] }
   0x5   :  { %7378 = vmatpush3.bf16.msra.mxu0 %v7958_v3  ;;  %7450 = vmatpush3.bf16.msra.mxu1 %v7958_v3  ;;  %v6113_v15 = vld [vmem:[%s9543_s0 + $0x288] sm:$0xff]  ;;  %v8014_v16 = vld [vmem:[%s9543_s0 + $0x2a0] sm:$0xff]  ;;  %v8016_v17 = vpack.c.bf16 %v31_v12, %v30_v11  ;;  %v6114_v20 = vld [vmem:[%s9543_s0 + $0x290] sm:$0xff] }
   0x6   :  { %7380 = vmatprep.subr.bf16.mxu0 %v7971_v7  ;;  %7452 = vmatprep.subr.bf16.mxu1 %v7971_v7  ;;  %v6035_v18 = vld [vmem:[%s9542_s1 + $0x40] sm:$0xff]  ;;  %v6036_v19 = vld [vmem:[%s9542_s1 + $0x48] sm:$0xff]  ;;  %v8048_v23 = vld [vmem:[%s9543_s0 + $0x18] sm:$0xff] }
   0x7   :  { %v8035_v21 = vld [vmem:[%s9543_s0 + $0x2a8] sm:$0xff]  ;;  %v128_v22 = vld [vmem:[%s9543_s0] sm:$0xff]  ;;  %v8050_v24 = vpack.c.bf16 %v6036_v19, %v6035_v18  ;;  %v6037_v25 = vld [vmem:[%s9542_s1 + $0x50] sm:$0xff] }
   0x8   :  { %v6038_v26 = vld [vmem:[%s9542_s1 + $0x58] sm:$0xff]  ;;  %v129_v27 = vld [vmem:[%s9543_s0 + $0x8] sm:$0xff]  ;;  %v8069_v28 = vld [vmem:[%s9543_s0 + $0x20] sm:$0xff] }
   0x9   :  { %7382 = vmatpush3.bf16.msra.mxu0 %v7971_v7  ;;  %7454 = vmatpush3.bf16.msra.mxu1 %v7971_v7  ;;  %v130_v29 = vld [vmem:[%s9543_s0 + $0x240] sm:$0xff]  ;;  %v8082_v30 = vld [vmem:[%s9543_s0 + $0x258] sm:$0xff]  ;;  %v8084_v31 = vpack.c.bf16 %v6038_v26, %v6037_v25  ;;  %v6040_v33 = vld [vmem:[%s9542_s1 + $0x68] sm:$0xff] }
   0xa   :  { %7384 = vmatprep.subr.bf16.mxu0 %v7988_v10  ;;  %7456 = vmatprep.subr.bf16.mxu1 %v7988_v10  ;;  %v6039_v32 = vld [vmem:[%s9542_s1 + $0x60] sm:$0xff]  ;;  %v131_v34 = vld [vmem:[%s9543_s0 + $0x248] sm:$0xff]  ;;  %v8113_v36 = vld [vmem:[%s9543_s0 + $0x90] sm:$0xff] }
   0xb   :  { %v8103_v35 = vld [vmem:[%s9543_s0 + $0x260] sm:$0xff]  ;;  %v8118_v37 = vld [vmem:[%s9543_s0 + $0xa8] sm:$0xff]  ;;  %v8120_v38 = vpack.c.bf16 %v6040_v33, %v6039_v32  ;;  %v6041_v39 = vld [vmem:[%s9542_s1 + $0x70] sm:$0xff] }
   0xc   :  { %6748 = vmatmul.mubr.msk.f32.vlgmr.msra.gmra.mrb[0].mxu0 %vm137_vm0, %v6112_v13  ;;  %6874 = vmatmul.mubr.msk.f32.vlgmr.msra.gmra.mrb[0].mxu1 %vm137_vm0, %v8004_v14  ;;  %v6042_v40 = vld [vmem:[%s9542_s1 + $0x78] sm:$0xff]  ;;  %v8141_v42 = vld [vmem:[%s9543_s0 + $0xb0] sm:$0xff]  ;;  %v8157_v44 = vld [vmem:[%s9543_s0 + $0x2e8] sm:$0xff] }
   0xd   :  { %7386 = vmatpush3.bf16.msra.mxu0 %v7988_v10  ;;  %7458 = vmatpush3.bf16.msra.mxu1 %v7988_v10  ;;  %v8136_v41 = vld [vmem:[%s9543_s0 + $0x98] sm:$0xff]  ;;  %v8152_v43 = vld [vmem:[%s9543_s0 + $0x2d0] sm:$0xff]  ;;  %v8159_v45 = vpack.c.bf16 %v6042_v40, %v6041_v39  ;;  %v6043_v46 = vld [vmem:[%s9542_s1 + $0x80] sm:$0xff] }
   0xe   :  { %6750 = vmatprep.mubr.msk.f32.mxu0 %vm137_vm0, %v6113_v15  ;;  %6876 = vmatprep.mubr.msk.f32.mxu1 %vm137_vm0, %v8014_v16  ;;  %v6044_v47 = vld [vmem:[%s9542_s1 + $0x88] sm:$0xff]  ;;  %v8176_v48 = vld [vmem:[%s9543_s0 + $0x2d8] sm:$0xff]  ;;  %v8181_v49 = vld [vmem:[%s9543_s0 + $0x2f0] sm:$0xff] }
   0xf   :  { %7388 = vmatprep.subr.bf16.mxu0 %v8016_v17  ;;  %7460 = vmatprep.subr.bf16.mxu1 %v8016_v17  ;;  %v6131_v50 = vld [vmem:[%s9543_s0 + $0x120] sm:$0xff]  ;;  %v6192_v51 = vld [vmem:[%s9543_s0 + $0x138] sm:$0xff]  ;;  %v8195_v52 = vpack.c.bf16 %v6044_v47, %v6043_v46  ;;  %v6045_v53 = vld [vmem:[%s9542_s1 + $0x90] sm:$0xff] }
  0x10   :  { %6751 = vmatmul.mubr.msk.f32.gmra.mrb[2].mxu0 %vm137_vm0, %v6114_v20  ;;  %6877 = vmatmul.mubr.msk.f32.gmra.mrb[2].mxu1 %vm137_vm0, %v8035_v21  ;;  %v6046_v54 = vld [vmem:[%s9542_s1 + $0x98] sm:$0xff]  ;;  %v6132_v55 = vld [vmem:[%s9543_s0 + $0x128] sm:$0xff]  ;;  %v6193_v56 = vld [vmem:[%s9543_s0 + $0x140] sm:$0xff] }
  0x11   :  { %7390 = vmatpush3.bf16.msra.mxu0 %v8016_v17  ;;  %7462 = vmatpush3.bf16.msra.mxu1 %v8016_v17  ;;  %v6133_v57 = vld [vmem:[%s9543_s0 + $0x360] sm:$0xff]  ;;  %v6194_v58 = vld [vmem:[%s9543_s0 + $0x378] sm:$0xff]  ;;  %v8225_v59 = vpack.c.bf16 %v6046_v54, %v6045_v53  ;;  %v6048_v61 = vld [vmem:[%s9542_s1 + $0xa8] sm:$0xff] }
  0x12   :  { %6761 = vmatprep.mubr.msk.f32.mxu0 %vm137_vm0, %v128_v22  ;;  %6887 = vmatprep.mubr.msk.f32.mxu1 %vm137_vm0, %v8048_v23  ;;  %v6047_v60 = vld [vmem:[%s9542_s1 + $0xa0] sm:$0xff]  ;;  %v6134_v62 = vld [vmem:[%s9543_s0 + $0x368] sm:$0xff]  ;;  %v6049_v4 = vld [vmem:[%s9542_s1 + $0xb0] sm:$0xff] }
  0x13   :  { %7392 = vmatprep.subr.bf16.mxu0 %v8050_v24  ;;  %7464 = vmatprep.subr.bf16.mxu1 %v8050_v24  ;;  %v6195_v63 = vld [vmem:[%s9543_s0 + $0x380] sm:$0xff]  ;;  %v6139_v0 = vld [vmem:[%s9543_s0 + $0x168] sm:$0xff]  ;;  %v8253_v2 = vpack.c.bf16 %v6048_v61, %v6047_v60  ;;  %v6050_v5 = vld [vmem:[%s9542_s1 + $0xb8] sm:$0xff] }
  0x14   :  { %6762 = vmatmul.mubr.msk.f32.vlgmr.msra.gmra.mrb[0].mxu0 %vm137_vm0, %v129_v27  ;;  %6888 = vmatmul.mubr.msk.f32.vlgmr.msra.gmra.mrb[0].mxu1 %vm137_vm0, %v8069_v28  ;;  %v6200_v1 = vld [vmem:[%s9543_s0 + $0x180] sm:$0xff]  ;;  %v6140_v8 = vld [vmem:[%s9543_s0 + $0x170] sm:$0xff]  ;;  %v6201_v9 = vld [vmem:[%s9543_s0 + $0x188] sm:$0xff]  ;;  %v8281_v13 = vpack.c.bf16 %v6050_v5, %v6049_v4 }
  0x15   :  { %7394 = vmatpush3.bf16.msra.mxu0 %v8050_v24  ;;  %7466 = vmatpush3.bf16.msra.mxu1 %v8050_v24  ;;  %v6141_v11 = vld [vmem:[%s9543_s0 + $0x3a8] sm:$0xff]  ;;  %v6202_v12 = vld [vmem:[%s9543_s0 + $0x3c0] sm:$0xff]  ;;  %v6142_v19 = vld [vmem:[%s9543_s0 + $0x3b0] sm:$0xff] }
  0x16   :  { %6764 = vmatprep.mubr.msk.f32.mxu0 %vm137_vm0, %v130_v29  ;;  %6890 = vmatprep.mubr.msk.f32.mxu1 %vm137_vm0, %v8082_v30  ;;  %v6051_v15 = vld [vmem:[%s9542_s1 + $0xc0] sm:$0xff]  ;;  %v6052_v18 = vld [vmem:[%s9542_s1 + $0xc8] sm:$0xff]  ;;  %v8306_v22 = vld [vmem:[%s9543_s0 + $0x1b0] sm:$0xff] }
  0x17   :  { %7396 = vmatprep.subr.bf16.mxu0 %v8084_v31  ;;  %7468 = vmatprep.subr.bf16.mxu1 %v8084_v31  ;;  %v6203_v20 = vld [vmem:[%s9543_s0 + $0x3c8] sm:$0xff]  ;;  %v8313_v26 = vpack.c.bf16 %v6052_v18, %v6051_v15  ;;  %v6053_v27 = vld [vmem:[%s9542_s1 + $0xd0] sm:$0xff]  ;;  %v6054_v29 = vld [vmem:[%s9542_s1 + $0xd8] sm:$0xff] }
  0x18   :  { %6765 = vmatmul.mubr.msk.f32.gmra.mrb[2].mxu0 %vm137_vm0, %v131_v34  ;;  %6891 = vmatmul.mubr.msk.f32.gmra.mrb[2].mxu1 %vm137_vm0, %v8103_v35  ;;  %v8311_v25 = vld [vmem:[%s9543_s0 + $0x1c8] sm:$0xff]  ;;  %v8328_v32 = vld [vmem:[%s9543_s0 + $0x1b8] sm:$0xff]  ;;  %v8333_v33 = vld [vmem:[%s9543_s0 + $0x1d0] sm:$0xff]  ;;  %v8351_v40 = vpack.c.bf16 %v6054_v29, %v6053_v27 }
  0x19   :  { %7398 = vmatpush3.bf16.msra.mxu0 %v8084_v31  ;;  %7470 = vmatpush3.bf16.msra.mxu1 %v8084_v31  ;;  %v8344_v34 = vld [vmem:[%s9543_s0 + $0x3f0] sm:$0xff]  ;;  %v8349_v39 = vld [vmem:[%s9543_s0 + $0x408] sm:$0xff]  ;;  %v6055_v46 = vld [vmem:[%s9542_s1 + $0xe0] sm:$0xff] }
  0x1a   :  { %6775 = vmatprep.mubr.msk.f32.mxu0 %vm137_vm0, %v8113_v36  ;;  %6901 = vmatprep.mubr.msk.f32.mxu1 %vm137_vm0, %v8118_v37  ;;  %v6056_v47 = vld [vmem:[%s9542_s1 + $0xe8] sm:$0xff]  ;;  %v6216_v53 = vld [vmem:[%s9543_s0 + $0x30] sm:$0xff]  ;;  %v6243_v15 = vld [vmem:[%s9543_s0 + $0x320] sm:$0xff] }
  0x1b   :  { %7400 = vmatprep.subr.bf16.mxu0 %v8120_v38  ;;  %7472 = vmatprep.subr.bf16.mxu1 %v8120_v38  ;;  %v8384_v54 = vpack.c.bf16 %v6056_v47, %v6055_v46  ;;  %v6060_v61 = vld [vmem:[%s9542_s1 + $0x108] sm:$0xff]  ;;  %v8561_v18 = vld [vmem:[%s9543_s0 + $0x338] sm:$0xff] }
  0x1c   :  { %6776 = vmatmul.mubr.msk.f32.vlgmr.msra.gmra.mrb[0].mxu0 %vm137_vm0, %v8136_v41  ;;  %6902 = vmatmul.mubr.msk.f32.vlgmr.msra.gmra.mrb[0].mxu1 %vm137_vm0, %v8141_v42  ;;  %v8507_v5 = vld [vmem:[%s9543_s0 + $0x308] sm:$0xff]  ;;  %v6320_v27 = vld [vmem:[%s9543_s0 + $0x139] sm:$0xff]  ;;  %v6340_v46 = vld [vmem:[%s9543_s0 + $0x31] sm:$0xff] }
  0x1d   :  { %7402 = vmatpush3.bf16.msra.mxu0 %v8120_v38  ;;  %7474 = vmatpush3.bf16.msra.mxu1 %v8120_v38  ;;  %v6269_v29 = vld [vmem:[%s9543_s0 + $0x129] sm:$0xff] }
  0x1e   :  { %6778 = vmatprep.mubr.msk.f32.mxu0 %vm137_vm0, %v8152_v43  ;;  %6904 = vmatprep.mubr.msk.f32.mxu1 %vm137_vm0, %v8157_v44 }
  0x1f   :  { %7404 = vmatprep.subr.bf16.mxu0 %v8159_v45  ;;  %7476 = vmatprep.subr.bf16.mxu1 %v8159_v45 }
  0x20   :  { %6779 = vmatmul.mubr.msk.f32.gmra.mrb[2].mxu0 %vm137_vm0, %v8176_v48  ;;  %6905 = vmatmul.mubr.msk.f32.gmra.mrb[2].mxu1 %vm137_vm0, %v8181_v49 }
  0x21   :  { %7406 = vmatpush3.bf16.msra.mxu0 %v8159_v45  ;;  %7478 = vmatpush3.bf16.msra.mxu1 %v8159_v45 }
  0x22   :  { %6789 = vmatprep.mubr.msk.f32.mxu0 %vm137_vm0, %v6131_v50  ;;  %6915 = vmatprep.mubr.msk.f32.mxu1 %vm137_vm0, %v6192_v51  ;;  %v8368_v50 = vld [vmem:[%s9543_s0 + $0x3f8] sm:$0xff]  ;;  %v8373_v51 = vld [vmem:[%s9543_s0 + $0x410] sm:$0xff] }
  0x23   :  { %7408 = vmatprep.subr.bf16.mxu0 %v8195_v52  ;;  %7480 = vmatprep.subr.bf16.mxu1 %v8195_v52 }
  0x24   :  { %6790 = vmatmul.mubr.msk.f32.vlgmr.msra.gmra.mrb[0].mxu0 %vm137_vm0, %v6132_v55  ;;  %6916 = vmatmul.mubr.msk.f32.vlgmr.msra.gmra.mrb[0].mxu1 %vm137_vm0, %v6193_v56  ;;  %v6057_v55 = vld [vmem:[%s9542_s1 + $0xf0] sm:$0xff]  ;;  %v6058_v56 = vld [vmem:[%s9542_s1 + $0xf8] sm:$0xff] }
  0x25   :  { %7410 = vmatpush3.bf16.msra.mxu0 %v8195_v52  ;;  %7482 = vmatpush3.bf16.msra.mxu1 %v8195_v52  ;;  %v8409_v60 = vpack.c.bf16 %v6058_v56, %v6057_v55  ;;  %v6343_v56 = vld [vmem:[%s9543_s0 + $0x279] sm:$0xff] }
  0x26   :  { %6792 = vmatprep.mubr.msk.f32.mxu0 %vm137_vm0, %v6133_v57  ;;  %6918 = vmatprep.mubr.msk.f32.mxu1 %vm137_vm0, %v6194_v58  ;;  %v6217_v57 = vld [vmem:[%s9543_s0 + $0x38] sm:$0xff]  ;;  %v6218_v58 = vld [vmem:[%s9543_s0 + $0x270] sm:$0xff] }
  0x27   :  { %7412 = vmatprep.subr.bf16.mxu0 %v8225_v59  ;;  %7484 = vmatprep.subr.bf16.mxu1 %v8225_v59 }
  0x28   :  { %6793 = vmatmul.mubr.msk.f32.gmra.mrb[2].mxu0 %vm137_vm0, %v6134_v62  ;;  %6919 = vmatmul.mubr.msk.f32.gmra.mrb[2].mxu1 %vm137_vm0, %v6195_v63  ;;  %v6219_v62 = vld [vmem:[%s9543_s0 + $0x278] sm:$0xff] }
  0x29   :  { %7414 = vmatpush3.bf16.msra.mxu0 %v8225_v59  ;;  %7486 = vmatpush3.bf16.msra.mxu1 %v8225_v59 }
  0x2a   :  { %6803 = vmatprep.mubr.msk.f32.mxu0 %vm137_vm0, %v6139_v0  ;;  %6929 = vmatprep.mubr.msk.f32.mxu1 %vm137_vm0, %v6200_v1  ;;  %v6062_v0 = vld [vmem:[%s9542_s1 + $0x118] sm:$0xff]  ;;  %v6225_v1 = vld [vmem:[%s9543_s0 + $0x80] sm:$0xff] }
  0x2b   :  { %7416 = vmatprep.subr.bf16.mxu0 %v8253_v2  ;;  %7488 = vmatprep.subr.bf16.mxu1 %v8253_v2 }
  0x2c   :  { %6804 = vmatmul.mubr.msk.f32.vlgmr.msra.gmra.mrb[0].mxu0 %vm137_vm0, %v6140_v8  ;;  %6930 = vmatmul.mubr.msk.f32.vlgmr.msra.gmra.mrb[0].mxu1 %vm137_vm0, %v6201_v9  ;;  %v6240_v8 = vld [vmem:[%s9543_s0 + $0xd8] sm:$0xff]  ;;  %v6241_v9 = vld [vmem:[%s9543_s0 + $0xe0] sm:$0xff] }
  0x2d   :  { %7418 = vmatpush3.bf16.msra.mxu0 %v8253_v2  ;;  %7490 = vmatpush3.bf16.msra.mxu1 %v8253_v2 }
  0x2e   :  { %6806 = vmatprep.mubr.msk.f32.mxu0 %vm137_vm0, %v6141_v11  ;;  %6932 = vmatprep.mubr.msk.f32.mxu1 %vm137_vm0, %v6202_v12  ;;  %v8535_v11 = vld [vmem:[%s9543_s0 + $0xf8] sm:$0xff]  ;;  %v8548_v12 = vld [vmem:[%s9543_s0 + $0x330] sm:$0xff] }
  0x2f   :  { %7420 = vmatprep.subr.bf16.mxu0 %v8281_v13  ;;  %7492 = vmatprep.subr.bf16.mxu1 %v8281_v13 }
  0x30   :  { %6807 = vmatmul.mubr.msk.f32.gmra.mrb[2].mxu0 %vm137_vm0, %v6142_v19  ;;  %6933 = vmatmul.mubr.msk.f32.gmra.mrb[2].mxu1 %vm137_vm0, %v6203_v20  ;;  %v6313_v19 = vld [vmem:[%s9543_s0 + $0x218] sm:$0xff]  ;;  %v6314_v20 = vld [vmem:[%s9543_s0 + $0x450] sm:$0xff] }
  0x31   :  { %7422 = vmatpush3.bf16.msra.mxu0 %v8281_v13  ;;  %7494 = vmatpush3.bf16.msra.mxu1 %v8281_v13 }
  0x32   :  { %6817 = vmatprep.mubr.msk.f32.mxu0 %vm137_vm0, %v8306_v22  ;;  %6943 = vmatprep.mubr.msk.f32.mxu1 %vm137_vm0, %v8311_v25 }
  0x33   :  { %7424 = vmatprep.subr.bf16.mxu0 %v8313_v26  ;;  %7496 = vmatprep.subr.bf16.mxu1 %v8313_v26 }
  0x34   :  { %6818 = vmatmul.mubr.msk.f32.vlgmr.msra.gmra.mrb[0].mxu0 %vm137_vm0, %v8328_v32  ;;  %6944 = vmatmul.mubr.msk.f32.vlgmr.msra.gmra.mrb[0].mxu1 %vm137_vm0, %v8333_v33 }
  0x35   :  { %7426 = vmatpush3.bf16.msra.mxu0 %v8313_v26  ;;  %7498 = vmatpush3.bf16.msra.mxu1 %v8313_v26 }
  0x36   :  { %6820 = vmatprep.mubr.msk.f32.mxu0 %vm137_vm0, %v8344_v34  ;;  %6946 = vmatprep.mubr.msk.f32.mxu1 %vm137_vm0, %v8349_v39 }
  0x37   :  { %7428 = vmatprep.subr.bf16.mxu0 %v8351_v40  ;;  %7500 = vmatprep.subr.bf16.mxu1 %v8351_v40 }
  0x38   :  { %6821 = vmatmul.mubr.msk.f32.gmra.mrb[2].mxu0 %vm137_vm0, %v8368_v50  ;;  %6947 = vmatmul.mubr.msk.f32.gmra.mrb[2].mxu1 %vm137_vm0, %v8373_v51 }
  0x39   :  { %7430 = vmatpush3.bf16.msra.mxu0 %v8351_v40  ;;  %7502 = vmatpush3.bf16.msra.mxu1 %v8351_v40 }
  0x3a   :  { %6831 = vmatprep.mubr.msk.f32.mxu0 %vm137_vm0, %v8048_v23  ;;  %6957 = vmatprep.mubr.msk.f32.mxu1 %vm137_vm0, %v6216_v53  ;;  %v6059_v23 = vld [vmem:[%s9542_s1 + $0x100] sm:$0xff] }
  0x3b   :  { %7432 = vmatprep.subr.bf16.mxu0 %v8384_v54  ;;  %7504 = vmatprep.subr.bf16.mxu1 %v8384_v54  ;;  %v8433_v63 = vpack.c.bf16 %v6060_v61, %v6059_v23  ;;  %v6341_v53 = vld [vmem:[%s9543_s0 + $0x39] sm:$0xff]  ;;  %v6077_v23 = vld [vmem:[%s9544_s3 + $0x130] sm:$0xff] }
  0x3c   :  { %6832 = vmatmul.mubr.msk.f32.vlgmr.msra.gmra.mrb[0].mxu0 %vm137_vm0, %v8069_v28  ;;  %6958 = vmatmul.mubr.msk.f32.vlgmr.msra.gmra.mrb[0].mxu1 %vm137_vm0, %v6217_v57  ;;  %v6224_v28 = vld [vmem:[%s9543_s0 + $0x78] sm:$0xff]  ;;  %v6075_v57 = vld [vmem:[%s9544_s3 + $0x120] sm:$0xff] }
  0x3d   :  { %7434 = vmatpush3.bf16.msra.mxu0 %v8384_v54  ;;  %7506 = vmatpush3.bf16.msra.mxu1 %v8384_v54  ;;  %v6078_v61 = vld [vmem:[%s9544_s3 + $0x138] sm:$0xff] }
  0x3e   :  { %6834 = vmatprep.mubr.msk.f32.mxu0 %vm137_vm0, %v8082_v30  ;;  %6960 = vmatprep.mubr.msk.f32.mxu1 %vm137_vm0, %v6218_v58  ;;  %v6061_v30 = vld [vmem:[%s9542_s1 + $0x110] sm:$0xff]  ;;  %v6076_v58 = vld [vmem:[%s9544_s3 + $0x128] sm:$0xff] }
  0x3f   :  { %7436 = vmatprep.subr.bf16.mxu0 %v8409_v60  ;;  %7508 = vmatprep.subr.bf16.mxu1 %v8409_v60  ;;  %v8457_v4 = vpack.c.bf16 %v6062_v0, %v6061_v30  ;;  %v6081_v30 = vld [vmem:[%s9544_s3 + $0x150] sm:$0xff] }
  0x40   :  { %6835 = vmatmul.mubr.msk.f32.gmra.mrb[2].mxu0 %vm137_vm0, %v8103_v35  ;;  %6961 = vmatmul.mubr.msk.f32.gmra.mrb[2].mxu1 %vm137_vm0, %v6219_v62  ;;  %v6226_v35 = vld [vmem:[%s9543_s0 + $0x2b8] sm:$0xff]  ;;  %v7675_v62 = vpack.c.bf16 %v6078_v61, %v6077_v23  ;;  %v6103_v61 = vld [vmem:[%s9544_s3 + $0x200] sm:$0xff] }
  0x41   :  { %7438 = vmatpush3.bf16.msra.mxu0 %v8409_v60  ;;  %7510 = vmatpush3.bf16.msra.mxu1 %v8409_v60  ;;  %v6102_v23 = vld [vmem:[%s9544_s3 + $0x1f8] sm:$0xff] }
  0x42   :  { %6845 = vmatprep.mubr.msk.f32.mxu0 %vm137_vm0, %v7969_v6  ;;  %6971 = vmatprep.mubr.msk.f32.mxu1 %vm137_vm0, %v6224_v28  ;;  %v6227_v6 = vld [vmem:[%s9543_s0 + $0x2c0] sm:$0xff] }
  0x43   :  { %7440 = vmatprep.subr.bf16.mxu0 %v8433_v63  ;;  %7512 = vmatprep.subr.bf16.mxu1 %v8433_v63  ;;  %v6079_v28 = vld [vmem:[%s9544_s3 + $0x140] sm:$0xff] }
  0x44   :  { %6846 = vmatmul.mubr.msk.f32.vlgmr.msra.gmra.mrb[0].mxu0 %vm137_vm0, %v8004_v14  ;;  %6972 = vmatmul.mubr.msk.f32.vlgmr.msra.gmra.mrb[0].mxu1 %vm137_vm0, %v6225_v1  ;;  %v8475_v14 = vld [vmem:[%s9543_s0 + $0xc0] sm:$0xff]  ;;  %v6082_v1 = vld [vmem:[%s9544_s3 + $0x158] sm:$0xff] }
  0x45   :  { %7442 = vmatpush3.bf16.msra.mxu0 %v8433_v63  ;;  %7514 = vmatpush3.bf16.msra.mxu1 %v8433_v63 }
  0x46   :  { %6848 = vmatprep.mubr.msk.f32.mxu0 %vm137_vm0, %v8014_v16  ;;  %6974 = vmatprep.mubr.msk.f32.mxu1 %vm137_vm0, %v6226_v35  ;;  %v8485_v16 = vld [vmem:[%s9543_s0 + $0xc8] sm:$0xff]  ;;  %v7683_v35 = vpack.c.bf16 %v6082_v1, %v6081_v30  ;;  %v6105_v30 = vld [vmem:[%s9544_s3 + $0x210] sm:$0xff] }
  0x47   :  { %7444 = vmatprep.subr.bf16.mxu0 %v8457_v4  ;;  %7516 = vmatprep.subr.bf16.mxu1 %v8457_v4  ;;  %v6089_v1 = vld [vmem:[%s9544_s3 + $0x190] sm:$0xff] }
  0x48   :  { %6849 = vmatmul.mubr.msk.f32.gmra.mrb[2].mxu0 %vm137_vm0, %v8035_v21  ;;  %6975 = vmatmul.mubr.msk.f32.gmra.mrb[2].mxu1 %vm137_vm0, %v6227_v6  ;;  %v8496_v21 = vld [vmem:[%s9543_s0 + $0x300] sm:$0xff]  ;;  %v6084_v6 = vld [vmem:[%s9544_s3 + $0x168] sm:$0xff] }
  0x49   :  { %7446 = vmatpush3.bf16.msra.mxu0 %v8457_v4  ;;  %7518 = vmatpush3.bf16.msra.mxu1 %v8457_v4 }
  0x4a   :  { %6859 = vmatprep.mubr.msk.f32.mxu0 %vm137_vm0, %v8118_v37  ;;  %6985 = vmatprep.mubr.msk.f32.mxu1 %vm137_vm0, %v8475_v14 }
  0x4b   :  { %7520 = vmatprep.subr.bf16.mxu0 %v7958_v3  ;;  %7592 = vmatprep.subr.bf16.mxu1 %v7958_v3 }
  0x4c   :  { %6860 = vmatmul.mubr.msk.f32.vlgmr.msra.gmra.mrb[0].mxu0 %vm137_vm0, %v8141_v42  ;;  %6986 = vmatmul.mubr.msk.f32.vlgmr.msra.gmra.mrb[0].mxu1 %vm137_vm0, %v8485_v16 }
  0x4d   :  { %7522 = vmatpush3.bf16.msra.mxu0 %v7958_v3  ;;  %7594 = vmatpush3.bf16.msra.mxu1 %v7958_v3  ;;  %v8521_v3 = vld [vmem:[%s9543_s0 + $0xf0] sm:$0xff] }
  0x4e   :  { %6862 = vmatprep.mubr.msk.f32.mxu0 %vm137_vm0, %v8157_v44  ;;  %6988 = vmatprep.mubr.msk.f32.mxu1 %vm137_vm0, %v8496_v21 }
  0x4f   :  { %7524 = vmatprep.subr.bf16.mxu0 %v7971_v7  ;;  %7596 = vmatprep.subr.bf16.mxu1 %v7971_v7 }
  0x50   :  { %6863 = vmatmul.mubr.msk.f32.gmra.mrb[2].mxu0 %vm137_vm0, %v8181_v49  ;;  %6989 = vmatmul.mubr.msk.f32.gmra.mrb[2].mxu1 %vm137_vm0, %v8507_v5 }
  0x51   :  { %7526 = vmatpush3.bf16.msra.mxu0 %v7971_v7  ;;  %7598 = vmatpush3.bf16.msra.mxu1 %v7971_v7  ;;  %v6242_v7 = vld [vmem:[%s9543_s0 + $0x318] sm:$0xff] }
  0x52   :  { %6999 = vmatprep.mubr.msk.f32.mxu0 %vm137_vm0, %v6240_v8  ;;  %7125 = vmatprep.mubr.msk.f32.mxu1 %vm137_vm0, %v8521_v3  ;;  %v6095_v8 = vld [vmem:[%s9544_s3 + $0x1c0] sm:$0xff] }
  0x53   :  { %7528 = vmatprep.subr.bf16.mxu0 %v7988_v10  ;;  %7600 = vmatprep.subr.bf16.mxu1 %v7988_v10 }
  0x54   :  { %7000 = vmatmul.mubr.msk.f32.vlgmr.msra.gmra.mrb[4].mxu0 %vm137_vm0, %v6241_v9  ;;  %7126 = vmatmul.mubr.msk.f32.vlgmr.msra.gmra.mrb[4].mxu1 %vm137_vm0, %v8535_v11 }
  0x55   :  { %7530 = vmatpush3.bf16.msra.mxu0 %v7988_v10  ;;  %7602 = vmatpush3.bf16.msra.mxu1 %v7988_v10  ;;  %v2194_v10 = vld [vmem:[%s9543_s0 + $0x1] sm:$0xff] }
  0x56   :  { %7002 = vmatprep.mubr.msk.f32.mxu0 %vm137_vm0, %v6242_v7  ;;  %7128 = vmatprep.mubr.msk.f32.mxu1 %vm137_vm0, %v8548_v12  ;;  %v6064_v7 = vld [vmem:[%s9544_s3 + $0xc8] sm:$0xff] }
  0x57   :  { %7532 = vmatprep.subr.bf16.mxu0 %v8016_v17  ;;  %7604 = vmatprep.subr.bf16.mxu1 %v8016_v17 }
  0x58   :  { %7003 = vmatmul.mubr.msk.f32.gmra.mrb[6].mxu0 %vm137_vm0, %v6243_v15  ;;  %7129 = vmatmul.mubr.msk.f32.gmra.mrb[6].mxu1 %vm137_vm0, %v8561_v18  ;;  %v8899_v15 = vld [vmem:[%s9545_s2] ss:$0 sm:$0xff] }
  0x59   :  { %7534 = vmatpush3.bf16.msra.mxu0 %v8016_v17  ;;  %7606 = vmatpush3.bf16.msra.mxu1 %v8016_v17  ;;  %v8597_v17 = vld [vmem:[%s9543_s0 + $0x19] sm:$0xff] }
  0x5a   :  { %7013 = vmatprep.mubr.msk.f32.mxu0 %vm137_vm0, %v8113_v36  ;;  %7139 = vmatprep.mubr.msk.f32.mxu1 %vm137_vm0, %v8118_v37  ;;  %v8611_v36 = vld [vmem:[%s9543_s0 + $0x21] sm:$0xff] }
  0x5b   :  { %7536 = vmatprep.subr.bf16.mxu0 %v8050_v24  ;;  %7608 = vmatprep.subr.bf16.mxu1 %v8050_v24 }
  0x5c   :  { %7014 = vmatmul.mubr.msk.f32.vlgmr.msra.gmra.mrb[4].mxu0 %vm137_vm0, %v8136_v41  ;;  %7140 = vmatmul.mubr.msk.f32.vlgmr.msra.gmra.mrb[4].mxu1 %vm137_vm0, %v8141_v42  ;;  %v8624_v41 = vld [vmem:[%s9543_s0 + $0x259] sm:$0xff] }
  0x5d   :  { %7538 = vmatpush3.bf16.msra.mxu0 %v8050_v24  ;;  %7610 = vmatpush3.bf16.msra.mxu1 %v8050_v24  ;;  %v2195_v24 = vld [vmem:[%s9543_s0 + $0x9] sm:$0xff] }
  0x5e   :  { %7016 = vmatprep.mubr.msk.f32.mxu0 %vm137_vm0, %v8152_v43  ;;  %7142 = vmatprep.mubr.msk.f32.mxu1 %vm137_vm0, %v8157_v44  ;;  %v2197_v43 = vld [vmem:[%s9543_s0 + $0x249] sm:$0xff] }
  0x5f   :  { %7540 = vmatprep.subr.bf16.mxu0 %v8084_v31  ;;  %7612 = vmatprep.subr.bf16.mxu1 %v8084_v31 }
  0x60   :  { %7017 = vmatmul.mubr.msk.f32.gmra.mrb[6].mxu0 %vm137_vm0, %v8176_v48  ;;  %7143 = vmatmul.mubr.msk.f32.gmra.mrb[6].mxu1 %vm137_vm0, %v8181_v49  ;;  %v8637_v48 = vld [vmem:[%s9543_s0 + $0x261] sm:$0xff] }
  0x61   :  { %7542 = vmatpush3.bf16.msra.mxu0 %v8084_v31  ;;  %7614 = vmatpush3.bf16.msra.mxu1 %v8084_v31  ;;  %v2196_v31 = vld [vmem:[%s9543_s0 + $0x241] sm:$0xff] }
  0x62   :  { %7027 = vmatprep.mubr.msk.f32.mxu0 %vm137_vm0, %v2194_v10  ;;  %7153 = vmatprep.mubr.msk.f32.mxu1 %vm137_vm0, %v8597_v17 }
  0x63   :  { %7544 = vmatprep.subr.bf16.mxu0 %v8120_v38  ;;  %7616 = vmatprep.subr.bf16.mxu1 %v8120_v38 }
  0x64   :  { %7028 = vmatmul.mubr.msk.f32.vlgmr.msra.gmra.mrb[4].mxu0 %vm137_vm0, %v2195_v24  ;;  %7154 = vmatmul.mubr.msk.f32.vlgmr.msra.gmra.mrb[4].mxu1 %vm137_vm0, %v8611_v36 }
  0x65   :  { %7546 = vmatpush3.bf16.msra.mxu0 %v8120_v38  ;;  %7618 = vmatpush3.bf16.msra.mxu1 %v8120_v38  ;;  %v6260_v38 = vld [vmem:[%s9543_s0 + $0x1f8] sm:$0xff] }
  0x66   :  { %7030 = vmatprep.mubr.msk.f32.mxu0 %vm137_vm0, %v2196_v31  ;;  %7156 = vmatprep.mubr.msk.f32.mxu1 %vm137_vm0, %v8624_v41 }
  0x67   :  { %7548 = vmatprep.subr.bf16.mxu0 %v8159_v45  ;;  %7620 = vmatprep.subr.bf16.mxu1 %v8159_v45 }
  0x68   :  { %7031 = vmatmul.mubr.msk.f32.gmra.mrb[6].mxu0 %vm137_vm0, %v2197_v43  ;;  %7157 = vmatmul.mubr.msk.f32.gmra.mrb[6].mxu1 %vm137_vm0, %v8637_v48  ;;  %v6065_v43 = vld [vmem:[%s9544_s3 + $0xd0] sm:$0xff] }
  0x69   :  { %7550 = vmatpush3.bf16.msra.mxu0 %v8159_v45  ;;  %7622 = vmatpush3.bf16.msra.mxu1 %v8159_v45  ;;  %v6312_v45 = vld [vmem:[%s9543_s0 + $0x210] sm:$0xff] }
  0x6a   :  { %7041 = vmatprep.mubr.msk.f32.mxu0 %vm137_vm0, %v8306_v22  ;;  %7167 = vmatprep.mubr.msk.f32.mxu1 %vm137_vm0, %v8311_v25  ;;  %v6263_v22 = vld [vmem:[%s9543_s0 + $0x440] sm:$0xff]  ;;  %v6315_v25 = vld [vmem:[%s9543_s0 + $0x458] sm:$0xff] }
  0x6b   :  { %7552 = vmatprep.subr.bf16.mxu0 %v8195_v52  ;;  %7624 = vmatprep.subr.bf16.mxu1 %v8195_v52 }
  0x6c   :  { %7042 = vmatmul.mubr.msk.f32.vlgmr.msra.gmra.mrb[4].mxu0 %vm137_vm0, %v8328_v32  ;;  %7168 = vmatmul.mubr.msk.f32.vlgmr.msra.gmra.mrb[4].mxu1 %vm137_vm0, %v8333_v33  ;;  %v6321_v32 = vld [vmem:[%s9543_s0 + $0x141] sm:$0xff]  ;;  %v6322_v33 = vld [vmem:[%s9543_s0 + $0x379] sm:$0xff] }
  0x6d   :  { %7554 = vmatpush3.bf16.msra.mxu0 %v8195_v52  ;;  %7626 = vmatpush3.bf16.msra.mxu1 %v8195_v52  ;;  %v6261_v52 = vld [vmem:[%s9543_s0 + $0x200] sm:$0xff] }
  0x6e   :  { %7044 = vmatprep.mubr.msk.f32.mxu0 %vm137_vm0, %v8344_v34  ;;  %7170 = vmatprep.mubr.msk.f32.mxu1 %vm137_vm0, %v8349_v39  ;;  %v6271_v34 = vld [vmem:[%s9543_s0 + $0x369] sm:$0xff]  ;;  %v6323_v39 = vld [vmem:[%s9543_s0 + $0x381] sm:$0xff] }
  0x6f   :  { %7556 = vmatprep.subr.bf16.mxu0 %v8225_v59  ;;  %7628 = vmatprep.subr.bf16.mxu1 %v8225_v59 }
  0x70   :  { %7045 = vmatmul.mubr.msk.f32.gmra.mrb[6].mxu0 %vm137_vm0, %v8368_v50  ;;  %7171 = vmatmul.mubr.msk.f32.gmra.mrb[6].mxu1 %vm137_vm0, %v8373_v51  ;;  %v6073_v50 = vld [vmem:[%s9544_s3 + $0x110] sm:$0xff]  ;;  %v6074_v51 = vld [vmem:[%s9544_s3 + $0x118] sm:$0xff] }
  0x71   :  { %7558 = vmatpush3.bf16.msra.mxu0 %v8225_v59  ;;  %7630 = vmatpush3.bf16.msra.mxu1 %v8225_v59  ;;  %v6262_v59 = vld [vmem:[%s9543_s0 + $0x438] sm:$0xff]  ;;  %v7667_v55 = vpack.c.bf16 %v6074_v51, %v6073_v50  ;;  %v9550_v51 = vlaneseq }
  0x72   :  { %7055 = vmatprep.mubr.msk.f32.mxu0 %vm137_vm0, %v6260_v38  ;;  %7181 = vmatprep.mubr.msk.f32.mxu1 %vm137_vm0, %v6312_v45 }
  0x73   :  { %7560 = vmatprep.subr.bf16.mxu0 %v8253_v2  ;;  %7632 = vmatprep.subr.bf16.mxu1 %v8253_v2 }
  0x74   :  { %7056 = vmatmul.mubr.msk.f32.vlgmr.msra.gmra.mrb[4].mxu0 %vm137_vm0, %v6261_v52  ;;  %7182 = vmatmul.mubr.msk.f32.vlgmr.msra.gmra.mrb[4].mxu1 %vm137_vm0, %v6313_v19 }
  0x75   :  { %7562 = vmatpush3.bf16.msra.mxu0 %v8253_v2  ;;  %7634 = vmatpush3.bf16.msra.mxu1 %v8253_v2  ;;  %v6268_v2 = vld [vmem:[%s9543_s0 + $0x121] sm:$0xff] }
  0x76   :  { %7058 = vmatprep.mubr.msk.f32.mxu0 %vm137_vm0, %v6262_v59  ;;  %7184 = vmatprep.mubr.msk.f32.mxu1 %vm137_vm0, %v6314_v20 }
  0x77   :  { %7564 = vmatprep.subr.bf16.mxu0 %v8281_v13  ;;  %7636 = vmatprep.subr.bf16.mxu1 %v8281_v13 }
  0x78   :  { %7059 = vmatmul.mubr.msk.f32.gmra.mrb[6].mxu0 %vm137_vm0, %v6263_v22  ;;  %7185 = vmatmul.mubr.msk.f32.gmra.mrb[6].mxu1 %vm137_vm0, %v6315_v25 }
  0x79   :  { %7566 = vmatpush3.bf16.msra.mxu0 %v8281_v13  ;;  %7638 = vmatpush3.bf16.msra.mxu1 %v8281_v13  ;;  %v6270_v13 = vld [vmem:[%s9543_s0 + $0x361] sm:$0xff] }
  0x7a   :  { %7069 = vmatprep.mubr.msk.f32.mxu0 %vm137_vm0, %v6268_v2  ;;  %7195 = vmatprep.mubr.msk.f32.mxu1 %vm137_vm0, %v6320_v27 }
  0x7b   :  { %7568 = vmatprep.subr.bf16.mxu0 %v8313_v26  ;;  %7640 = vmatprep.subr.bf16.mxu1 %v8313_v26 }
  0x7c   :  { %7070 = vmatmul.mubr.msk.f32.vlgmr.msra.gmra.mrb[4].mxu0 %vm137_vm0, %v6269_v29  ;;  %7196 = vmatmul.mubr.msk.f32.vlgmr.msra.gmra.mrb[4].mxu1 %vm137_vm0, %v6321_v32  ;;  %v6067_v32 = vld [vmem:[%s9544_s3 + $0xe0] sm:$0xff] }
  0x7d   :  { %7570 = vmatpush3.bf16.msra.mxu0 %v8313_v26  ;;  %7642 = vmatpush3.bf16.msra.mxu1 %v8313_v26  ;;  %v6072_v26 = vld [vmem:[%s9544_s3 + $0x108] sm:$0xff] }
  0x7e   :  { %7072 = vmatprep.mubr.msk.f32.mxu0 %vm137_vm0, %v6270_v13  ;;  %7198 = vmatprep.mubr.msk.f32.mxu1 %vm137_vm0, %v6322_v33  ;;  %v6068_v13 = vld [vmem:[%s9544_s3 + $0xe8] sm:$0xff] }
  0x7f   :  { %7572 = vmatprep.subr.bf16.mxu0 %v8351_v40  ;;  %7644 = vmatprep.subr.bf16.mxu1 %v8351_v40 }
  0x80   :  { %7073 = vmatmul.mubr.msk.f32.gmra.mrb[6].mxu0 %vm137_vm0, %v6271_v34  ;;  %7199 = vmatmul.mubr.msk.f32.gmra.mrb[6].mxu1 %vm137_vm0, %v6323_v39  ;;  %v7703_v39 = vpack.c.bf16 %v6068_v13, %v6067_v32 }
  0x81   :  { %7574 = vmatpush3.bf16.msra.mxu0 %v8351_v40  ;;  %7646 = vmatpush3.bf16.msra.mxu1 %v8351_v40  ;;  %v6335_v40 = vld [vmem:[%s9543_s0 + $0x350] sm:$0xff] }
  0x82   :  { %7083 = vmatprep.mubr.msk.f32.mxu0 %vm137_vm0, %v8118_v37  ;;  %7209 = vmatprep.mubr.msk.f32.mxu1 %vm137_vm0, %v8475_v14  ;;  %v6332_v37 = vld [vmem:[%s9543_s0 + $0x108] sm:$0xff] }
  0x83   :  { %7576 = vmatprep.subr.bf16.mxu0 %v8384_v54  ;;  %7648 = vmatprep.subr.bf16.mxu1 %v8384_v54 }
  0x84   :  { %7084 = vmatmul.mubr.msk.f32.vlgmr.msra.gmra.mrb[4].mxu0 %vm137_vm0, %v8141_v42  ;;  %7210 = vmatmul.mubr.msk.f32.vlgmr.msra.gmra.mrb[4].mxu1 %vm137_vm0, %v8485_v16  ;;  %v6333_v42 = vld [vmem:[%s9543_s0 + $0x110] sm:$0xff] }
  0x85   :  { %7578 = vmatpush3.bf16.msra.mxu0 %v8384_v54  ;;  %7650 = vmatpush3.bf16.msra.mxu1 %v8384_v54  ;;  %v6342_v54 = vld [vmem:[%s9543_s0 + $0x271] sm:$0xff] }
  0x86   :  { %7086 = vmatprep.mubr.msk.f32.mxu0 %vm137_vm0, %v8157_v44  ;;  %7212 = vmatprep.mubr.msk.f32.mxu1 %vm137_vm0, %v8496_v21  ;;  %v6334_v44 = vld [vmem:[%s9543_s0 + $0x348] sm:$0xff]  ;;  %v6085_v16 = vld [vmem:[%s9544_s3 + $0x170] sm:$0xff]  ;;  %v6086_v21 = vld [vmem:[%s9544_s3 + $0x178] sm:$0xff] }
  0x87   :  { %7580 = vmatprep.subr.bf16.mxu0 %v8409_v60  ;;  %7652 = vmatprep.subr.bf16.mxu1 %v8409_v60 }
  0x88   :  { %7087 = vmatmul.mubr.msk.f32.gmra.mrb[6].mxu0 %vm137_vm0, %v8181_v49  ;;  %7213 = vmatmul.mubr.msk.f32.gmra.mrb[6].mxu1 %vm137_vm0, %v8507_v5  ;;  %v6071_v49 = vld [vmem:[%s9544_s3 + $0x100] sm:$0xff]  ;;  %v7691_v5 = vpack.c.bf16 %v6086_v21, %v6085_v16 }
  0x89   :  { %7582 = vmatpush3.bf16.msra.mxu0 %v8409_v60  ;;  %7654 = vmatpush3.bf16.msra.mxu1 %v8409_v60  ;;  %v7663_v47 = vpack.c.bf16 %v6072_v26, %v6071_v49  ;;  %v7671_v60 = vpack.c.bf16 %v6076_v58, %v6075_v57  ;;  %v6087_v26 = vld [vmem:[%s9544_s3 + $0x180] sm:$0xff]  ;;  %v6100_v58 = vld [vmem:[%s9544_s3 + $0x1e8] sm:$0xff] }
  0x8a   :  { %7097 = vmatprep.mubr.msk.f32.mxu0 %vm137_vm0, %v8521_v3  ;;  %7223 = vmatprep.mubr.msk.f32.mxu1 %vm137_vm0, %v6332_v37  ;;  %v6096_v3 = vld [vmem:[%s9544_s3 + $0x1c8] sm:$0xff]  ;;  %v6099_v57 = vld [vmem:[%s9544_s3 + $0x1e0] sm:$0xff] }
  0x8b   :  { %7584 = vmatprep.subr.bf16.mxu0 %v8433_v63  ;;  %7656 = vmatprep.subr.bf16.mxu1 %v8433_v63  ;;  %v8887_v9 = vpack.c.bf16 %v6096_v3, %v6095_v8  ;;  %v8992_v8 = vpack.c.bf16 %v6100_v58, %v6099_v57 }
  0x8c   :  { %7098 = vmatmul.mubr.msk.f32.vlgmr.msra.gmra.mrb[4].mxu0 %vm137_vm0, %v8535_v11  ;;  %7224 = vmatmul.mubr.msk.f32.vlgmr.msra.gmra.mrb[4].mxu1 %vm137_vm0, %v6333_v42  ;;  %v6063_v11 = vld [vmem:[%s9544_s3 + $0xc0] sm:$0xff]  ;;  %v6069_v42 = vld [vmem:[%s9544_s3 + $0xf0] sm:$0xff] }
  0x8d   :  { %7586 = vmatpush3.bf16.msra.mxu0 %v8433_v63  ;;  %7658 = vmatpush3.bf16.msra.mxu1 %v8433_v63  ;;  %v6080_v63 = vld [vmem:[%s9544_s3 + $0x148] sm:$0xff] }
  0x8e   :  { %7100 = vmatprep.mubr.msk.f32.mxu0 %vm137_vm0, %v8548_v12  ;;  %7226 = vmatprep.mubr.msk.f32.mxu1 %vm137_vm0, %v6334_v44  ;;  %v7679_v0 = vpack.c.bf16 %v6080_v63, %v6079_v28  ;;  %v7695_v12 = vpack.c.bf16 %v6064_v7, %v6063_v11  ;;  %v6070_v44 = vld [vmem:[%s9544_s3 + $0xf8] sm:$0xff] }
  0x8f   :  { %7588 = vmatprep.subr.bf16.mxu0 %v8457_v4  ;;  %7660 = vmatprep.subr.bf16.mxu1 %v8457_v4  ;;  %v7707_v49 = vpack.c.bf16 %v6070_v44, %v6069_v42 }
  0x90   :  { %7101 = vmatmul.mubr.msk.f32.gmra.mrb[6].mxu0 %vm137_vm0, %v8561_v18  ;;  %7227 = vmatmul.mubr.msk.f32.gmra.mrb[6].mxu1 %vm137_vm0, %v6335_v40  ;;  %v6088_v40 = vld [vmem:[%s9544_s3 + $0x188] sm:$0xff] }
  0x91   :  { %7590 = vmatpush3.bf16.msra.mxu0 %v8457_v4  ;;  %7662 = vmatpush3.bf16.msra.mxu1 %v8457_v4  ;;  %v6083_v4 = vld [vmem:[%s9544_s3 + $0x160] sm:$0xff] }
  0x92   :  { %7111 = vmatprep.mubr.msk.f32.mxu0 %vm137_vm0, %v8597_v17  ;;  %7237 = vmatprep.mubr.msk.f32.mxu1 %vm137_vm0, %v6340_v46  ;;  %v7687_v14 = vpack.c.bf16 %v6084_v6, %v6083_v4  ;;  %v8937_v46 = vpack.c.bf16 %v6088_v40, %v6087_v26  ;;  %v6107_v4 = vld [vmem:[%s9544_s3 + $0x220] sm:$0xff]  ;;  %v6108_v6 = vld [vmem:[%s9544_s3 + $0x228] sm:$0xff] }
  0x93   :  { %7664 = vmatprep.subr.bf16.mxu1 %v7663_v47  ;;  %7680 = vmatprep.subr.bf16.mxu0 %v7679_v0 }
  0x94   :  { %7112 = vmatmul.mubr.msk.f32.vlgmr.msra.gmra.mrb[4].mxu0 %vm137_vm0, %v8611_v36  ;;  %7238 = vmatmul.mubr.msk.f32.vlgmr.msra.gmra.mrb[4].mxu1 %vm137_vm0, %v6341_v53  ;;  %v6097_v53 = vld [vmem:[%s9544_s3 + $0x1d0] sm:$0xff] }
  0x95   :  { %7114 = vmatprep.mubr.msk.f32.mxu0 %vm137_vm0, %v8624_v41  ;;  %7240 = vmatprep.mubr.msk.f32.mxu1 %vm137_vm0, %v6342_v54  ;;  %v6098_v54 = vld [vmem:[%s9544_s3 + $0x1d8] sm:$0xff] }
  0x96   :  { %7666 = vmatpush3.bf16.msra.mxu1 %v7663_v47  ;;  %7682 = vmatpush3.bf16.msra.mxu0 %v7679_v0  ;;  %v7908_v47 = vmov 1966171168   ;;  %v6106_v0 = vld [vmem:[%s9544_s3 + $0x218] sm:$0xff] }
  0x97   :  { %7668 = vmatprep.subr.bf16.mxu1 %v7667_v55  ;;  %7684 = vmatprep.subr.bf16.mxu0 %v7683_v35  ;;  %v3995_v50 = vunpack.c.l.s4 %v7908_v47 }
  0x98   :  { %7115 = vmatmul.mubr.msk.f32.gmra.mrb[6].mxu0 %vm137_vm0, %v8637_v48  ;;  %7241 = vmatmul.mubr.msk.f32.gmra.mrb[6].mxu1 %vm137_vm0, %v6343_v56  ;;  %v6066_v48 = vld [vmem:[%s9544_s3 + $0xd8] sm:$0xff]  ;;  %v8947_v56 = vshrl.u32 %v9550_v51, 7 }
  0x99   :  { %v7699_v25 = vpack.c.bf16 %v6066_v48, %v6065_v43  ;;  %v9010_v48 = vpack.c.bf16 %v6108_v6, %v6107_v4 }
  0x9a   :  { %7670 = vmatpush3.bf16.msra.mxu1 %v7667_v55  ;;  %7686 = vmatpush3.bf16.msra.mxu0 %v7683_v35  ;;  %v3996_v55 = vunpack.c.0.s8 %v3995_v50  ;;  %v6090_v35 = vld [vmem:[%s9544_s3 + $0x198] sm:$0xff] }
  0x9b   :  { %7672 = vmatprep.subr.bf16.mxu1 %v7671_v60  ;;  %7688 = vmatprep.subr.bf16.mxu0 %v7687_v14  ;;  %v9008_v43 = vpack.c.bf16 %v6090_v35, %v6089_v1 }
  0x9c   :  { %v8988_v16 = vsub.s32 %v3996_v55, %v8947_v56 }
  0x9e   :  { %7674 = vmatpush3.bf16.msra.mxu1 %v7671_v60  ;;  %7690 = vmatpush3.bf16.msra.mxu0 %v7687_v14  ;;  %v6101_v60 = vld [vmem:[%s9544_s3 + $0x1f0] sm:$0xff] }
  0x9f   :  { %7676 = vmatprep.subr.bf16.mxu1 %v7675_v62  ;;  %7692 = vmatprep.subr.bf16.mxu0 %v7691_v5  ;;  %v8994_v3 = vpack.c.bf16 %v6102_v23, %v6101_v60 }
  0xa2   :  { %7678 = vmatpush3.bf16.msra.mxu1 %v7675_v62  ;;  %7694 = vmatpush3.bf16.msra.mxu0 %v7691_v5  ;;  %v6104_v62 = vld [vmem:[%s9544_s3 + $0x208] sm:$0xff]  ;;  %v8990_v5 = vpack.c.bf16 %v6098_v54, %v6097_v53 }
  0xa3   :  { %7712 = vmatprep.subr.bf16.mxu0 %v8887_v9  ;;  %7696 = vmatprep.subr.bf16.mxu1 %v7695_v12 }
 0x11f   :  { %v6861_v18 = vpop.f32.mrb[0].mxu0  ;;  %v6987_v10 = vpop.f32.mrb[0].mxu1 }
 0x120   :  { %v1081_v17 = vadd.f32 %v6861_v18, %v8899_v15  ;;  %v1051_v24 = vpop.f32.mrb[1].mxu0  ;;  %v1968_v36 = vpop.f32.mrb[1].mxu1  ;;  %v1992_v28 = vadd.f32 %v6987_v10, %v8899_v15  ;;  %v8998_v10 = vpack.c.bf16 %v6104_v62, %v6103_v61 }
 0x121   :  { %v1080_v31 = vadd.f32 %v8899_v15, %v1051_v24  ;;  %v1991_v63 = vadd.f32 %v8899_v15, %v1968_v36  ;;  %v6091_v24 = vld [vmem:[%s9544_s3 + $0x1a0] sm:$0xff]  ;;  %v6092_v36 = vld [vmem:[%s9544_s3 + $0x1a8] sm:$0xff] }
 0x122   :  { %v1089_v41 = vmul.f32 0.02, %v1081_v17  ;;  %vm1085_vm1 = vcmp.ge.f32.partialorder %v1081_v17, 0.0  ;;  %vm1996_vm8 = vcmp.ge.f32.partialorder %v1992_v28, 0.0 }
 0x123   :  { %vm1084_vm2 = vcmp.ge.f32.partialorder %v1080_v31, 0.0  ;;  %v1088_v38 = vmul.f32 0.02, %v1080_v31  ;;  %v6864_v45 = vpop.f32.mrb[2].mxu0  ;;  %v8909_v52 = vpop.f32.mrb[2].mxu1  ;;  %vm1995_vm9 = vcmp.ge.f32.partialorder %v1991_v63, 0.0 }
 0x124   :  { %v1083_v19 = vadd.f32 %v6864_v45, %v8899_v15  ;;  %v1061_v59 = vpop.f32.mrb[3].mxu0  ;;  %v8912_v20 = vpop.f32.mrb[3].mxu1  ;;  %v1093_v2 = vsel %vm1085_vm1, %v1081_v17, %v1089_v41  ;;  %v9000_v17 = vpack.c.bf16 %v6106_v0, %v6105_v30  ;;  %v1999_v41 = vmul.f32 0.02, %v1991_v63  ;;  %v6110_v45 = vld [vmem:[%s9544_s3 + $0x238] sm:$0xff] }
 0x125   :  { %v1092_v22 = vsel %vm1084_vm2, %v1080_v31, %v1088_v38  ;;  %v1082_v27 = vadd.f32 %v8899_v15, %v1061_v59  ;;  %v2000_v31 = vmul.f32 0.02, %v1992_v28  ;;  %v6109_v38 = vld [vmem:[%s9544_s3 + $0x230] sm:$0xff] }
 0x126   :  { %7259 = vmatprep.mubr.msk.f32.mxu1 %vm3790_vm3, %v1092_v22  ;;  %v1091_v29 = vmul.f32 0.02, %v1083_v19  ;;  %vm1087_vm4 = vcmp.ge.f32.partialorder %v1083_v19, 0.0  ;;  %v1994_v22 = vadd.f32 %v8909_v52, %v8899_v15  ;;  %v9034_v52 = vpack.c.bf16 %v6110_v45, %v6109_v38 }
 0x127   :  { %7260 = vmatmul.mubr.msk.f32.vlgmr.msra.gmra.mrb[8].mxu1 %vm3790_vm3, %v1093_v2  ;;  %vm1086_vm5 = vcmp.ge.f32.partialorder %v1082_v27, 0.0  ;;  %v1090_v33 = vmul.f32 0.02, %v1082_v27  ;;  %v6093_v2 = vld [vmem:[%s9544_s3 + $0x1b0] sm:$0xff]  ;;  %v9045_v26 = vsel %vm1996_vm8, %v1992_v28, %v2000_v31  ;;  %v9049_v47 = vsel %vm1995_vm9, %v1991_v63, %v1999_v41 }
 0x128   :  { %7698 = vmatpush3.bf16.msra.mxu1 %v7695_v12  ;;  %v1095_v37 = vsel %vm1087_vm4, %v1083_v19, %v1091_v29  ;;  %v1993_v29 = vadd.f32 %v8899_v15, %v8912_v20  ;;  %vm1998_vm10 = vcmp.ge.f32.partialorder %v1994_v22, 0.0  ;;  %v2002_v57 = vmul.f32 0.02, %v1994_v22 }
 0x129   :  { %7700 = vmatprep.subr.bf16.mxu1 %v7699_v25  ;;  %v1094_v34 = vsel %vm1086_vm5, %v1082_v27, %v1090_v33  ;;  %v6094_v27 = vld [vmem:[%s9544_s3 + $0x1b8] sm:$0xff]  ;;  %vm5948_vm4 = vcmask 1047553   ;;  %vm5926_vm5 = vcmask 1040384  }
 0x12a   :  { %7262 = vmatprep.mubr.msk.f32.mxu1 %vm3790_vm3, %v1094_v34  ;;  %v9051_v50 = vpack.c.bf16 %v6094_v27, %v6093_v2  ;;  %vm1997_vm11 = vcmp.ge.f32.partialorder %v1993_v29, 0.0  ;;  %v2001_v23 = vmul.f32 0.02, %v1993_v29  ;;  %v9090_v2 = vsel %vm1998_vm10, %v1994_v22, %v2002_v57 }
 0x12b   :  { %7263 = vmatmul.mubr.msk.f32.gmra.mrb[10].mxu1 %vm3790_vm3, %v1095_v37  ;;  %vm5975_vm10 = vcmask 121912  }
 0x12c   :  { %7702 = vmatpush3.bf16.msra.mxu1 %v7699_v25  ;;  %v9020_v25 = vpack.c.bf16 %v6092_v36, %v6091_v24 }
 0x12d   :  { %7704 = vmatprep.subr.bf16.mxu1 %v7703_v39 }
 0x130   :  { %7706 = vmatpush3.bf16.msra.mxu1 %v7703_v39 }
 0x131   :  { %7708 = vmatprep.subr.bf16.mxu1 %v7707_v49 }
 0x134   :  { %7710 = vmatpush3.bf16.msra.mxu1 %v7707_v49 }
 0x135   :  { %7744 = vmatprep.subr.bf16.mxu1 %v8937_v46 }
 0x167   :  { %v7113_v14 = vpop.f32.mrb[4].mxu0  ;;  %v7239_v21 = vpop.f32.mrb[4].mxu1 }
 0x168   :  { %v2900_v11 = vadd.f32 %v7113_v14, %v8899_v15  ;;  %v3775_v7 = vadd.f32 %v7239_v21, %v8899_v15  ;;  %v2876_v12 = vpop.f32.mrb[5].mxu0  ;;  %v3751_v18 = vpop.f32.mrb[5].mxu1 }
 0x169   :  { %v2899_v60 = vadd.f32 %v8899_v15, %v2876_v12  ;;  %v9059_v30 = vadd.f32 %v8899_v15, %v3751_v18 }
 0x16a   :  { %vm2904_vm6 = vcmp.ge.f32.partialorder %v2900_v11, 0.0  ;;  %v2908_v19 = vmul.f32 0.02, %v2900_v11  ;;  %vm3779_vm7 = vcmp.ge.f32.partialorder %v3775_v7, 0.0  ;;  %v3783_v59 = vmul.f32 0.02, %v3775_v7 }
 0x16b   :  { %v7116_v33 = vpop.f32.mrb[6].mxu0  ;;  %v7242_v34 = vpop.f32.mrb[6].mxu1  ;;  %vm2903_vm13 = vcmp.ge.f32.partialorder %v2899_v60, 0.0  ;;  %v2907_v21 = vmul.f32 0.02, %v2899_v60  ;;  %vm3778_vm0 = vcmp.ge.f32.partialorder %v9059_v30, 0.0 }
 0x16c   :  { %v9030_v32 = vsel %vm2904_vm6, %v2900_v11, %v2908_v19  ;;  %v9032_v13 = vsel %vm3779_vm7, %v3775_v7, %v3783_v59  ;;  %v2886_v44 = vpop.f32.mrb[7].mxu0  ;;  %v3761_v49 = vpop.f32.mrb[7].mxu1  ;;  %v3777_v40 = vadd.f32 %v7242_v34, %v8899_v15  ;;  %v2902_v24 = vadd.f32 %v7116_v33, %v8899_v15 }
 0x16d   :  { %v4042_v39 = vcombine.high %v9030_v32, %v9030_v32  ;;  %v4049_v37 = vrot.slane %v9030_v32, %v8988_v16  ;;  %v4976_v42 = vcombine.high %v9032_v13, %v9032_v13  ;;  %v4983_v20 = vrot.slane %v9032_v13, %v8988_v16 }
 0x16e   :  { %vm3781_vm12 = vcmp.ge.f32.partialorder %v3777_v40, 0.0  ;;  %v3785_v0 = vmul.f32 0.02, %v3777_v40  ;;  %v2901_v6 = vadd.f32 %v8899_v15, %v2886_v44  ;;  %v9087_v59 = vsel %vm1997_vm11, %v1993_v29, %v2001_v23 }
 0x16f   :  { %v4056_v53 = vrot.slane %v4042_v39, %v8988_v16  ;;  %v4057_v54 = vcombine.high %v4049_v37, %v4049_v37  ;;  %v4990_v55 = vrot.slane %v4976_v42, %v8988_v16  ;;  %v4991_v58 = vcombine.high %v4983_v20, %v4983_v20 }
 0x170   :  { %v4065_v62 = vrot.slane %v4049_v37, %v8988_v16  ;;  %v9066_v11 = vsel %vm3781_vm12, %v3777_v40, %v3785_v0  ;;  %v9071_v18 = vrot.slane %v4983_v20, %v8988_v16  ;;  %v2909_v19 = vmul.f32 0.02, %v2901_v6 }
 0x171   :  { %v4058_v61 = vcombine.high %v4056_v53, %v4056_v53  ;;  %v4079_v28 = vrot.slane %v4057_v54, %v8988_v16  ;;  %v4992_v63 = vcombine.high %v4990_v55, %v4990_v55  ;;  %v9062_v4 = vrot.slane %v4991_v58, %v8988_v16 }
 0x172   :  { %v9075_v36 = vrot.slane %v4056_v53, %v8988_v16  ;;  %v5073_v41 = vcombine.high %v9066_v11, %v9066_v11  ;;  %v5080_v38 = vrot.slane %v9066_v11, %v8988_v16  ;;  %v9094_v34 = vrot.slane %v4990_v55, %v8988_v16 }
 0x173   :  { %v4236_v1 = vcombine.low %v4065_v62, %v4079_v28  ;;  %v6358_v35 = vcombine.high %v4065_v62, %v4079_v28  ;;  %v4086_v14 = vrot.slane %v4058_v61, %v8988_v16  ;;  %v9078_v31 = vrot.slane %v4992_v63, %v8988_v16 }
 0x174   :  { %v5170_v45 = vcombine.low %v9071_v18, %v9062_v4  ;;  %vm2905_vm14 = vcmp.ge.f32.partialorder %v2901_v6, 0.0  ;;  %v9097_v39 = vmul.f32 0.02, %v9059_v30  ;;  %v9100_v37 = vrot.slane %v5073_v41, %v8988_v16 }
 0x175   :  { %v4246_v7 = vrot.slane %v4236_v1, %v8988_v16  ;;  %v4253_v12 = vrot.slane %v6358_v35, %v8988_v16  ;;  %v4238_v27 = vcombine.low %v9075_v36, %v4086_v14  ;;  %v5088_v42 = vcombine.high %v5080_v38, %v5080_v38 }
 0x176   :  { %v2911_v29 = vsel %vm2903_vm13, %v2899_v60, %v2907_v21  ;;  %v6373_v22 = vcombine.high %v9071_v18, %v9062_v4  ;;  %v5172_v20 = vcombine.low %v9094_v34, %v9078_v31  ;;  %v2910_v44 = vmul.f32 0.02, %v2902_v24 }
 0x177   :  { %v4268_v33 = vcombine.low %v4246_v7, %v4253_v12  ;;  %v9108_v40 = vadd.f32 %v8899_v15, %v3761_v49  ;;  %7281 = vmatprep.mubr.msk.f32.mxu0 %vm3790_vm3, %v2911_v29  ;;  %v9112_v53 = vrot.slane %v5170_v45, %v8988_v16  ;;  %v3993_v54 = vcombine.high %v2911_v29, %v2911_v29 }
 0x178   :  { %v4000_v55 = vrot.slane %v2911_v29, %v8988_v16  ;;  %7282 = vmatmul.mubr.msk.f32.vlgmr.msra.gmra.mrb[8].mxu0 %vm3790_vm3, %v9030_v32  ;;  %v2913_v57 = vsel %vm2905_vm14, %v2901_v6, %v2909_v19  ;;  %v4260_v58 = vrot.slane %v4238_v27, %v8988_v16  ;;  %vm2906_vm15 = vcmp.ge.f32.partialorder %v2902_v24, 0.0 }
 0x179   :  { %v9119_v60 = vrot.slane %v4268_v33, %v8988_v16  ;;  %v9122_v15 = vrot.slane %v5080_v38, %v8988_v16  ;;  %7714 = vmatpush3.bf16.msra.mxu0 %v8887_v9  ;;  %7284 = vmatprep.mubr.msk.f32.mxu0 %vm3790_vm3, %v2913_v57  ;;  %v5089_v49 = vcombine.high %v9100_v37, %v9100_v37  ;;  %vm3780_vm1 = vcmp.ge.f32.partialorder %v9108_v40, 0.0 }
 0x17a   :  { %v9129_v23 = vrot.slane %v5088_v42, %v8988_v16  ;;  %v4007_v32 = vrot.slane %v3993_v54, %v8988_v16  ;;  %v4008_v61 = vcombine.high %v4000_v55, %v4000_v55  ;;  %7716 = vmatprep.subr.bf16.mxu0 %v8990_v5  ;;  %v4016_v62 = vrot.slane %v4000_v55, %v8988_v16 }
 0x17b   :  { %v4088_v28 = vcombine.high %v9075_v36, %v9075_v36  ;;  %v4090_v63 = vcombine.high %v2913_v57, %v2913_v57  ;;  %v4097_v9 = vrot.slane %v2913_v57, %v8988_v16  ;;  %v2914_v6 = vsel %vm2906_vm15, %v2902_v24, %v2910_v44 }
 0x17c   :  { %v4009_v0 = vcombine.high %v4007_v32, %v4007_v32  ;;  %v4023_v1 = vrot.slane %v4007_v32, %v8988_v16  ;;  %v4030_v35 = vrot.slane %v4008_v61, %v8988_v16  ;;  %7285 = vmatmul.mubr.msk.f32.gmra.mrb[10].mxu0 %vm3790_vm3, %v2914_v6  ;;  %v4139_v12 = vcombine.high %v2914_v6, %v2914_v6 }
 0x17d   :  { %v4104_v14 = vrot.slane %v4090_v63, %v8988_v16  ;;  %v4105_v21 = vcombine.high %v4097_v9, %v4097_v9  ;;  %v4113_v7 = vrot.slane %v4097_v9, %v8988_v16  ;;  %v4146_v45 = vrot.slane %v2914_v6, %v8988_v16  ;;  %7718 = vmatpush3.bf16.msra.mxu0 %v8990_v5 }
 0x17e   :  { %v4037_v36 = vrot.slane %v4009_v0, %v8988_v16  ;;  %v4187_v41 = vcombine.low %v4016_v62, %v4030_v35  ;;  %v6356_v38 = vcombine.high %v4016_v62, %v4030_v35  ;;  %7325 = vmatprep.mubr.msk.f32.mxu0 %vm3790_vm3, %v9049_v47  ;;  %7720 = vmatprep.subr.bf16.mxu0 %v8992_v8  ;;  %vm5986_vm11 = vcmask 1041409  }
 0x17f   :  { %v4106_v19 = vcombine.high %v4104_v14, %v4104_v14  ;;  %v4120_v24 = vrot.slane %v4104_v14, %v8988_v16  ;;  %v4127_v27 = vrot.slane %v4105_v21, %v8988_v16  ;;  %v4135_v33 = vcombine.high %v4113_v7, %v4113_v7 }
 0x180   :  { %v4189_v42 = vcombine.low %v4023_v1, %v4037_v36  ;;  %v6357_v29 = vcombine.high %v4023_v1, %v4037_v36  ;;  %v4197_v44 = vrot.slane %v4187_v41, %v8988_v16  ;;  %v4204_v54 = vrot.slane %v6356_v38, %v8988_v16 }
 0x181   :  { %v4134_v55 = vrot.slane %v4106_v19, %v8988_v16  ;;  %v4136_v5 = vcombine.high %v4120_v24, %v4120_v24  ;;  %v4137_v57 = vcombine.high %v4127_v27, %v4127_v27  ;;  %v4239_v32 = vcombine.low %v4088_v28, %v4113_v7  ;;  %7722 = vmatpush3.bf16.msra.mxu0 %v8992_v8 }
 0x182   :  { %v4285_v61 = vcombine.low %v4127_v27, %v4135_v33  ;;  %v4153_v62 = vrot.slane %v4139_v12, %v8988_v16  ;;  %v4154_v63 = vcombine.high %v4146_v45, %v4146_v45  ;;  %v4162_v9 = vrot.slane %v4146_v45, %v8988_v16  ;;  %7724 = vmatprep.subr.bf16.mxu0 %v8994_v3 }
 0x183   :  { %v4267_v47 = vrot.slane %v4239_v32, %v8988_v16  ;;  %v4286_v0 = vcombine.low %v4137_v57, %v4120_v24  ;;  %v4287_v1 = vcombine.low %v4134_v55, %v4136_v5  ;;  %v4138_v35 = vcombine.high %v4134_v55, %v4134_v55 }
 0x184   :  { %v4155_v6 = vcombine.high %v4153_v62, %v4153_v62  ;;  %v4169_v28 = vrot.slane %v4153_v62, %v8988_v16  ;;  %v4176_v14 = vrot.slane %v4154_v63, %v8988_v16  ;;  %v4184_v21 = vcombine.high %v4162_v9, %v4162_v9 }
 0x185   :  { %v4269_v7 = vcombine.low %v4260_v58, %v4267_v47  ;;  %v4288_v12 = vcombine.low %v4138_v35, %v4162_v9  ;;  %v4211_v36 = vrot.slane %v4189_v42, %v8988_v16  ;;  %v4218_v8 = vrot.slane %v6357_v29, %v8988_v16  ;;  %7726 = vmatpush3.bf16.msra.mxu0 %v8994_v3 }
 0x186   :  { %v4183_v41 = vrot.slane %v4155_v6, %v8988_v16  ;;  %v4185_v38 = vcombine.high %v4169_v28, %v4169_v28  ;;  %v4186_v45 = vcombine.high %v4176_v14, %v4176_v14  ;;  %v4334_v19 = vcombine.low %v4176_v14, %v4184_v21  ;;  %7728 = vmatprep.subr.bf16.mxu0 %v8998_v10 }
 0x187   :  { %v4283_v24 = vrot.slane %v4269_v7, %v8988_v16  ;;  %v4316_v27 = vrot.slane %v4288_v12, %v8988_v16  ;;  %v4219_v33 = vcombine.low %v4197_v44, %v4204_v54  ;;  %v4220_v58 = vcombine.low %v4211_v36, %v4218_v8 }
 0x188   :  { %v4335_v55 = vcombine.low %v4186_v45, %v4169_v28  ;;  %v3786_v42 = vsel %vm3778_vm0, %v9059_v30, %v9097_v39  ;;  %v4295_v29 = vrot.slane %v4285_v61, %v8988_v16  ;;  %v4302_v5 = vrot.slane %v4286_v0, %v8988_v16  ;;  %7326 = vmatmul.mubr.msk.f32.vlgmr.msra.gmra.mrb[8].mxu0 %vm3790_vm3, %v9045_v26 }
 0x189   :  { %v4227_v3 = vrot.slane %v4219_v33, %v8988_v16  ;;  %v4234_v57 = vrot.slane %v4220_v58, %v8988_v16  ;;  %v4284_v44 = vcombine.low %v9119_v60, %v4283_v24  ;;  %v4927_v54 = vcombine.high %v3786_v42, %v3786_v42  ;;  %7328 = vmatprep.mubr.msk.f32.mxu0 %vm3790_vm3, %v9087_v59 }
 0x18a   :  { %v3784_v32 = vmul.f32 0.02, %v9108_v40  ;;  %7730 = vmatpush3.bf16.msra.mxu0 %v8998_v10  ;;  %v4934_v30 = vrot.slane %v3786_v42, %v8988_v16  ;;  %v4309_v39 = vrot.slane %v4287_v1, %v8988_v16  ;;  %v4317_v61 = vcombine.low %v4295_v29, %v4302_v5 }
 0x18b   :  { %v4235_v26 = vcombine.low %v4227_v3, %v4234_v57  ;;  %7732 = vmatprep.subr.bf16.mxu0 %v9000_v17  ;;  %v4941_v62 = vrot.slane %v4927_v54, %v8988_v16  ;;  %v4336_v63 = vcombine.low %v4183_v41, %v4185_v38  ;;  %v4343_v60 = vrot.slane %v4334_v19, %v8988_v16 }
 0x18c   :  { %v4942_v9 = vcombine.high %v4934_v30, %v4934_v30  ;;  %v4950_v47 = vrot.slane %v4934_v30, %v8988_v16  ;;  %v4318_v0 = vcombine.low %v4309_v39, %v4316_v27  ;;  %v4325_v59 = vrot.slane %v4317_v61, %v8988_v16  ;;  %7329 = vmatmul.mubr.msk.f32.gmra.mrb[10].mxu0 %vm3790_vm3, %v9090_v2 }
 0x18d   :  { %7303 = vmatprep.mubr.msk.f32.mxu1 %vm3790_vm3, %v4235_v26  ;;  %v4943_v10 = vcombine.high %v4941_v62, %v4941_v62  ;;  %v4957_v1 = vrot.slane %v4941_v62, %v8988_v16  ;;  %v4350_v35 = vrot.slane %v4335_v55, %v8988_v16  ;;  %v4357_v14 = vrot.slane %v4336_v63, %v8988_v16 }
 0x18e   :  { %7304 = vmatmul.mubr.msk.f32.vlgmr.msra.gmra.mrb[12].mxu1 %vm3790_vm3, %v4284_v44  ;;  %7734 = vmatpush3.bf16.msra.mxu0 %v9000_v17  ;;  %v4964_v6 = vrot.slane %v4942_v9, %v8988_v16  ;;  %v4332_v28 = vrot.slane %v4318_v0, %v8988_v16  ;;  %v3788_v7 = vsel %vm3780_vm1, %v9108_v40, %v3784_v32  ;;  %vm5989_vm12 = vcmask 115712  }
 0x18f   :  { %7746 = vmatpush3.bf16.msra.mxu1 %v8937_v46  ;;  %7347 = vmatprep.mubr.msk.f32.mxu0 %vm3790_vm3, %v3786_v42  ;;  %v4971_v2 = vrot.slane %v4943_v10, %v8988_v16  ;;  %v4358_v21 = vcombine.low %v4343_v60, %v4350_v35  ;;  %v4372_v38 = vrot.slane %v4357_v14, %v8988_v16  ;;  %vm6025_vm13 = vcmask 1024  }
 0x190   :  { %v5121_v12 = vcombine.low %v4950_v47, %v4964_v6  ;;  %v6371_v36 = vcombine.high %v4950_v47, %v4964_v6  ;;  %7748 = vmatprep.subr.bf16.mxu1 %v9008_v43  ;;  %v4333_v17 = vcombine.low %v4325_v59, %v4332_v28  ;;  %7736 = vmatprep.subr.bf16.mxu0 %v9010_v48 }
 0x191   :  { %v5123_v8 = vcombine.low %v4957_v1, %v4971_v2  ;;  %v6372_v41 = vcombine.high %v4957_v1, %v4971_v2  ;;  %v4365_v46 = vrot.slane %v4358_v21, %v8988_v16  ;;  %v5120_v45 = vcombine.high %v9129_v23, %v9129_v23 }
 0x192   :  { %v5131_v19 = vrot.slane %v5121_v12, %v8988_v16  ;;  %v5138_v40 = vrot.slane %v6371_v36, %v8988_v16  ;;  %7306 = vmatprep.mubr.msk.f32.mxu1 %vm3790_vm3, %v4333_v17  ;;  %7738 = vmatpush3.bf16.msra.mxu0 %v9010_v48  ;;  %v5187_v58 = vrot.slane %v6373_v22, %v8988_v16 }
 0x193   :  { %7750 = vmatpush3.bf16.msra.mxu1 %v9008_v43  ;;  %v4373_v24 = vcombine.low %v4365_v46, %v4372_v38  ;;  %v5145_v27 = vrot.slane %v5123_v8, %v8988_v16  ;;  %v5152_v33 = vrot.slane %v6372_v41, %v8988_v16  ;;  %7740 = vmatprep.subr.bf16.mxu0 %v9034_v52 }
 0x194   :  { %7752 = vmatprep.subr.bf16.mxu1 %v9020_v25  ;;  %v5153_v55 = vcombine.low %v5131_v19, %v5138_v40  ;;  %v5024_v42 = vcombine.high %v3788_v7, %v3788_v7  ;;  %v5031_v48 = vrot.slane %v3788_v7, %v8988_v16  ;;  %v5103_v43 = vrot.slane %v9100_v37, %v8988_v16 }
 0x195   :  { %v5118_v29 = vcombine.high %v9122_v15, %v9122_v15  ;;  %7307 = vmatmul.mubr.msk.f32.gmra.mrb[14].mxu1 %vm3790_vm3, %v4373_v24  ;;  %v5154_v5 = vcombine.low %v5145_v27, %v5152_v33  ;;  %v5022_v3 = vcombine.high %v9094_v34, %v9094_v34  ;;  %v5194_v4 = vrot.slane %v5172_v20, %v8988_v16 }
 0x196   :  { %7742 = vmatpush3.bf16.msra.mxu0 %v9034_v52  ;;  %v5038_v18 = vrot.slane %v5024_v42, %v8988_v16  ;;  %v5039_v22 = vcombine.high %v5031_v48, %v5031_v48  ;;  %v5047_v57 = vrot.slane %v5031_v48, %v8988_v16  ;;  %v5117_v44 = vrot.slane %v5089_v49, %v8988_v16 }
 0x197   :  { %v5269_v54 = vcombine.low %v5120_v45, %v5103_v43  ;;  %v5161_v32 = vrot.slane %v5153_v55, %v8988_v16  ;;  %v5168_v30 = vrot.slane %v5154_v5, %v8988_v16  ;;  %7754 = vmatpush3.bf16.msra.mxu1 %v9020_v25  ;;  %v5119_v39 = vcombine.high %v5103_v43, %v5103_v43 }
 0x198   :  { %7756 = vmatprep.subr.bf16.mxu1 %v9051_v50  ;;  %v5040_v52 = vcombine.high %v5038_v18, %v5038_v18  ;;  %v5054_v31 = vrot.slane %v5038_v18, %v8988_v16  ;;  %v5061_v34 = vrot.slane %v5039_v22, %v8988_v16  ;;  %v5069_v20 = vcombine.high %v5047_v57, %v5047_v57 }
 0x199   :  { %v5268_v61 = vcombine.low %v9129_v23, %v5118_v29  ;;  %v5169_v37 = vcombine.low %v5161_v32, %v5168_v30  ;;  %7348 = vmatmul.mubr.msk.f32.vlgmr.msra.gmra.mrb[8].mxu0 %vm3790_vm3, %v9032_v13  ;;  %v5173_v49 = vcombine.low %v5022_v3, %v5047_v57  ;;  %v5202_v60 = vcombine.low %v9112_v53, %v5187_v58 }
 0x19a   :  { %7350 = vmatprep.mubr.msk.f32.mxu0 %vm3790_vm3, %v3788_v7  ;;  %v5068_v25 = vrot.slane %v5040_v52, %v8988_v16  ;;  %v5070_v26 = vcombine.high %v5054_v31, %v5054_v31  ;;  %v5071_v62 = vcombine.high %v5061_v34, %v5061_v34  ;;  %v5219_v63 = vcombine.low %v5061_v34, %v5069_v20 }
 0x19b   :  { %7369 = vmatprep.mubr.msk.f32.mxu1 %vm3790_vm3, %v5169_v37  ;;  %7758 = vmatpush3.bf16.msra.mxu1 %v9051_v50  ;;  %v5201_v23 = vrot.slane %v5173_v49, %v8988_v16  ;;  %v5284_v9 = vrot.slane %v5269_v54, %v8988_v16  ;;  %v5270_v10 = vcombine.low %v5117_v44, %v5119_v39 }
 0x19c   :  { %v5072_v47 = vcombine.high %v5068_v25, %v5068_v25  ;;  %v5220_v13 = vcombine.low %v5071_v62, %v5054_v31  ;;  %v5221_v0 = vcombine.low %v5068_v25, %v5070_v26  ;;  %v5277_v1 = vrot.slane %v5268_v61, %v8988_v16  ;;  %v9305_v25 = vld [vmem:[%s9546_s4] sm:$0x1] }
 0x19d   :  { %v5203_v59 = vcombine.low %v5194_v4, %v5201_v23  ;;  %7351 = vmatmul.mubr.msk.f32.gmra.mrb[10].mxu0 %vm3790_vm3, %v9066_v11  ;;  %v5229_v35 = vrot.slane %v5219_v63, %v8988_v16  ;;  %v5210_v6 = vrot.slane %v5202_v60, %v8988_v16  ;;  %v5291_v12 = vrot.slane %v5270_v10, %v8988_v16 }
 0x19e   :  { %v5222_v53 = vcombine.low %v5072_v47, %v9122_v15  ;;  %v5236_v50 = vrot.slane %v5220_v13, %v8988_v16  ;;  %v5292_v14 = vcombine.low %v5277_v1, %v5284_v9  ;;  %v5243_v2 = vrot.slane %v5221_v0, %v8988_v16 }
 0x19f   :  { %v5217_v28 = vrot.slane %v5203_v59, %v8988_v16  ;;  %v5306_v41 = vrot.slane %v5291_v12, %v8988_v16  ;;  %v9349_v12 = vld [vmem:[%s9547_s5] sm:$0x1] }
 0x1a0   :  { %v5250_v21 = vrot.slane %v5222_v53, %v8988_v16  ;;  %v5251_v7 = vcombine.low %v5229_v35, %v5236_v50  ;;  %v5299_v15 = vrot.slane %v5292_v14, %v8988_v16 }
 0x1a1   :  { %v5218_v11 = vcombine.low %v5210_v6, %v5217_v28 }
 0x1a2   :  { %v5252_v36 = vcombine.low %v5243_v2, %v5250_v21  ;;  %v5259_v17 = vrot.slane %v5251_v7, %v8988_v16  ;;  %v5307_v38 = vcombine.low %v5299_v15, %v5306_v41 }
 0x1a3   :  { %7370 = vmatmul.mubr.msk.f32.vlgmr.msra.gmra.mrb[16].mxu1 %vm3790_vm3, %v5218_v11 }
 0x1a4   :  { %v5266_v8 = vrot.slane %v5252_v36, %v8988_v16 }
 0x1a6   :  { %v5267_v46 = vcombine.low %v5259_v17, %v5266_v8 }
 0x1a8   :  { %7372 = vmatprep.mubr.msk.f32.mxu1 %vm3790_vm3, %v5267_v46 }
 0x1a9   :  { %7373 = vmatmul.mubr.msk.f32.gmra.mrb[18].mxu1 %vm3790_vm3, %v5307_v38 }
 0x1fa   :  { %v7261_v45 = vpop.f32.mrb[8].mxu1 }
 0x1fb   :  { %v3869_v19 = vpop.f32.mrb[9].mxu1 }
 0x1fe   :  { %v7264_v40 = vpop.f32.mrb[10].mxu1 }
 0x1ff   :  { %v3879_v24 = vpop.f32.mrb[11].mxu1 }
 0x261   :  { %v7305_v27 = vpop.f32.mrb[12].mxu1 }
 0x262   :  { %v4448_v33 = vpop.f32.mrb[13].mxu1  ;;  %v4520_v58 = vcombine.high %v7305_v27, %v7305_v27  ;;  %v4527_v42 = vrot.slane %v7305_v27, %v8988_v16 }
 0x263   :  { %v4471_v55 = vcombine.high %v4448_v33, %v4448_v33  ;;  %v4478_v48 = vrot.slane %v4448_v33, %v8988_v16 }
 0x264   :  { %v4534_v43 = vrot.slane %v4520_v58, %v8988_v16  ;;  %v4535_v4 = vcombine.high %v4527_v42, %v4527_v42  ;;  %v9285_v18 = vrot.slane %v4527_v42, %v8988_v16 }
 0x265   :  { %v4485_v5 = vrot.slane %v4471_v55, %v8988_v16  ;;  %v4486_v22 = vcombine.high %v4478_v48, %v4478_v48  ;;  %v9288_v54 = vrot.slane %v4478_v48, %v8988_v16 }
 0x266   :  { %v4536_v44 = vcombine.high %v4534_v43, %v4534_v43  ;;  %v9292_v31 = vrot.slane %v4534_v43, %v8988_v16  ;;  %v9297_v61 = vrot.slane %v4535_v4, %v8988_v16  ;;  %v4565_v37 = vcombine.high %v9285_v18, %v9285_v18 }
 0x267   :  { %v4487_v34 = vcombine.high %v4485_v5, %v4485_v5  ;;  %v9309_v62 = vrot.slane %v4485_v5, %v8988_v16  ;;  %v9312_v63 = vrot.slane %v4486_v22, %v8988_v16  ;;  %v4516_v47 = vcombine.high %v9288_v54, %v9288_v54 }
 0x268   :  { %v7308_v29 = vpop.f32.mrb[14].mxu1  ;;  %v9320_v9 = vrot.slane %v4536_v44, %v8988_v16  ;;  %v4566_v10 = vcombine.high %v9292_v31, %v9292_v31  ;;  %v4567_v6 = vcombine.high %v9297_v61, %v9297_v61 }
 0x269   :  { %v4458_v3 = vpop.f32.mrb[15].mxu1  ;;  %v4618_v57 = vcombine.high %v7308_v29, %v7308_v29  ;;  %v4625_v32 = vrot.slane %v7308_v29, %v8988_v16  ;;  %v9328_v1 = vrot.slane %v4487_v34, %v8988_v16  ;;  %v4517_v36 = vcombine.high %v9309_v62, %v9309_v62 }
 0x26a   :  { %v4569_v30 = vcombine.high %v4458_v3, %v4458_v3  ;;  %v4576_v49 = vrot.slane %v4458_v3, %v8988_v16  ;;  %v4518_v15 = vcombine.high %v9312_v63, %v9312_v63  ;;  %v4568_v41 = vcombine.high %v9320_v9, %v9320_v9 }
 0x26b   :  { %v9315_v60 = vrot.slane %v4618_v57, %v8988_v16  ;;  %v4633_v13 = vcombine.high %v4625_v32, %v4625_v32  ;;  %v9337_v28 = vrot.slane %v4625_v32, %v8988_v16  ;;  %v4519_v46 = vcombine.high %v9328_v1, %v9328_v1 }
 0x26c   :  { %v7349_v52 = vpop.f32.mrb[8].mxu0  ;;  %v4583_v0 = vrot.slane %v4569_v30, %v8988_v16  ;;  %v4584_v14 = vcombine.high %v4576_v49, %v4576_v49  ;;  %v9344_v7 = vrot.slane %v4576_v49, %v8988_v16 }
 0x26d   :  { %v9294_v20 = vadd.f32 %v7349_v52, %v7261_v45  ;;  %v4904_v39 = vpop.f32.mrb[9].mxu0  ;;  %v4634_v21 = vcombine.high %v9315_v60, %v9315_v60  ;;  %v9356_v17 = vrot.slane %v4633_v13, %v8988_v16 }
 0x26e   :  { %v9317_v23 = vadd.f32 %v4904_v39, %v3869_v19  ;;  %v4585_v8 = vcombine.high %v4583_v0, %v4583_v0  ;;  %v9363_v38 = vrot.slane %v4583_v0, %v8988_v16  ;;  %v4648_v19 = vrot.slane %v9315_v60, %v8988_v16 }
 0x26f   :  { %v9376_v58 = vrot.slane %v4634_v21, %v8988_v16  ;;  %v4614_v55 = vcombine.high %v9344_v7, %v9344_v7  ;;  %v4664_v29 = vcombine.high %v9356_v17, %v9356_v17 }
 0x270   :  { %v7352_v59 = vpop.f32.mrb[10].mxu0  ;;  %v5659_v53 = vadd.f32 %v9317_v23, %v9305_v25  ;;  %v9384_v5 = vrot.slane %v4585_v8, %v8988_v16  ;;  %v4615_v22 = vcombine.high %v9363_v38, %v9363_v38 }
 0x271   :  { %v9332_v35 = vadd.f32 %v7352_v59, %v7264_v40  ;;  %v4914_v50 = vpop.f32.mrb[11].mxu0  ;;  %v4663_v40 = vcombine.high %v9337_v28, %v9337_v28 }
 0x272   :  { %v9339_v2 = vadd.f32 %v4914_v50, %v3879_v24  ;;  %v5663_v11 = vmul.f32 0.02, %v5659_v53  ;;  %vm5661_vm2 = vcmp.ge.f32.partialorder %v5659_v53, 0.0  ;;  %v9370_v24 = vrot.slane %v4584_v14, %v8988_v16 }
 0x274   :  { %v5665_v45 = vsel %vm5661_vm2, %v5659_v53, %v5663_v11  ;;  %v4616_v30 = vcombine.high %v9370_v24, %v9370_v24 }
 0x275   :  { %v9373_v33 = vmul.f32 %v9349_v12, %v5665_v45 }
 0x276   :  { %v7371_v27 = vpop.f32.mrb[16].mxu1 }
 0x277   :  { %v5454_v42 = vcombine.high %v7371_v27, %v7371_v27  ;;  %v5461_v48 = vrot.slane %v7371_v27, %v8988_v16  ;;  %v5382_v43 = vpop.f32.mrb[17].mxu1 }
 0x278   :  { %v5405_v3 = vcombine.high %v5382_v43, %v5382_v43  ;;  %v5412_v4 = vrot.slane %v5382_v43, %v8988_v16 }
 0x279   :  { %v5468_v57 = vrot.slane %v5454_v42, %v8988_v16  ;;  %v5469_v44 = vcombine.high %v5461_v48, %v5461_v48  ;;  %v5477_v32 = vrot.slane %v5461_v48, %v8988_v16 }
 0x27a   :  { %v5419_v52 = vrot.slane %v5405_v3, %v8988_v16  ;;  %v5420_v34 = vcombine.high %v5412_v4, %v5412_v4  ;;  %v5428_v39 = vrot.slane %v5412_v4, %v8988_v16 }
 0x27b   :  { %v5470_v49 = vcombine.high %v5468_v57, %v5468_v57  ;;  %v5484_v13 = vrot.slane %v5468_v57, %v8988_v16  ;;  %v5491_v0 = vrot.slane %v5469_v44, %v8988_v16  ;;  %v5499_v59 = vcombine.high %v5477_v32, %v5477_v32 }
 0x27c   :  { %v9398_v53 = vadd.f32 %v5477_v32, %v9285_v18  ;;  %v5421_v50 = vcombine.high %v5419_v52, %v5419_v52  ;;  %v5435_v14 = vrot.slane %v5419_v52, %v8988_v16  ;;  %v5442_v21 = vrot.slane %v5420_v34, %v8988_v16  ;;  %v7374_v11 = vpop.f32.mrb[18].mxu1 }
 0x27d   :  { %v5498_v8 = vrot.slane %v5470_v49, %v8988_v16  ;;  %v5500_v45 = vcombine.high %v5484_v13, %v5484_v13  ;;  %v5501_v27 = vcombine.high %v5491_v0, %v5491_v0  ;;  %v5638_v42 = vadd.f32 %v5491_v0, %v9297_v61  ;;  %v5392_v48 = vpop.f32.mrb[19].mxu1 }
 0x27e   :  { %v5639_v43 = vadd.f32 %v5499_v59, %v4565_v37  ;;  %v5641_v3 = vadd.f32 %v5484_v13, %v9292_v31  ;;  %v5449_v4 = vrot.slane %v5421_v50, %v8988_v16  ;;  %v5450_v57 = vcombine.high %v5428_v39, %v5428_v39 }
 0x27f   :  { %v5502_v44 = vcombine.high %v5498_v8, %v5498_v8  ;;  %v5640_v32 = vadd.f32 %v5501_v27, %v4567_v6  ;;  %v5642_v52 = vadd.f32 %v5498_v8, %v9320_v9  ;;  %v5643_v34 = vadd.f32 %v5500_v45, %v4566_v10 }
 0x280   :  { %v5747_v49 = vcombine.low %v5638_v42, %v5639_v43  ;;  %v5451_v61 = vcombine.high %v5435_v14, %v5435_v14  ;;  %v5452_v0 = vcombine.high %v5442_v21, %v5442_v21  ;;  %v5453_v51 = vcombine.high %v5449_v4, %v5449_v4 }
 0x281   :  { %v9413_v26 = vadd.f32 %v5502_v44, %v4568_v41  ;;  %v5748_v18 = vcombine.low %v5640_v32, %v5641_v3  ;;  %v5749_v37 = vcombine.low %v5642_v52, %v5643_v34  ;;  %v5629_v13 = vadd.f32 %v5428_v39, %v9288_v54 }
 0x282   :  { %v4617_v59 = vcombine.high %v9384_v5, %v9384_v5  ;;  %v5630_v6 = vadd.f32 %v5442_v21, %v9312_v63  ;;  %v5631_v31 = vadd.f32 %v5450_v57, %v4516_v47  ;;  %v5632_v9 = vadd.f32 %v5452_v0, %v4518_v15 }
 0x283   :  { %v9423_v10 = vrot.slane %v5747_v49, %v8988_v16  ;;  %v9426_v41 = vrot.slane %v5748_v18, %v8988_v16  ;;  %v9429_v50 = vrot.slane %v5749_v37, %v8988_v16  ;;  %v5633_v39 = vadd.f32 %v5435_v14, %v9309_v62 }
 0x284   :  { %v5634_v8 = vadd.f32 %v5449_v4, %v9328_v1  ;;  %v5635_v63 = vadd.f32 %v5451_v61, %v4517_v36  ;;  %v5636_v54 = vadd.f32 %v5453_v51, %v4519_v46  ;;  %v5697_v47 = vcombine.low %v5629_v13, %v5629_v13 }
 0x285   :  { %v5779_v15 = vcombine.low %v9426_v41, %v9429_v50  ;;  %v5698_v21 = vcombine.low %v5630_v6, %v5631_v31  ;;  %v5699_v45 = vcombine.low %v5632_v9, %v5633_v39  ;;  %v5552_v27 = vcombine.high %v7374_v11, %v7374_v11 }
 0x286   :  { %v5700_v42 = vcombine.low %v5634_v8, %v5635_v63  ;;  %v5707_v14 = vrot.slane %v5697_v47, %v8988_v16  ;;  %v5746_v43 = vcombine.low %v5636_v54, %v9398_v53  ;;  %v5559_v3 = vrot.slane %v7374_v11, %v8988_v16 }
 0x287   :  { %v5714_v62 = vrot.slane %v5698_v21, %v8988_v16  ;;  %v5721_v36 = vrot.slane %v5699_v45, %v8988_v16  ;;  %v5566_v51 = vrot.slane %v5552_v27, %v8988_v16  ;;  %v5503_v1 = vcombine.high %v5392_v48, %v5392_v48 }
 0x288   :  { %v5795_v46 = vcombine.low %v9413_v26, %v9413_v26  ;;  %v5728_v4 = vrot.slane %v5700_v42, %v8988_v16  ;;  %v5567_v57 = vcombine.high %v5559_v3, %v5559_v3  ;;  %v5575_v44 = vrot.slane %v5559_v3, %v8988_v16 }
 0x289   :  { %v5729_v32 = vcombine.low %v5707_v14, %v5714_v62  ;;  %v5568_v52 = vcombine.high %v5566_v51, %v5566_v51  ;;  %v5582_v53 = vrot.slane %v5566_v51, %v8988_v16  ;;  %v5510_v11 = vrot.slane %v5392_v48, %v8988_v16 }
 0x28a   :  { %v5730_v34 = vcombine.low %v5721_v36, %v5728_v4  ;;  %v5589_v49 = vrot.slane %v5567_v57, %v8988_v16  ;;  %v5597_v61 = vcombine.high %v5575_v44, %v5575_v44  ;;  %v5653_v0 = vadd.f32 %v5575_v44, %v9337_v28 }
 0x28b   :  { %v5756_v18 = vrot.slane %v5746_v43, %v8988_v16  ;;  %v5596_v26 = vrot.slane %v5568_v52, %v8988_v16  ;;  %v5657_v37 = vadd.f32 %v5582_v53, %v4648_v19  ;;  %v5517_v13 = vrot.slane %v5503_v1, %v8988_v16 }
 0x28c   :  { %v5598_v6 = vcombine.high %v5589_v49, %v5589_v49  ;;  %v5654_v31 = vadd.f32 %v5589_v49, %v9356_v17  ;;  %v5655_v48 = vadd.f32 %v5597_v61, %v4663_v40  ;;  %v5518_v9 = vcombine.high %v5510_v11, %v5510_v11 }
 0x28d   :  { %v5658_v39 = vadd.f32 %v5596_v26, %v9376_v58  ;;  %v5519_v8 = vcombine.high %v5517_v13, %v5517_v13  ;;  %v5526_v63 = vrot.slane %v5510_v11, %v8988_v16  ;;  %v5533_v54 = vrot.slane %v5517_v13, %v8988_v16 }
 0x28e   :  { %v5737_v60 = vrot.slane %v5729_v32, %v8988_v16  ;;  %v5656_v19 = vadd.f32 %v5598_v6, %v4664_v29  ;;  %v5845_v47 = vcombine.low %v5653_v0, %v5654_v31  ;;  %v5540_v21 = vrot.slane %v5518_v9, %v8988_v16 }
 0x28f   :  { %v5847_v45 = vcombine.low %v5657_v37, %v5658_v39  ;;  %v5547_v28 = vrot.slane %v5519_v8, %v8988_v16  ;;  %v5548_v40 = vcombine.high %v5526_v63, %v5526_v63  ;;  %v5549_v27 = vcombine.high %v5533_v54, %v5533_v54  ;;  %v5936_v37 = vld [vmem:[%s9547_s5 + $0x9] sm:$0x7f] }
 0x290   :  { %v5846_v58 = vcombine.low %v5655_v48, %v5656_v19  ;;  %v5550_v42 = vcombine.high %v5540_v21, %v5540_v21  ;;  %v5645_v14 = vadd.f32 %v5526_v63, %v9344_v7  ;;  %v5805_v43 = vrot.slane %v5795_v46, %v8988_v16 }
 0x291   :  { %v5875_v3 = vrot.slane %v5847_v45, %v8988_v16  ;;  %v5551_v62 = vcombine.high %v5547_v28, %v5547_v28  ;;  %v5646_v17 = vadd.f32 %v5540_v21, %v9370_v24  ;;  %v5647_v29 = vadd.f32 %v5548_v40, %v4614_v55 }
 0x292   :  { %v5868_v36 = vrot.slane %v5846_v58, %v8988_v16  ;;  %v5648_v51 = vadd.f32 %v5550_v42, %v4616_v30  ;;  %v5649_v1 = vadd.f32 %v5533_v54, %v9363_v38  ;;  %v5650_v4 = vadd.f32 %v5547_v28, %v9384_v5 }
 0x293   :  { %v5651_v46 = vadd.f32 %v5549_v27, %v4615_v22  ;;  %v5652_v57 = vadd.f32 %v5551_v62, %v4617_v59  ;;  %v5796_v7 = vcombine.low %v5645_v14, %v5646_v17  ;;  %v5744_v55 = vrot.slane %v5730_v34, %v8988_v16  ;;  %v5935_v59 = vld [vmem:[%s9547_s5 + $0x1] sm:$0xff] }
 0x294   :  { %v5877_v44 = vcombine.low %v5868_v36, %v5875_v3  ;;  %v5797_v32 = vcombine.low %v5647_v29, %v5648_v51  ;;  %v5798_v52 = vcombine.low %v5649_v1, %v5650_v4  ;;  %v5778_v24 = vcombine.low %v5756_v18, %v9423_v10 }
 0x295   :  { %v9551_v30 = vsub.s32 0, %v8947_v56  ;;  %v5812_v11 = vrot.slane %v5796_v7, %v8988_v16  ;;  %v5844_v38 = vcombine.low %v5651_v46, %v5652_v57  ;;  %v5745_v22 = vcombine.low %v5737_v60, %v5744_v55 }
 0x296   :  { %v5819_v49 = vrot.slane %v5797_v32, %v8988_v16  ;;  %v5826_v5 = vrot.slane %v5798_v52, %v8988_v16  ;;  %v5786_v34 = vrot.slane %v5778_v24, %v8988_v16  ;;  %v5793_v10 = vrot.slane %v5779_v15, %v8988_v16 }
 0x297   :  { %v5905_v53 = vrot.slane %v9305_v25, %v9551_v30  ;;  %v5861_v61 = vrot.slane %v5845_v47, %v8988_v16  ;;  %v5827_v0 = vcombine.low %v5805_v43, %v5812_v11  ;;  %v5854_v18 = vrot.slane %v5844_v38, %v8988_v16 }
 0x298   :  { %v5897_v26 = vadd.f32 %v9317_v23, %v5745_v22  ;;  %v5828_v13 = vcombine.low %v5819_v49, %v5826_v5  ;;  %v5794_v6 = vcombine.low %v5786_v34, %v5793_v10  ;;  %v5939_v9 = vrot.slane %v5935_v59, 7 }
 0x299   :  { %v5876_v31 = vcombine.low %v5854_v18, %v5861_v61  ;;  %v5835_v39 = vrot.slane %v5827_v0, %v8988_v16  ;;  %v5940_v50 = vrot.slane %v5936_v37, 7  ;;  %v5891_v63 = vrot.slane %v5877_v44, %v8988_v16 }
 0x29a   :  { %v5907_v48 = vadd.f32 %v5905_v53, %v5897_v26  ;;  %v5898_v41 = vadd.f32 %v9294_v20, %v5794_v6  ;;  %v5842_v15 = vrot.slane %v5828_v13, %v8988_v16  ;;  %v5660_v27 = vadd.f32 %v9339_v2, %v9305_v25 }
 0x29b   :  { %v5884_v23 = vrot.slane %v5876_v31, %v8988_v16  ;;  %v5941_v28 = vsel %vm5926_vm5, %v5939_v9, %v5940_v50  ;;  %v9552_v46 = vlaneseq  ;;  %v5927_v10 = vsel %vm5926_vm5, %v9373_v33, 0.0 }
 0x29c   :  { %vm5911_vm3 = vcmp.ge.f32.partialorder %v5907_v48, 0.0  ;;  %v5915_v8 = vmul.f32 0.02, %v5907_v48  ;;  %v5908_v54 = vadd.f32 %v5905_v53, %v5898_v41  ;;  %v5843_v60 = vcombine.low %v5835_v39, %v5842_v15 }
 0x29d   :  { %v5892_v47 = vcombine.low %v5884_v23, %v5891_v63  ;;  %v5664_v17 = vmul.f32 0.02, %v5660_v27  ;;  %vm5662_vm9 = vcmp.ge.f32.partialorder %v5660_v27, 0.0  ;;  %v5964_v57 = vand.u32 127, %v9552_v46 }
 0x29e   :  { %v5919_v19 = vsel %vm5911_vm3, %v5907_v48, %v5915_v8  ;;  %vm5912_vm6 = vcmp.ge.f32.partialorder %v5908_v54, 0.0  ;;  %v5916_v45 = vmul.f32 0.02, %v5908_v54  ;;  %v5899_v20 = vadd.f32 %v9339_v2, %v5843_v60 }
 0x29f   :  { %v5944_v21 = vmul.f32 %v5939_v9, %v5919_v19  ;;  %v5900_v40 = vadd.f32 %v9332_v35, %v5892_v47  ;;  %v5666_v25 = vsel %vm5662_vm9, %v5660_v27, %v5664_v17  ;;  %v5970_v55 = vadd.s32 4294967289, %v5964_v57 }
 0x2a0   :  { %v5920_v58 = vsel %vm5912_vm6, %v5908_v54, %v5916_v45  ;;  %v5909_v42 = vadd.f32 %v5905_v53, %v5899_v20  ;;  %v5925_v1 = vmul.f32 %v9349_v12, %v5666_v25  ;;  %v5965_v44 = vadd.s32 1, %v5964_v57 }
 0x2a1   :  { %v5949_v16 = vsel %vm5948_vm4, %v5944_v21, 0.0  ;;  %v5910_v14 = vadd.f32 %v5905_v53, %v5900_v40  ;;  %v5945_v3 = vmul.f32 %v5941_v28, %v5920_v58  ;;  %v5973_v32 = vsub.s32 %v5970_v55, %v8947_v56 }
 0x2a2   :  { %5950 = vadd.xlane.f32.xlu0 %v5949_v16  ;;  %vm5913_vm7 = vcmp.ge.f32.partialorder %v5909_v42, 0.0  ;;  %v5917_v43 = vmul.f32 0.02, %v5909_v42  ;;  %v5930_v4 = vsel %vm5926_vm5, %v5925_v1, 0.0  ;;  %v5968_v30 = vsub.s32 %v5965_v44, %v8947_v56 }
 0x2a3   :  { %v5918_v62 = vmul.f32 0.02, %v5910_v14  ;;  %vm5914_vm8 = vcmp.ge.f32.partialorder %v5910_v14, 0.0  ;;  %v12_v56 = vstv %s9548_s6 }
 0x2a4   :  { %v5921_v29 = vsel %vm5913_vm7, %v5909_v42, %v5917_v43  ;;  %13 = vst [vmem:[#allocation2] sm:$0x1] %v12_v56 }
 0x2a5   :  { %v5946_v36 = vmul.f32 %v5939_v9, %v5921_v29  ;;  %v5922_v51 = vsel %vm5914_vm8, %v5910_v14, %v5918_v62 }
 0x2a6   :  { %5952 = vadd.xlane.f32.xlu0 %v5945_v3  ;;  %v5947_v2 = vmul.f32 %v5941_v28, %v5922_v51 }
 0x2a7   :  { %v5954_v35 = vsel %vm5948_vm4, %v5946_v36, 0.0 }
 0x2a8   :  { %5955 = vadd.xlane.f32.xlu1 %v5954_v35 }
 0x2ab   :  { %v6378_v26 = vld [vmem:[#allocation2] ss:$0 sm:$0xff] }
 0x2ac   :  { %5957 = vadd.xlane.f32.xlu1 %v5947_v2 }
 0x2b0   :  { %5931 = vadd.xlane.f32.xlu1 %v5930_v4 }
 0x32f   :  { %v5951_v7 = vpop.xlane.xlu0 %5950 }
 0x330   :  { %v5969_v38 = vrot.slane %v5951_v7, %v5968_v30 }
 0x333   :  { %v5953_v52 = vpop.xlane.xlu0 %5952 }
 0x334   :  { %v5974_v53 = vrot.slane %v5953_v52, %v5973_v32 }
 0x335   :  { %v5956_v24 = vpop.xlane.xlu1 %5955 }
 0x336   :  { %v5980_v12 = vrot.slane %v5956_v24, %v5968_v30  ;;  %v5976_v49 = vsel %vm5975_vm10, %v5974_v53, %v5969_v38 }
 0x339   :  { %v5958_v11 = vpop.xlane.xlu1 %5957 }
 0x33a   :  { %v5984_v22 = vrot.slane %v5958_v11, %v5973_v32 }
 0x33c   :  { %v5985_v5 = vsel %vm5975_vm10, %v5984_v22, %v5980_v12 }
 0x33d   :  { %v5987_v59 = vsel %vm5986_vm11, %v5985_v5, %v5976_v49  ;;  %v5932_v18 = vpop.xlane.xlu1 %5931 }
 0x33e   :  { %v5990_v34 = vsel %vm5989_vm12, %v5987_v59, 0.0 }
 0x33f   :  { %5991 = vadd.xlane.f32.xlu0 %v5990_v34 }
 0x343   :  { %5928 = vadd.xlane.f32.xlu0 %v5927_v10 }
 0x3cc   :  { %v5992_v61 = vpop.xlane.xlu0 %5991 }
 0x3cd   :  { %v5994_v0 = vrot.slane %v5992_v61, 1 }
 0x3cf   :  { %v5998_v37 = vadd.f32 %v5994_v0, %v5932_v18 }
 0x3d0   :  { %v5929_v13 = vpop.xlane.xlu0 %5928 }
 0x3d1   :  { %v5997_v6 = vadd.f32 %v5992_v61, %v5929_v13  ;;  %v6007_v31 = vadd.f32 %v6378_v26, %v5998_v37 }
 0x3d3   :  { %v6006_v48 = vadd.f32 %v6378_v26, %v5997_v6  ;;  %v6009_v9 = vsub.f32 0.0, %v6007_v31 }
 0x3d5   :  { %v6008_v39 = vsub.f32 0.0, %v6006_v48  ;;  %v6012_v41 = vmul.f32 1.442695, %v6009_v9 }
 0x3d7   :  { %v6010_v50 = vmul.f32 1.442695, %v6008_v39  ;;  %7900 = vpow2.f32 %v6012_v41 }
 0x3d9   :  { %7902 = vpow2.f32 %v6010_v50 }
 0x3e1   :  { %v7901_v33 = vpop.eup %7900 }
 0x3e2   :  { %v6015_v15 = vadd.f32 1.0, %v7901_v33 }
 0x3e3   :  { %v7903_v8 = vpop.eup %7902 }
 0x3e4   :  { %v6014_v23 = vadd.f32 1.0, %v7903_v8  ;;  %7904 = vrcp.f32 %v6015_v15 }
 0x3e6   :  { %7906 = vrcp.f32 %v6014_v23 }
 0x3ee   :  { %v7905_v63 = vpop.eup %7904 }
 0x3ef   :  { %v6022_v54 = vrot.slane %v7905_v63, 7 }
 0x3f0   :  { %v7907_v60 = vpop.eup %7906 }
 0x3f1   :  { %v6023_v19 = vsel %vm5986_vm11, %v6022_v54, %v7907_v60 }
 0x3f2   :  { %6026 = vst.msk [vmem:[%s9549_s7] sm:$0x3] %vm6025_vm13, %v6023_v19 }

</bundles_post_ra>
